<compile_context>
chip_gen: v7x
topology: tpu7x:2x2x1
jax: 0.10.0
libtpu: 0.0.40
codegen_flags: <defaults>
</compile_context>

<pallas_src>
import functools

import jax
import jax.numpy as jnp
from jax import lax
from jax.experimental import pallas as pl
from jax.experimental.pallas import tpu as pltpu


LANE = 128
SUBLANE = 8
MAX_BATCH_BLK = 128    # target MXU rows per grid block
OUT_DIM = 3            # policy head: Linear(H, 3)
NEG_INF = -1e30        # bias for padded logit lanes -> softmax ignores them


def _round_up(n, m):
    return ((n + m - 1) // m) * m


def _cdiv(a, b):
    return (a + b - 1) // b


def _vmem_cap_bytes():
    """85% of physical VMEM (v7x: 64 MiB/TC); conservative fallback."""
    try:
        info = pltpu.get_tpu_info()
        cap = getattr(info, "vmem_capacity_bytes", None)
        if cap:
            return int(cap * 0.85)
    except Exception:
        pass
    return 54 << 20


# ----------------------------- Pallas kernel --------------------------------


def fused_lstm_policy_kernel(*refs, num_layers, hidden_size, seq_len,
                             batch_blk, compute_dtype, gate_dtype):
    """All LSTM layers + tanh -> Linear -> Softmax, one batch block.

    ref layout (in order):
      x_ref      (T, Bb, Fp)
      h0_ref     (L, Bb, Hp)
      c0_ref     (L, Bb, Hp)
      w_ih[l]    (Fin_p, 4Hp)   l = 0..L-1   (gate order [i, f, o, g])
      w_hh[l]    (Hp,   4Hp)
      b[l]       (1,    4Hp)    (b_ih + b_hh, f32)
      head_w     (Hp, OUTp)
      head_b     (1,  OUTp)     (padded lanes = -1e30)
      out_ref    (Bb, OUTp)
      scratch:   gx (T, Bb, 4Hp), [hseq (T, Bb, Hp) if L > 1],
                 h (Bb, Hp) f32, c (Bb, Hp) f32
    """
    L, Hp, T, B = num_layers, hidden_size, seq_len, batch_blk

    x_ref, h0_ref, c0_ref = refs[0], refs[1], refs[2]
    w_ih_refs = refs[3:3 + L]
    w_hh_refs = refs[3 + L:3 + 2 * L]
    b_refs = refs[3 + 2 * L:3 + 3 * L]
    head_w_ref = refs[3 + 3 * L]
    head_b_ref = refs[4 + 3 * L]
    out_ref = refs[5 + 3 * L]
    scratch = refs[6 + 3 * L:]
    if L > 1:
        gx_scr, hseq_scr, h_scr, c_scr = scratch
    else:
        gx_scr, h_scr, c_scr = scratch
        hseq_scr = None

    # Short fixed trip count -> full unroll for LLO scheduling visibility;
    # partial unroll for longer sequences.
    time_unroll = True if T <= 32 else 4

    for l in range(L):
        # ---- input projection for the WHOLE sequence: one big MXU matmul,
        # bias folded in here so the recurrence never touches it.
        w_ih_l = w_ih_refs[l][...].astype(compute_dtype)
        b_l = b_refs[l][...]                               # (1, 4Hp) f32
        if l == 0:
            inp = x_ref[...].reshape(T * B, -1)
        else:
            inp = hseq_scr[...].reshape(T * B, Hp)
        gx = jnp.dot(inp.astype(compute_dtype), w_ih_l,
                     preferred_element_type=jnp.float32) + b_l
        gx_scr[...] = gx.reshape(T, B, 4 * Hp).astype(gx_scr.dtype)

        h_scr[...] = h0_ref[l]
        c_scr[...] = c0_ref[l]

        w_hh_ref = w_hh_refs[l]
        is_last_layer = (l == L - 1)

        # ---- serial recurrence: only the (Bb,Hp)@(Hp,4Hp) matmul + gates.
        def step(t, carry, w_hh_ref=w_hh_ref, is_last_layer=is_last_layer):
            h_prev = h_scr[...]
            # W_hh streamed from VMEM inside the step (not hoisted to a value):
            # a full f32 W_hh can exceed the vreg file and spill on the
            # serial critical path; the vld slots have slack here.
            rec = jnp.dot(h_prev.astype(compute_dtype),
                          w_hh_ref[...].astype(compute_dtype),
                          preferred_element_type=jnp.float32)
            gates = gx_scr[t].astype(jnp.float32) + rec
            # gate order [i, f, o, g]: one contiguous sigmoid slab + one tanh.
            # gate_dtype=bf16 uses the packed-EUP path on v6e/v7x; keep f32 on
            # v5e. c/h state and accumulation stay f32 in all cases.
            sig = jax.nn.sigmoid(
                gates[:, :3 * Hp].astype(gate_dtype)).astype(jnp.float32)
            i_g = sig[:, 0 * Hp:1 * Hp]
            f_g = sig[:, 1 * Hp:2 * Hp]
            o_g = sig[:, 2 * Hp:3 * Hp]
            g_g = jnp.tanh(
                gates[:, 3 * Hp:4 * Hp].astype(gate_dtype)).astype(jnp.float32)
            c_new = f_g * c_scr[...] + i_g * g_g
            h_new = o_g * jnp.tanh(c_new.astype(gate_dtype)).astype(jnp.float32)
            c_scr[...] = c_new
            h_scr[...] = h_new
            if not is_last_layer:
                hseq_scr[t] = h_new.astype(hseq_scr.dtype)   # feeds next layer
            return carry

        lax.fori_loop(0, T, step, 0, unroll=time_unroll)

    # ---- fused head: tanh -> Linear -> Softmax on the last hidden state.
    # (elementwise tanh commutes with taking the last timestep)
    h_last = jnp.tanh(h_scr[...])
    logits = jnp.dot(h_last, head_w_ref[...].astype(jnp.float32),
                     preferred_element_type=jnp.float32) + head_b_ref[...]
    m = jnp.max(logits, axis=-1, keepdims=True)
    e = jnp.exp(logits - m)
    inv = pl.reciprocal(jnp.sum(e, axis=-1, keepdims=True), approx=True)
    out_ref[...] = (e * inv).astype(out_ref.dtype)


# ------------------------------ wrapper --------------------------------------


def prep_params(raw, feature_size, hidden_size, compute_dtype=jnp.float32):
    """Re-pack PyTorch-layout LSTM params for the kernel.

    - transpose to (in, 4H) / (H, 4H)
    - reorder gates [i, f, g, o] -> [i, f, o, g]
    - pad inputs/hidden/output dims to lane multiples (zeros; padded logit
      lanes of the head get -1e30 bias so softmax ignores them)
    compute_dtype=bfloat16 is valid on ALL generations (v5e MXU takes bf16
    operands natively; accumulation stays f32).
    """
    H = hidden_size
    Hp = _round_up(H, LANE)
    Fp = _round_up(feature_size, LANE)
    out_p = _round_up(OUT_DIM, LANE)

    def gate_blocks(w):                     # (4H, in), rows [i, f, g, o]
        return w[0:H], w[H:2 * H], w[2 * H:3 * H], w[3 * H:4 * H]

    order = (0, 1, 3, 2)                    # -> [i, f, o, g]
    lstm = []
    for l, p in enumerate(raw["lstm"]):
        in_dim = feature_size if l == 0 else H
        in_pad = Fp if l == 0 else Hp
        wi = gate_blocks(p["w_ih"])
        wh = gate_blocks(p["w_hh"])
        bsum = p["b_ih"] + p["b_hh"]
        bb = (bsum[0:H], bsum[H:2 * H], bsum[2 * H:3 * H], bsum[3 * H:4 * H])
        w_ih = jnp.concatenate(
            [jnp.pad(wi[k].T, ((0, in_pad - in_dim), (0, Hp - H)))
             for k in order], axis=1)
        w_hh = jnp.concatenate(
            [jnp.pad(wh[k].T, ((0, Hp - H), (0, Hp - H)))
             for k in order], axis=1)
        b = jnp.concatenate(
            [jnp.pad(bb[k], (0, Hp - H)) for k in order]).reshape(1, -1)
        lstm.append({"w_ih": w_ih.astype(compute_dtype),
                     "w_hh": w_hh.astype(compute_dtype),
                     "b": b.astype(jnp.float32)})

    head_w = jnp.pad(raw["linear"]["w"].T,
                     ((0, Hp - H), (0, out_p - OUT_DIM))).astype(jnp.float32)
    head_b = jnp.pad(raw["linear"]["b"], (0, out_p - OUT_DIM),
                     constant_values=NEG_INF).reshape(1, -1).astype(jnp.float32)
    return {"lstm": lstm, "head_w": head_w, "head_b": head_b,
            "dims": (Fp, Hp, out_p)}


def _pick_batch_block(B, itemsize):
    """Large MXU-friendly batch blocks; >=2 grid blocks when batch allows
    (v7x megacore), falling back to a single minimal block for tiny B."""
    row_tile = SUBLANE if itemsize == 4 else 2 * SUBLANE   # bf16 packs 16 rows
    Bp = _round_up(max(B, row_tile), row_tile)
    if Bp < 2 * row_tile:
        batch_blk = Bp                                     # too small to split
    else:
        n_blocks = max(2, _cdiv(Bp, MAX_BATCH_BLK))
        batch_blk = _round_up(_cdiv(Bp, n_blocks), row_tile)
        Bp = _round_up(Bp, batch_blk)
    return Bp, batch_blk


def lstm_model_forward(x, prepped, h0, c0, compute_dtype=jnp.float32,
                       gate_dtype=None):
    """Equivalent of LSTMModel.forward (policy branch).

    x:  (B, T, F) batch_first observation
    h0, c0: (num_layers, B, H) initial states
    gate_dtype: None/f32 (all gens) or bf16 (v6e/v7x packed EUP transcendentals)
    returns softmax action distribution (B, 3)
    """
    B, T, F = x.shape
    L = len(prepped["lstm"])
    Fp, Hp, out_p = prepped["dims"]
    H = h0.shape[-1]
    if gate_dtype is None:
        gate_dtype = jnp.float32
    scratch_dtype = compute_dtype            # bf16 path halves gx/hseq scratch
    itemsize = jnp.dtype(compute_dtype).itemsize

    Bp, batch_blk = _pick_batch_block(B, itemsize)

    # time-major + zero padding of batch / feature / hidden to vreg tiles.
    # Padded batch rows & hidden lanes stay independent and are sliced off, so
    # they never affect the real outputs.
    x_seq = jnp.transpose(x, (1, 0, 2))                          # (T, B, F)
    x_seq = jnp.pad(x_seq, ((0, 0), (0, Bp - B), (0, Fp - F)))
    x_seq = x_seq.astype(compute_dtype)
    h0p = jnp.pad(h0, ((0, 0), (0, Bp - B), (0, Hp - H))).astype(jnp.float32)
    c0p = jnp.pad(c0, ((0, 0), (0, Bp - B), (0, Hp - H))).astype(jnp.float32)

    weights = ([p["w_ih"] for p in prepped["lstm"]]
               + [p["w_hh"] for p in prepped["lstm"]]
               + [p["b"] for p in prepped["lstm"]]
               + [prepped["head_w"], prepped["head_b"]])

    kern = functools.partial(fused_lstm_policy_kernel,
                             num_layers=L, hidden_size=Hp, seq_len=T,
                             batch_blk=batch_blk, compute_dtype=compute_dtype,
                             gate_dtype=gate_dtype)

    def full_spec(w):
        return pl.BlockSpec(w.shape, lambda bb, _n=w.ndim: (0,) * _n)

    in_specs = ([pl.BlockSpec((T, batch_blk, Fp), lambda bb: (0, bb, 0)),
                 pl.BlockSpec((L, batch_blk, Hp), lambda bb: (0, bb, 0)),
                 pl.BlockSpec((L, batch_blk, Hp), lambda bb: (0, bb, 0))]
                + [full_spec(w) for w in weights])
    out_specs = pl.BlockSpec((batch_blk, out_p), lambda bb: (bb, 0))

    scratch_shapes = [pltpu.VMEM((T, batch_blk, 4 * Hp), scratch_dtype)]  # gx
    if L > 1:
        scratch_shapes.append(
            pltpu.VMEM((T, batch_blk, Hp), scratch_dtype))   # inter-layer hseq
    scratch_shapes += [pltpu.VMEM((batch_blk, Hp), jnp.float32),          # h
                       pltpu.VMEM((batch_blk, Hp), jnp.float32)]          # c

    # Explicit scoped-VMEM budget: x2 for BlockSpec double buffering + scratch
    # + margin, capped at 85% of the queried physical VMEM (64 MiB/TC on v7x).
    s_item = jnp.dtype(scratch_dtype).itemsize
    block_bytes = (T * batch_blk * Fp * itemsize
                   + 2 * L * batch_blk * Hp * 4
                   + batch_blk * out_p * 4)
    weight_bytes = sum(int(w.size) * w.dtype.itemsize for w in weights)
    scratch_bytes = (T * batch_blk * 4 * Hp * s_item
                     + (T * batch_blk * Hp * s_item if L > 1 else 0)
                     + 2 * batch_blk * Hp * 4)
    needed = 2 * (block_bytes + weight_bytes) + scratch_bytes + (4 << 20)
    vmem_limit = int(min(max(needed, 16 << 20), _vmem_cap_bytes()))

    out = pl.pallas_call(
        kern,
        out_shape=jax.ShapeDtypeStruct((Bp, out_p), jnp.float32),
        grid=(Bp // batch_blk,),          # batch blocks: "parallel" -> v7x 2xTC
        in_specs=in_specs,
        out_specs=out_specs,
        scratch_shapes=scratch_shapes,
        compiler_params=pltpu.CompilerParams(
            dimension_semantics=("parallel",),
            vmem_limit_bytes=vmem_limit),
    )(x_seq, h0p, c0p, *weights)

    return out[:B, :OUT_DIM]


# --------------------------- parameter init ----------------------------------


def init_params(key, feature_size, hidden_size, num_layers):
    """PyTorch-style init U(-1/sqrt(H), 1/sqrt(H)), raw nn.LSTM layout."""
    k = 1.0 / float(hidden_size) ** 0.5
    params = {"lstm": []}
    for l in range(num_layers):
        in_size = feature_size if l == 0 else hidden_size
        key, k1, k2, k3, k4 = jax.random.split(key, 5)
        params["lstm"].append({
            "w_ih": jax.random.uniform(k1, (4 * hidden_size, in_size),
                                       jnp.float32, -k, k),
            "w_hh": jax.random.uniform(k2, (4 * hidden_size, hidden_size),
                                       jnp.float32, -k, k),
            "b_ih": jax.random.uniform(k3, (4 * hidden_size,), jnp.float32, -k, k),
            "b_hh": jax.random.uniform(k4, (4 * hidden_size,), jnp.float32, -k, k),
        })
    key, k1, k2 = jax.random.split(key, 3)
    params["linear"] = {
        "w": jax.random.uniform(k1, (OUT_DIM, hidden_size), jnp.float32, -k, k),
        "b": jax.random.uniform(k2, (OUT_DIM,), jnp.float32, -k, k),
    }
    return params, key


# --------------------------- pure-JAX reference -------------------------------


def ref_forward(x, raw, h0, c0):
    x_seq = jnp.transpose(x, (1, 0, 2))
    H = h0.shape[-1]
    for l, p in enumerate(raw["lstm"]):
        w_ih = p["w_ih"].T
        w_hh = p["w_hh"].T
        b = (p["b_ih"] + p["b_hh"]).reshape(1, -1)

        def step(carry, x_t, w_ih=w_ih, w_hh=w_hh, b=b):
            h, c = carry
            gates = x_t @ w_ih + h @ w_hh + b
            i = jax.nn.sigmoid(gates[:, :H])
            f = jax.nn.sigmoid(gates[:, H:2 * H])
            g = jnp.tanh(gates[:, 2 * H:3 * H])
            o = jax.nn.sigmoid(gates[:, 3 * H:])
            c = f * c + i * g
            h = o * jnp.tanh(c)
            return (h, c), h

        (_, _), hs = lax.scan(step, (h0[l], c0[l]), x_seq)
        x_seq = hs
    h_last = jnp.tanh(x_seq[-1])
    logits = h_last @ raw["linear"]["w"].T + raw["linear"]["b"]
    return jax.nn.softmax(logits, axis=1)


# --------------------------------- main ---------------------------------------


if __name__ == "__main__":
    B, T, F, H, L = 2, 8, 4, 32, 2

    key = jax.random.PRNGKey(0)
    raw, key = init_params(key, F, H, L)

    key, kx, kh, kc = jax.random.split(key, 4)
    x = jax.random.normal(kx, (B, T, F), jnp.float32)
    # LSTMModel._init_hidden_states uses torch.rand; here: deterministic U[0,1)
    h0 = jax.random.uniform(kh, (L, B, H), jnp.float32)
    c0 = jax.random.uniform(kc, (L, B, H), jnp.float32)

    ref = jax.block_until_ready(ref_forward(x, raw, h0, c0))

    # f32 matmul-operand path (exact vs reference; safe on every generation)
    prepped = prep_params(raw, F, H, compute_dtype=jnp.float32)
    out = jax.block_until_ready(lstm_model_forward(x, prepped, h0, c0))
    assert out.shape == (B, OUT_DIM)
    assert jnp.allclose(out, ref, rtol=2e-3, atol=2e-3), (out, ref)
    assert jnp.allclose(jnp.sum(out, axis=1), jnp.ones((B,)), atol=2e-3)

    # bf16 matmul-operand + bf16 scratch + bf16 EUP gate-math path
    # (v6e/v7x optimization; on v5e use gate_dtype=None with bf16 weights)
    prepped_bf16 = prep_params(raw, F, H, compute_dtype=jnp.bfloat16)
    out_bf16 = jax.block_until_ready(
        lstm_model_forward(x, prepped_bf16, h0, c0,
                           compute_dtype=jnp.bfloat16, gate_dtype=jnp.bfloat16))
    assert out_bf16.shape == (B, OUT_DIM)
    assert jnp.allclose(out_bf16, ref, atol=7.5e-2)

    print("KERNEL_OK")
</pallas_src>

<mosaic_0001>
module attributes {stable_mosaic.version = 11 : i64} {
  func.func @fused_lstm_policy_kernel(%arg0: i32, %arg1: memref<8x8x128xf32, #tpu.memory_space<vmem>>, %arg2: memref<2x8x128xf32, #tpu.memory_space<vmem>>, %arg3: memref<2x8x128xf32, #tpu.memory_space<vmem>>, %arg4: memref<128x512xf32, #tpu.memory_space<vmem>>, %arg5: memref<128x512xf32, #tpu.memory_space<vmem>>, %arg6: memref<128x512xf32, #tpu.memory_space<vmem>>, %arg7: memref<128x512xf32, #tpu.memory_space<vmem>>, %arg8: memref<1x512xf32, #tpu.memory_space<vmem>>, %arg9: memref<1x512xf32, #tpu.memory_space<vmem>>, %arg10: memref<128x128xf32, #tpu.memory_space<vmem>>, %arg11: memref<1x128xf32, #tpu.memory_space<vmem>>, %arg12: memref<8x128xf32, #tpu.memory_space<vmem>>, %arg13: memref<8x8x512xf32, #tpu.memory_space<vmem>>, %arg14: memref<8x8x128xf32, #tpu.memory_space<vmem>>, %arg15: memref<8x128xf32, #tpu.memory_space<vmem>>, %arg16: memref<8x128xf32, #tpu.memory_space<vmem>>) attributes {dimension_semantics = [#tpu.dimension_semantics<parallel>], iteration_bounds = array<i64: 1>, scalar_prefetch = 0 : i64, scratch_operands = 4 : i64, tpu.core_type = #tpu.core_type<tc>, window_params = [{transform_indices = @transform_0, window_bounds = array<i64: 8, 8, 128>}, {transform_indices = @transform_1, window_bounds = array<i64: 2, 8, 128>}, {transform_indices = @transform_2, window_bounds = array<i64: 2, 8, 128>}, {pipeline_mode = #tpu.pipeline_mode<synchronous>, transform_indices = @transform_3, window_bounds = array<i64: 128, 512>}, {pipeline_mode = #tpu.pipeline_mode<synchronous>, transform_indices = @transform_4, window_bounds = array<i64: 128, 512>}, {pipeline_mode = #tpu.pipeline_mode<synchronous>, transform_indices = @transform_5, window_bounds = array<i64: 128, 512>}, {pipeline_mode = #tpu.pipeline_mode<synchronous>, transform_indices = @transform_6, window_bounds = array<i64: 128, 512>}, {pipeline_mode = #tpu.pipeline_mode<synchronous>, transform_indices = @transform_7, window_bounds = array<i64: 1, 512>}, {pipeline_mode = #tpu.pipeline_mode<synchronous>, transform_indices = @transform_8, window_bounds = array<i64: 1, 512>}, {pipeline_mode = #tpu.pipeline_mode<synchronous>, transform_indices = @transform_9, window_bounds = array<i64: 128, 128>}, {pipeline_mode = #tpu.pipeline_mode<synchronous>, transform_indices = @transform_10, window_bounds = array<i64: 1, 128>}, {transform_indices = @transform_11, window_bounds = array<i64: 8, 128>}]} {
    %c0 = arith.constant 0 : index
    %c0_0 = arith.constant 0 : index
    %0 = vector.load %arg4[%c0, %c0_0] : memref<128x512xf32, #tpu.memory_space<vmem>>, vector<128x512xf32>
    %c0_1 = arith.constant 0 : index
    %c0_2 = arith.constant 0 : index
    %1 = vector.load %arg8[%c0_1, %c0_2] : memref<1x512xf32, #tpu.memory_space<vmem>>, vector<1x512xf32>
    %c0_3 = arith.constant 0 : index
    %c0_4 = arith.constant 0 : index
    %c0_5 = arith.constant 0 : index
    %2 = vector.load %arg1[%c0_3, %c0_4, %c0_5] : memref<8x8x128xf32, #tpu.memory_space<vmem>>, vector<8x8x128xf32>
    %3 = vector.shape_cast %2 : vector<8x8x128xf32> to vector<64x128xf32>
    %cst = arith.constant dense<0.000000e+00> : vector<64x512xf32>
    %4 = tpu.matmul %3, %0, %cst {dimension_numbers = #tpu.dot_dimension_numbers<[1], [0], [0], [1], [0, 0, 1, 1], [], []>} : vector<64x128xf32>, vector<128x512xf32>, vector<64x512xf32> -> vector<64x512xf32>
    %5 = vector.broadcast %1 : vector<1x512xf32> to vector<64x512xf32>
    %6 = arith.addf %4, %5 : vector<64x512xf32>
    %7 = vector.shape_cast %6 : vector<64x512xf32> to vector<8x8x512xf32>
    %c0_6 = arith.constant 0 : index
    %c0_7 = arith.constant 0 : index
    %c0_8 = arith.constant 0 : index
    %8 = vector.load %arg13[%c0_6, %c0_7, %c0_8] : memref<8x8x512xf32, #tpu.memory_space<vmem>>, vector<8x8x512xf32>
    tpu.vector_store %arg13[%c0_6, %c0_7, %c0_8], %7 {strides = array<i32>} : memref<8x8x512xf32, #tpu.memory_space<vmem>>, vector<8x8x512xf32>,
    %c0_9 = arith.constant 0 : index
    %c0_10 = arith.constant 0 : index
    %c0_11 = arith.constant 0 : index
    %9 = vector.load %arg2[%c0_9, %c0_10, %c0_11] : memref<2x8x128xf32, #tpu.memory_space<vmem>>, vector<1x8x128xf32>
    %10 = vector.shape_cast %9 : vector<1x8x128xf32> to vector<8x128xf32>
    %c0_12 = arith.constant 0 : index
    %c0_13 = arith.constant 0 : index
    %11 = vector.load %arg15[%c0_12, %c0_13] : memref<8x128xf32, #tpu.memory_space<vmem>>, vector<8x128xf32>
    tpu.vector_store %arg15[%c0_12, %c0_13], %10 {strides = array<i32>} : memref<8x128xf32, #tpu.memory_space<vmem>>, vector<8x128xf32>,
    %c0_14 = arith.constant 0 : index
    %c0_15 = arith.constant 0 : index
    %c0_16 = arith.constant 0 : index
    %12 = vector.load %arg3[%c0_14, %c0_15, %c0_16] : memref<2x8x128xf32, #tpu.memory_space<vmem>>, vector<1x8x128xf32>
    %13 = vector.shape_cast %12 : vector<1x8x128xf32> to vector<8x128xf32>
    %c0_17 = arith.constant 0 : index
    %c0_18 = arith.constant 0 : index
    %14 = vector.load %arg16[%c0_17, %c0_18] : memref<8x128xf32, #tpu.memory_space<vmem>>, vector<8x128xf32>
    tpu.vector_store %arg16[%c0_17, %c0_18], %13 {strides = array<i32>} : memref<8x128xf32, #tpu.memory_space<vmem>>, vector<8x128xf32>,
    %c0_i32 = arith.constant 0 : i32
    %c0_19 = arith.constant 0 : index
    %c0_20 = arith.constant 0 : index
    %15 = vector.load %arg15[%c0_19, %c0_20] : memref<8x128xf32, #tpu.memory_space<vmem>>, vector<8x128xf32>
    %c0_21 = arith.constant 0 : index
    %c0_22 = arith.constant 0 : index
    %16 = vector.load %arg6[%c0_21, %c0_22] : memref<128x512xf32, #tpu.memory_space<vmem>>, vector<128x512xf32>
    %cst_23 = arith.constant dense<0.000000e+00> : vector<8x512xf32>
    %17 = tpu.matmul %15, %16, %cst_23 {dimension_numbers = #tpu.dot_dimension_numbers<[1], [0], [0], [1], [0, 0, 1, 1], [], []>} : vector<8x128xf32>, vector<128x512xf32>, vector<8x512xf32> -> vector<8x512xf32>
    %18 = arith.index_cast %c0_i32 : i32 to index
    %c0_24 = arith.constant 0 : index
    %c0_25 = arith.constant 0 : index
    %19 = vector.load %arg13[%18, %c0_24, %c0_25] : memref<8x8x512xf32, #tpu.memory_space<vmem>>, vector<1x8x512xf32>
    %20 = vector.shape_cast %19 : vector<1x8x512xf32> to vector<8x512xf32>
    %21 = arith.addf %20, %17 : vector<8x512xf32>
    %22 = vector.extract_strided_slice %21 {offsets = [0, 0], sizes = [8, 384], strides = [1, 1]} : vector<8x512xf32> to vector<8x384xf32>
    %23 = arith.negf %22 : vector<8x384xf32>
    %24 = math.exp %23 : vector<8x384xf32>
    %cst_26 = arith.constant 1.000000e+00 : f32
    %25 = vector.broadcast %cst_26 : f32 to vector<8x384xf32>
    %26 = arith.addf %25, %24 : vector<8x384xf32>
    %27 = arith.divf %25, %26 : vector<8x384xf32>
    %28 = vector.extract_strided_slice %27 {offsets = [0, 0], sizes = [8, 128], strides = [1, 1]} : vector<8x384xf32> to vector<8x128xf32>
    %29 = vector.extract_strided_slice %27 {offsets = [0, 128], sizes = [8, 128], strides = [1, 1]} : vector<8x384xf32> to vector<8x128xf32>
    %30 = vector.extract_strided_slice %27 {offsets = [0, 256], sizes = [8, 128], strides = [1, 1]} : vector<8x384xf32> to vector<8x128xf32>
    %31 = vector.extract_strided_slice %21 {offsets = [0, 384], sizes = [8, 128], strides = [1, 1]} : vector<8x512xf32> to vector<8x128xf32>
    %32 = math.tanh %31 : vector<8x128xf32>
    %c0_27 = arith.constant 0 : index
    %c0_28 = arith.constant 0 : index
    %33 = vector.load %arg16[%c0_27, %c0_28] : memref<8x128xf32, #tpu.memory_space<vmem>>, vector<8x128xf32>
    %34 = arith.mulf %29, %33 : vector<8x128xf32>
    %35 = arith.mulf %28, %32 : vector<8x128xf32>
    %36 = arith.addf %34, %35 : vector<8x128xf32>
    %37 = math.tanh %36 : vector<8x128xf32>
    %38 = arith.mulf %30, %37 : vector<8x128xf32>
    %c0_29 = arith.constant 0 : index
    %c0_30 = arith.constant 0 : index
    %39 = vector.load %arg16[%c0_29, %c0_30] : memref<8x128xf32, #tpu.memory_space<vmem>>, vector<8x128xf32>
    tpu.vector_store %arg16[%c0_29, %c0_30], %36 {strides = array<i32>} : memref<8x128xf32, #tpu.memory_space<vmem>>, vector<8x128xf32>,
    %c0_31 = arith.constant 0 : index
    %c0_32 = arith.constant 0 : index
    %40 = vector.load %arg15[%c0_31, %c0_32] : memref<8x128xf32, #tpu.memory_space<vmem>>, vector<8x128xf32>
    tpu.vector_store %arg15[%c0_31, %c0_32], %38 {strides = array<i32>} : memref<8x128xf32, #tpu.memory_space<vmem>>, vector<8x128xf32>,
    %41 = arith.index_cast %c0_i32 : i32 to index
    %c0_33 = arith.constant 0 : index
    %c0_34 = arith.constant 0 : index
    %42 = vector.load %arg14[%41, %c0_33, %c0_34] : memref<8x8x128xf32, #tpu.memory_space<vmem>>, vector<1x8x128xf32>
    %43 = vector.shape_cast %42 : vector<1x8x128xf32> to vector<8x128xf32>
    %44 = vector.shape_cast %38 : vector<8x128xf32> to vector<1x8x128xf32>
    tpu.vector_store %arg14[%41, %c0_33, %c0_34], %44 {strides = array<i32>} : memref<8x8x128xf32, #tpu.memory_space<vmem>>, vector<1x8x128xf32>,
    %c1_i32 = arith.constant 1 : i32
    %c0_35 = arith.constant 0 : index
    %c0_36 = arith.constant 0 : index
    %45 = vector.load %arg15[%c0_35, %c0_36] : memref<8x128xf32, #tpu.memory_space<vmem>>, vector<8x128xf32>
    %c0_37 = arith.constant 0 : index
    %c0_38 = arith.constant 0 : index
    %46 = vector.load %arg6[%c0_37, %c0_38] : memref<128x512xf32, #tpu.memory_space<vmem>>, vector<128x512xf32>
    %cst_39 = arith.constant dense<0.000000e+00> : vector<8x512xf32>
    %47 = tpu.matmul %45, %46, %cst_39 {dimension_numbers = #tpu.dot_dimension_numbers<[1], [0], [0], [1], [0, 0, 1, 1], [], []>} : vector<8x128xf32>, vector<128x512xf32>, vector<8x512xf32> -> vector<8x512xf32>
    %48 = arith.index_cast %c1_i32 : i32 to index
    %c0_40 = arith.constant 0 : index
    %c0_41 = arith.constant 0 : index
    %49 = vector.load %arg13[%48, %c0_40, %c0_41] : memref<8x8x512xf32, #tpu.memory_space<vmem>>, vector<1x8x512xf32>
    %50 = vector.shape_cast %49 : vector<1x8x512xf32> to vector<8x512xf32>
    %51 = arith.addf %50, %47 : vector<8x512xf32>
    %52 = vector.extract_strided_slice %51 {offsets = [0, 0], sizes = [8, 384], strides = [1, 1]} : vector<8x512xf32> to vector<8x384xf32>
    %53 = arith.negf %52 : vector<8x384xf32>
    %54 = math.exp %53 : vector<8x384xf32>
    %cst_42 = arith.constant 1.000000e+00 : f32
    %55 = vector.broadcast %cst_42 : f32 to vector<8x384xf32>
    %56 = arith.addf %55, %54 : vector<8x384xf32>
    %57 = arith.divf %55, %56 : vector<8x384xf32>
    %58 = vector.extract_strided_slice %57 {offsets = [0, 0], sizes = [8, 128], strides = [1, 1]} : vector<8x384xf32> to vector<8x128xf32>
    %59 = vector.extract_strided_slice %57 {offsets = [0, 128], sizes = [8, 128], strides = [1, 1]} : vector<8x384xf32> to vector<8x128xf32>
    %60 = vector.extract_strided_slice %57 {offsets = [0, 256], sizes = [8, 128], strides = [1, 1]} : vector<8x384xf32> to vector<8x128xf32>
    %61 = vector.extract_strided_slice %51 {offsets = [0, 384], sizes = [8, 128], strides = [1, 1]} : vector<8x512xf32> to vector<8x128xf32>
    %62 = math.tanh %61 : vector<8x128xf32>
    %c0_43 = arith.constant 0 : index
    %c0_44 = arith.constant 0 : index
    %63 = vector.load %arg16[%c0_43, %c0_44] : memref<8x128xf32, #tpu.memory_space<vmem>>, vector<8x128xf32>
    %64 = arith.mulf %59, %63 : vector<8x128xf32>
    %65 = arith.mulf %58, %62 : vector<8x128xf32>
    %66 = arith.addf %64, %65 : vector<8x128xf32>
    %67 = math.tanh %66 : vector<8x128xf32>
    %68 = arith.mulf %60, %67 : vector<8x128xf32>
    %c0_45 = arith.constant 0 : index
    %c0_46 = arith.constant 0 : index
    %69 = vector.load %arg16[%c0_45, %c0_46] : memref<8x128xf32, #tpu.memory_space<vmem>>, vector<8x128xf32>
    tpu.vector_store %arg16[%c0_45, %c0_46], %66 {strides = array<i32>} : memref<8x128xf32, #tpu.memory_space<vmem>>, vector<8x128xf32>,
    %c0_47 = arith.constant 0 : index
    %c0_48 = arith.constant 0 : index
    %70 = vector.load %arg15[%c0_47, %c0_48] : memref<8x128xf32, #tpu.memory_space<vmem>>, vector<8x128xf32>
    tpu.vector_store %arg15[%c0_47, %c0_48], %68 {strides = array<i32>} : memref<8x128xf32, #tpu.memory_space<vmem>>, vector<8x128xf32>,
    %71 = arith.index_cast %c1_i32 : i32 to index
    %c0_49 = arith.constant 0 : index
    %c0_50 = arith.constant 0 : index
    %72 = vector.load %arg14[%71, %c0_49, %c0_50] : memref<8x8x128xf32, #tpu.memory_space<vmem>>, vector<1x8x128xf32>
    %73 = vector.shape_cast %72 : vector<1x8x128xf32> to vector<8x128xf32>
    %74 = vector.shape_cast %68 : vector<8x128xf32> to vector<1x8x128xf32>
    tpu.vector_store %arg14[%71, %c0_49, %c0_50], %74 {strides = array<i32>} : memref<8x8x128xf32, #tpu.memory_space<vmem>>, vector<1x8x128xf32>,
    %c2_i32 = arith.constant 2 : i32
    %c0_51 = arith.constant 0 : index
    %c0_52 = arith.constant 0 : index
    %75 = vector.load %arg15[%c0_51, %c0_52] : memref<8x128xf32, #tpu.memory_space<vmem>>, vector<8x128xf32>
    %c0_53 = arith.constant 0 : index
    %c0_54 = arith.constant 0 : index
    %76 = vector.load %arg6[%c0_53, %c0_54] : memref<128x512xf32, #tpu.memory_space<vmem>>, vector<128x512xf32>
    %cst_55 = arith.constant dense<0.000000e+00> : vector<8x512xf32>
    %77 = tpu.matmul %75, %76, %cst_55 {dimension_numbers = #tpu.dot_dimension_numbers<[1], [0], [0], [1], [0, 0, 1, 1], [], []>} : vector<8x128xf32>, vector<128x512xf32>, vector<8x512xf32> -> vector<8x512xf32>
    %78 = arith.index_cast %c2_i32 : i32 to index
    %c0_56 = arith.constant 0 : index
    %c0_57 = arith.constant 0 : index
    %79 = vector.load %arg13[%78, %c0_56, %c0_57] : memref<8x8x512xf32, #tpu.memory_space<vmem>>, vector<1x8x512xf32>
    %80 = vector.shape_cast %79 : vector<1x8x512xf32> to vector<8x512xf32>
    %81 = arith.addf %80, %77 : vector<8x512xf32>
    %82 = vector.extract_strided_slice %81 {offsets = [0, 0], sizes = [8, 384], strides = [1, 1]} : vector<8x512xf32> to vector<8x384xf32>
    %83 = arith.negf %82 : vector<8x384xf32>
    %84 = math.exp %83 : vector<8x384xf32>
    %cst_58 = arith.constant 1.000000e+00 : f32
    %85 = vector.broadcast %cst_58 : f32 to vector<8x384xf32>
    %86 = arith.addf %85, %84 : vector<8x384xf32>
    %87 = arith.divf %85, %86 : vector<8x384xf32>
    %88 = vector.extract_strided_slice %87 {offsets = [0, 0], sizes = [8, 128], strides = [1, 1]} : vector<8x384xf32> to vector<8x128xf32>
    %89 = vector.extract_strided_slice %87 {offsets = [0, 128], sizes = [8, 128], strides = [1, 1]} : vector<8x384xf32> to vector<8x128xf32>
    %90 = vector.extract_strided_slice %87 {offsets = [0, 256], sizes = [8, 128], strides = [1, 1]} : vector<8x384xf32> to vector<8x128xf32>
    %91 = vector.extract_strided_slice %81 {offsets = [0, 384], sizes = [8, 128], strides = [1, 1]} : vector<8x512xf32> to vector<8x128xf32>
    %92 = math.tanh %91 : vector<8x128xf32>
    %c0_59 = arith.constant 0 : index
    %c0_60 = arith.constant 0 : index
    %93 = vector.load %arg16[%c0_59, %c0_60] : memref<8x128xf32, #tpu.memory_space<vmem>>, vector<8x128xf32>
    %94 = arith.mulf %89, %93 : vector<8x128xf32>
    %95 = arith.mulf %88, %92 : vector<8x128xf32>
    %96 = arith.addf %94, %95 : vector<8x128xf32>
    %97 = math.tanh %96 : vector<8x128xf32>
    %98 = arith.mulf %90, %97 : vector<8x128xf32>
    %c0_61 = arith.constant 0 : index
    %c0_62 = arith.constant 0 : index
    %99 = vector.load %arg16[%c0_61, %c0_62] : memref<8x128xf32, #tpu.memory_space<vmem>>, vector<8x128xf32>
    tpu.vector_store %arg16[%c0_61, %c0_62], %96 {strides = array<i32>} : memref<8x128xf32, #tpu.memory_space<vmem>>, vector<8x128xf32>,
    %c0_63 = arith.constant 0 : index
    %c0_64 = arith.constant 0 : index
    %100 = vector.load %arg15[%c0_63, %c0_64] : memref<8x128xf32, #tpu.memory_space<vmem>>, vector<8x128xf32>
    tpu.vector_store %arg15[%c0_63, %c0_64], %98 {strides = array<i32>} : memref<8x128xf32, #tpu.memory_space<vmem>>, vector<8x128xf32>,
    %101 = arith.index_cast %c2_i32 : i32 to index
    %c0_65 = arith.constant 0 : index
    %c0_66 = arith.constant 0 : index
    %102 = vector.load %arg14[%101, %c0_65, %c0_66] : memref<8x8x128xf32, #tpu.memory_space<vmem>>, vector<1x8x128xf32>
    %103 = vector.shape_cast %102 : vector<1x8x128xf32> to vector<8x128xf32>
    %104 = vector.shape_cast %98 : vector<8x128xf32> to vector<1x8x128xf32>
    tpu.vector_store %arg14[%101, %c0_65, %c0_66], %104 {strides = array<i32>} : memref<8x8x128xf32, #tpu.memory_space<vmem>>, vector<1x8x128xf32>,
    %c3_i32 = arith.constant 3 : i32
    %c0_67 = arith.constant 0 : index
    %c0_68 = arith.constant 0 : index
    %105 = vector.load %arg15[%c0_67, %c0_68] : memref<8x128xf32, #tpu.memory_space<vmem>>, vector<8x128xf32>
    %c0_69 = arith.constant 0 : index
    %c0_70 = arith.constant 0 : index
    %106 = vector.load %arg6[%c0_69, %c0_70] : memref<128x512xf32, #tpu.memory_space<vmem>>, vector<128x512xf32>
    %cst_71 = arith.constant dense<0.000000e+00> : vector<8x512xf32>
    %107 = tpu.matmul %105, %106, %cst_71 {dimension_numbers = #tpu.dot_dimension_numbers<[1], [0], [0], [1], [0, 0, 1, 1], [], []>} : vector<8x128xf32>, vector<128x512xf32>, vector<8x512xf32> -> vector<8x512xf32>
    %108 = arith.index_cast %c3_i32 : i32 to index
    %c0_72 = arith.constant 0 : index
    %c0_73 = arith.constant 0 : index
    %109 = vector.load %arg13[%108, %c0_72, %c0_73] : memref<8x8x512xf32, #tpu.memory_space<vmem>>, vector<1x8x512xf32>
    %110 = vector.shape_cast %109 : vector<1x8x512xf32> to vector<8x512xf32>
    %111 = arith.addf %110, %107 : vector<8x512xf32>
    %112 = vector.extract_strided_slice %111 {offsets = [0, 0], sizes = [8, 384], strides = [1, 1]} : vector<8x512xf32> to vector<8x384xf32>
    %113 = arith.negf %112 : vector<8x384xf32>
    %114 = math.exp %113 : vector<8x384xf32>
    %cst_74 = arith.constant 1.000000e+00 : f32
    %115 = vector.broadcast %cst_74 : f32 to vector<8x384xf32>
    %116 = arith.addf %115, %114 : vector<8x384xf32>
    %117 = arith.divf %115, %116 : vector<8x384xf32>
    %118 = vector.extract_strided_slice %117 {offsets = [0, 0], sizes = [8, 128], strides = [1, 1]} : vector<8x384xf32> to vector<8x128xf32>
    %119 = vector.extract_strided_slice %117 {offsets = [0, 128], sizes = [8, 128], strides = [1, 1]} : vector<8x384xf32> to vector<8x128xf32>
    %120 = vector.extract_strided_slice %117 {offsets = [0, 256], sizes = [8, 128], strides = [1, 1]} : vector<8x384xf32> to vector<8x128xf32>
    %121 = vector.extract_strided_slice %111 {offsets = [0, 384], sizes = [8, 128], strides = [1, 1]} : vector<8x512xf32> to vector<8x128xf32>
    %122 = math.tanh %121 : vector<8x128xf32>
    %c0_75 = arith.constant 0 : index
    %c0_76 = arith.constant 0 : index
    %123 = vector.load %arg16[%c0_75, %c0_76] : memref<8x128xf32, #tpu.memory_space<vmem>>, vector<8x128xf32>
    %124 = arith.mulf %119, %123 : vector<8x128xf32>
    %125 = arith.mulf %118, %122 : vector<8x128xf32>
    %126 = arith.addf %124, %125 : vector<8x128xf32>
    %127 = math.tanh %126 : vector<8x128xf32>
    %128 = arith.mulf %120, %127 : vector<8x128xf32>
    %c0_77 = arith.constant 0 : index
    %c0_78 = arith.constant 0 : index
    %129 = vector.load %arg16[%c0_77, %c0_78] : memref<8x128xf32, #tpu.memory_space<vmem>>, vector<8x128xf32>
    tpu.vector_store %arg16[%c0_77, %c0_78], %126 {strides = array<i32>} : memref<8x128xf32, #tpu.memory_space<vmem>>, vector<8x128xf32>,
    %c0_79 = arith.constant 0 : index
    %c0_80 = arith.constant 0 : index
    %130 = vector.load %arg15[%c0_79, %c0_80] : memref<8x128xf32, #tpu.memory_space<vmem>>, vector<8x128xf32>
    tpu.vector_store %arg15[%c0_79, %c0_80], %128 {strides = array<i32>} : memref<8x128xf32, #tpu.memory_space<vmem>>, vector<8x128xf32>,
    %131 = arith.index_cast %c3_i32 : i32 to index
    %c0_81 = arith.constant 0 : index
    %c0_82 = arith.constant 0 : index
    %132 = vector.load %arg14[%131, %c0_81, %c0_82] : memref<8x8x128xf32, #tpu.memory_space<vmem>>, vector<1x8x128xf32>
    %133 = vector.shape_cast %132 : vector<1x8x128xf32> to vector<8x128xf32>
    %134 = vector.shape_cast %128 : vector<8x128xf32> to vector<1x8x128xf32>
    tpu.vector_store %arg14[%131, %c0_81, %c0_82], %134 {strides = array<i32>} : memref<8x8x128xf32, #tpu.memory_space<vmem>>, vector<1x8x128xf32>,
    %c4_i32 = arith.constant 4 : i32
    %c0_83 = arith.constant 0 : index
    %c0_84 = arith.constant 0 : index
    %135 = vector.load %arg15[%c0_83, %c0_84] : memref<8x128xf32, #tpu.memory_space<vmem>>, vector<8x128xf32>
    %c0_85 = arith.constant 0 : index
    %c0_86 = arith.constant 0 : index
    %136 = vector.load %arg6[%c0_85, %c0_86] : memref<128x512xf32, #tpu.memory_space<vmem>>, vector<128x512xf32>
    %cst_87 = arith.constant dense<0.000000e+00> : vector<8x512xf32>
    %137 = tpu.matmul %135, %136, %cst_87 {dimension_numbers = #tpu.dot_dimension_numbers<[1], [0], [0], [1], [0, 0, 1, 1], [], []>} : vector<8x128xf32>, vector<128x512xf32>, vector<8x512xf32> -> vector<8x512xf32>
    %138 = arith.index_cast %c4_i32 : i32 to index
    %c0_88 = arith.constant 0 : index
    %c0_89 = arith.constant 0 : index
    %139 = vector.load %arg13[%138, %c0_88, %c0_89] : memref<8x8x512xf32, #tpu.memory_space<vmem>>, vector<1x8x512xf32>
    %140 = vector.shape_cast %139 : vector<1x8x512xf32> to vector<8x512xf32>
    %141 = arith.addf %140, %137 : vector<8x512xf32>
    %142 = vector.extract_strided_slice %141 {offsets = [0, 0], sizes = [8, 384], strides = [1, 1]} : vector<8x512xf32> to vector<8x384xf32>
    %143 = arith.negf %142 : vector<8x384xf32>
    %144 = math.exp %143 : vector<8x384xf32>
    %cst_90 = arith.constant 1.000000e+00 : f32
    %145 = vector.broadcast %cst_90 : f32 to vector<8x384xf32>
    %146 = arith.addf %145, %144 : vector<8x384xf32>
    %147 = arith.divf %145, %146 : vector<8x384xf32>
    %148 = vector.extract_strided_slice %147 {offsets = [0, 0], sizes = [8, 128], strides = [1, 1]} : vector<8x384xf32> to vector<8x128xf32>
    %149 = vector.extract_strided_slice %147 {offsets = [0, 128], sizes = [8, 128], strides = [1, 1]} : vector<8x384xf32> to vector<8x128xf32>
    %150 = vector.extract_strided_slice %147 {offsets = [0, 256], sizes = [8, 128], strides = [1, 1]} : vector<8x384xf32> to vector<8x128xf32>
    %151 = vector.extract_strided_slice %141 {offsets = [0, 384], sizes = [8, 128], strides = [1, 1]} : vector<8x512xf32> to vector<8x128xf32>
    %152 = math.tanh %151 : vector<8x128xf32>
    %c0_91 = arith.constant 0 : index
    %c0_92 = arith.constant 0 : index
    %153 = vector.load %arg16[%c0_91, %c0_92] : memref<8x128xf32, #tpu.memory_space<vmem>>, vector<8x128xf32>
    %154 = arith.mulf %149, %153 : vector<8x128xf32>
    %155 = arith.mulf %148, %152 : vector<8x128xf32>
    %156 = arith.addf %154, %155 : vector<8x128xf32>
    %157 = math.tanh %156 : vector<8x128xf32>
    %158 = arith.mulf %150, %157 : vector<8x128xf32>
    %c0_93 = arith.constant 0 : index
    %c0_94 = arith.constant 0 : index
    %159 = vector.load %arg16[%c0_93, %c0_94] : memref<8x128xf32, #tpu.memory_space<vmem>>, vector<8x128xf32>
    tpu.vector_store %arg16[%c0_93, %c0_94], %156 {strides = array<i32>} : memref<8x128xf32, #tpu.memory_space<vmem>>, vector<8x128xf32>,
    %c0_95 = arith.constant 0 : index
    %c0_96 = arith.constant 0 : index
    %160 = vector.load %arg15[%c0_95, %c0_96] : memref<8x128xf32, #tpu.memory_space<vmem>>, vector<8x128xf32>
    tpu.vector_store %arg15[%c0_95, %c0_96], %158 {strides = array<i32>} : memref<8x128xf32, #tpu.memory_space<vmem>>, vector<8x128xf32>,
    %161 = arith.index_cast %c4_i32 : i32 to index
    %c0_97 = arith.constant 0 : index
    %c0_98 = arith.constant 0 : index
    %162 = vector.load %arg14[%161, %c0_97, %c0_98] : memref<8x8x128xf32, #tpu.memory_space<vmem>>, vector<1x8x128xf32>
    %163 = vector.shape_cast %162 : vector<1x8x128xf32> to vector<8x128xf32>
    %164 = vector.shape_cast %158 : vector<8x128xf32> to vector<1x8x128xf32>
    tpu.vector_store %arg14[%161, %c0_97, %c0_98], %164 {strides = array<i32>} : memref<8x8x128xf32, #tpu.memory_space<vmem>>, vector<1x8x128xf32>,
    %c5_i32 = arith.constant 5 : i32
    %c0_99 = arith.constant 0 : index
    %c0_100 = arith.constant 0 : index
    %165 = vector.load %arg15[%c0_99, %c0_100] : memref<8x128xf32, #tpu.memory_space<vmem>>, vector<8x128xf32>
    %c0_101 = arith.constant 0 : index
    %c0_102 = arith.constant 0 : index
    %166 = vector.load %arg6[%c0_101, %c0_102] : memref<128x512xf32, #tpu.memory_space<vmem>>, vector<128x512xf32>
    %cst_103 = arith.constant dense<0.000000e+00> : vector<8x512xf32>
    %167 = tpu.matmul %165, %166, %cst_103 {dimension_numbers = #tpu.dot_dimension_numbers<[1], [0], [0], [1], [0, 0, 1, 1], [], []>} : vector<8x128xf32>, vector<128x512xf32>, vector<8x512xf32> -> vector<8x512xf32>
    %168 = arith.index_cast %c5_i32 : i32 to index
    %c0_104 = arith.constant 0 : index
    %c0_105 = arith.constant 0 : index
    %169 = vector.load %arg13[%168, %c0_104, %c0_105] : memref<8x8x512xf32, #tpu.memory_space<vmem>>, vector<1x8x512xf32>
    %170 = vector.shape_cast %169 : vector<1x8x512xf32> to vector<8x512xf32>
    %171 = arith.addf %170, %167 : vector<8x512xf32>
    %172 = vector.extract_strided_slice %171 {offsets = [0, 0], sizes = [8, 384], strides = [1, 1]} : vector<8x512xf32> to vector<8x384xf32>
    %173 = arith.negf %172 : vector<8x384xf32>
    %174 = math.exp %173 : vector<8x384xf32>
    %cst_106 = arith.constant 1.000000e+00 : f32
    %175 = vector.broadcast %cst_106 : f32 to vector<8x384xf32>
    %176 = arith.addf %175, %174 : vector<8x384xf32>
    %177 = arith.divf %175, %176 : vector<8x384xf32>
    %178 = vector.extract_strided_slice %177 {offsets = [0, 0], sizes = [8, 128], strides = [1, 1]} : vector<8x384xf32> to vector<8x128xf32>
    %179 = vector.extract_strided_slice %177 {offsets = [0, 128], sizes = [8, 128], strides = [1, 1]} : vector<8x384xf32> to vector<8x128xf32>
    %180 = vector.extract_strided_slice %177 {offsets = [0, 256], sizes = [8, 128], strides = [1, 1]} : vector<8x384xf32> to vector<8x128xf32>
    %181 = vector.extract_strided_slice %171 {offsets = [0, 384], sizes = [8, 128], strides = [1, 1]} : vector<8x512xf32> to vector<8x128xf32>
    %182 = math.tanh %181 : vector<8x128xf32>
    %c0_107 = arith.constant 0 : index
    %c0_108 = arith.constant 0 : index
    %183 = vector.load %arg16[%c0_107, %c0_108] : memref<8x128xf32, #tpu.memory_space<vmem>>, vector<8x128xf32>
    %184 = arith.mulf %179, %183 : vector<8x128xf32>
    %185 = arith.mulf %178, %182 : vector<8x128xf32>
    %186 = arith.addf %184, %185 : vector<8x128xf32>
    %187 = math.tanh %186 : vector<8x128xf32>
    %188 = arith.mulf %180, %187 : vector<8x128xf32>
    %c0_109 = arith.constant 0 : index
    %c0_110 = arith.constant 0 : index
    %189 = vector.load %arg16[%c0_109, %c0_110] : memref<8x128xf32, #tpu.memory_space<vmem>>, vector<8x128xf32>
    tpu.vector_store %arg16[%c0_109, %c0_110], %186 {strides = array<i32>} : memref<8x128xf32, #tpu.memory_space<vmem>>, vector<8x128xf32>,
    %c0_111 = arith.constant 0 : index
    %c0_112 = arith.constant 0 : index
    %190 = vector.load %arg15[%c0_111, %c0_112] : memref<8x128xf32, #tpu.memory_space<vmem>>, vector<8x128xf32>
    tpu.vector_store %arg15[%c0_111, %c0_112], %188 {strides = array<i32>} : memref<8x128xf32, #tpu.memory_space<vmem>>, vector<8x128xf32>,
    %191 = arith.index_cast %c5_i32 : i32 to index
    %c0_113 = arith.constant 0 : index
    %c0_114 = arith.constant 0 : index
    %192 = vector.load %arg14[%191, %c0_113, %c0_114] : memref<8x8x128xf32, #tpu.memory_space<vmem>>, vector<1x8x128xf32>
    %193 = vector.shape_cast %192 : vector<1x8x128xf32> to vector<8x128xf32>
    %194 = vector.shape_cast %188 : vector<8x128xf32> to vector<1x8x128xf32>
    tpu.vector_store %arg14[%191, %c0_113, %c0_114], %194 {strides = array<i32>} : memref<8x8x128xf32, #tpu.memory_space<vmem>>, vector<1x8x128xf32>,
    %c6_i32 = arith.constant 6 : i32
    %c0_115 = arith.constant 0 : index
    %c0_116 = arith.constant 0 : index
    %195 = vector.load %arg15[%c0_115, %c0_116] : memref<8x128xf32, #tpu.memory_space<vmem>>, vector<8x128xf32>
    %c0_117 = arith.constant 0 : index
    %c0_118 = arith.constant 0 : index
    %196 = vector.load %arg6[%c0_117, %c0_118] : memref<128x512xf32, #tpu.memory_space<vmem>>, vector<128x512xf32>
    %cst_119 = arith.constant dense<0.000000e+00> : vector<8x512xf32>
    %197 = tpu.matmul %195, %196, %cst_119 {dimension_numbers = #tpu.dot_dimension_numbers<[1], [0], [0], [1], [0, 0, 1, 1], [], []>} : vector<8x128xf32>, vector<128x512xf32>, vector<8x512xf32> -> vector<8x512xf32>
    %198 = arith.index_cast %c6_i32 : i32 to index
    %c0_120 = arith.constant 0 : index
    %c0_121 = arith.constant 0 : index
    %199 = vector.load %arg13[%198, %c0_120, %c0_121] : memref<8x8x512xf32, #tpu.memory_space<vmem>>, vector<1x8x512xf32>
    %200 = vector.shape_cast %199 : vector<1x8x512xf32> to vector<8x512xf32>
    %201 = arith.addf %200, %197 : vector<8x512xf32>
    %202 = vector.extract_strided_slice %201 {offsets = [0, 0], sizes = [8, 384], strides = [1, 1]} : vector<8x512xf32> to vector<8x384xf32>
    %203 = arith.negf %202 : vector<8x384xf32>
    %204 = math.exp %203 : vector<8x384xf32>
    %cst_122 = arith.constant 1.000000e+00 : f32
    %205 = vector.broadcast %cst_122 : f32 to vector<8x384xf32>
    %206 = arith.addf %205, %204 : vector<8x384xf32>
    %207 = arith.divf %205, %206 : vector<8x384xf32>
    %208 = vector.extract_strided_slice %207 {offsets = [0, 0], sizes = [8, 128], strides = [1, 1]} : vector<8x384xf32> to vector<8x128xf32>
    %209 = vector.extract_strided_slice %207 {offsets = [0, 128], sizes = [8, 128], strides = [1, 1]} : vector<8x384xf32> to vector<8x128xf32>
    %210 = vector.extract_strided_slice %207 {offsets = [0, 256], sizes = [8, 128], strides = [1, 1]} : vector<8x384xf32> to vector<8x128xf32>
    %211 = vector.extract_strided_slice %201 {offsets = [0, 384], sizes = [8, 128], strides = [1, 1]} : vector<8x512xf32> to vector<8x128xf32>
    %212 = math.tanh %211 : vector<8x128xf32>
    %c0_123 = arith.constant 0 : index
    %c0_124 = arith.constant 0 : index
    %213 = vector.load %arg16[%c0_123, %c0_124] : memref<8x128xf32, #tpu.memory_space<vmem>>, vector<8x128xf32>
    %214 = arith.mulf %209, %213 : vector<8x128xf32>
    %215 = arith.mulf %208, %212 : vector<8x128xf32>
    %216 = arith.addf %214, %215 : vector<8x128xf32>
    %217 = math.tanh %216 : vector<8x128xf32>
    %218 = arith.mulf %210, %217 : vector<8x128xf32>
    %c0_125 = arith.constant 0 : index
    %c0_126 = arith.constant 0 : index
    %219 = vector.load %arg16[%c0_125, %c0_126] : memref<8x128xf32, #tpu.memory_space<vmem>>, vector<8x128xf32>
    tpu.vector_store %arg16[%c0_125, %c0_126], %216 {strides = array<i32>} : memref<8x128xf32, #tpu.memory_space<vmem>>, vector<8x128xf32>,
    %c0_127 = arith.constant 0 : index
    %c0_128 = arith.constant 0 : index
    %220 = vector.load %arg15[%c0_127, %c0_128] : memref<8x128xf32, #tpu.memory_space<vmem>>, vector<8x128xf32>
    tpu.vector_store %arg15[%c0_127, %c0_128], %218 {strides = array<i32>} : memref<8x128xf32, #tpu.memory_space<vmem>>, vector<8x128xf32>,
    %221 = arith.index_cast %c6_i32 : i32 to index
    %c0_129 = arith.constant 0 : index
    %c0_130 = arith.constant 0 : index
    %222 = vector.load %arg14[%221, %c0_129, %c0_130] : memref<8x8x128xf32, #tpu.memory_space<vmem>>, vector<1x8x128xf32>
    %223 = vector.shape_cast %222 : vector<1x8x128xf32> to vector<8x128xf32>
    %224 = vector.shape_cast %218 : vector<8x128xf32> to vector<1x8x128xf32>
    tpu.vector_store %arg14[%221, %c0_129, %c0_130], %224 {strides = array<i32>} : memref<8x8x128xf32, #tpu.memory_space<vmem>>, vector<1x8x128xf32>,
    %c7_i32 = arith.constant 7 : i32
    %c0_131 = arith.constant 0 : index
    %c0_132 = arith.constant 0 : index
    %225 = vector.load %arg15[%c0_131, %c0_132] : memref<8x128xf32, #tpu.memory_space<vmem>>, vector<8x128xf32>
    %c0_133 = arith.constant 0 : index
    %c0_134 = arith.constant 0 : index
    %226 = vector.load %arg6[%c0_133, %c0_134] : memref<128x512xf32, #tpu.memory_space<vmem>>, vector<128x512xf32>
    %cst_135 = arith.constant dense<0.000000e+00> : vector<8x512xf32>
    %227 = tpu.matmul %225, %226, %cst_135 {dimension_numbers = #tpu.dot_dimension_numbers<[1], [0], [0], [1], [0, 0, 1, 1], [], []>} : vector<8x128xf32>, vector<128x512xf32>, vector<8x512xf32> -> vector<8x512xf32>
    %228 = arith.index_cast %c7_i32 : i32 to index
    %c0_136 = arith.constant 0 : index
    %c0_137 = arith.constant 0 : index
    %229 = vector.load %arg13[%228, %c0_136, %c0_137] : memref<8x8x512xf32, #tpu.memory_space<vmem>>, vector<1x8x512xf32>
    %230 = vector.shape_cast %229 : vector<1x8x512xf32> to vector<8x512xf32>
    %231 = arith.addf %230, %227 : vector<8x512xf32>
    %232 = vector.extract_strided_slice %231 {offsets = [0, 0], sizes = [8, 384], strides = [1, 1]} : vector<8x512xf32> to vector<8x384xf32>
    %233 = arith.negf %232 : vector<8x384xf32>
    %234 = math.exp %233 : vector<8x384xf32>
    %cst_138 = arith.constant 1.000000e+00 : f32
    %235 = vector.broadcast %cst_138 : f32 to vector<8x384xf32>
    %236 = arith.addf %235, %234 : vector<8x384xf32>
    %237 = arith.divf %235, %236 : vector<8x384xf32>
    %238 = vector.extract_strided_slice %237 {offsets = [0, 0], sizes = [8, 128], strides = [1, 1]} : vector<8x384xf32> to vector<8x128xf32>
    %239 = vector.extract_strided_slice %237 {offsets = [0, 128], sizes = [8, 128], strides = [1, 1]} : vector<8x384xf32> to vector<8x128xf32>
    %240 = vector.extract_strided_slice %237 {offsets = [0, 256], sizes = [8, 128], strides = [1, 1]} : vector<8x384xf32> to vector<8x128xf32>
    %241 = vector.extract_strided_slice %231 {offsets = [0, 384], sizes = [8, 128], strides = [1, 1]} : vector<8x512xf32> to vector<8x128xf32>
    %242 = math.tanh %241 : vector<8x128xf32>
    %c0_139 = arith.constant 0 : index
    %c0_140 = arith.constant 0 : index
    %243 = vector.load %arg16[%c0_139, %c0_140] : memref<8x128xf32, #tpu.memory_space<vmem>>, vector<8x128xf32>
    %244 = arith.mulf %239, %243 : vector<8x128xf32>
    %245 = arith.mulf %238, %242 : vector<8x128xf32>
    %246 = arith.addf %244, %245 : vector<8x128xf32>
    %247 = math.tanh %246 : vector<8x128xf32>
    %248 = arith.mulf %240, %247 : vector<8x128xf32>
    %c0_141 = arith.constant 0 : index
    %c0_142 = arith.constant 0 : index
    %249 = vector.load %arg16[%c0_141, %c0_142] : memref<8x128xf32, #tpu.memory_space<vmem>>, vector<8x128xf32>
    tpu.vector_store %arg16[%c0_141, %c0_142], %246 {strides = array<i32>} : memref<8x128xf32, #tpu.memory_space<vmem>>, vector<8x128xf32>,
    %c0_143 = arith.constant 0 : index
    %c0_144 = arith.constant 0 : index
    %250 = vector.load %arg15[%c0_143, %c0_144] : memref<8x128xf32, #tpu.memory_space<vmem>>, vector<8x128xf32>
    tpu.vector_store %arg15[%c0_143, %c0_144], %248 {strides = array<i32>} : memref<8x128xf32, #tpu.memory_space<vmem>>, vector<8x128xf32>,
    %251 = arith.index_cast %c7_i32 : i32 to index
    %c0_145 = arith.constant 0 : index
    %c0_146 = arith.constant 0 : index
    %252 = vector.load %arg14[%251, %c0_145, %c0_146] : memref<8x8x128xf32, #tpu.memory_space<vmem>>, vector<1x8x128xf32>
    %253 = vector.shape_cast %252 : vector<1x8x128xf32> to vector<8x128xf32>
    %254 = vector.shape_cast %248 : vector<8x128xf32> to vector<1x8x128xf32>
    tpu.vector_store %arg14[%251, %c0_145, %c0_146], %254 {strides = array<i32>} : memref<8x8x128xf32, #tpu.memory_space<vmem>>, vector<1x8x128xf32>,
    %c8_i32 = arith.constant 8 : i32
    %c0_147 = arith.constant 0 : index
    %c0_148 = arith.constant 0 : index
    %255 = vector.load %arg5[%c0_147, %c0_148] : memref<128x512xf32, #tpu.memory_space<vmem>>, vector<128x512xf32>
    %c0_149 = arith.constant 0 : index
    %c0_150 = arith.constant 0 : index
    %256 = vector.load %arg9[%c0_149, %c0_150] : memref<1x512xf32, #tpu.memory_space<vmem>>, vector<1x512xf32>
    %c0_151 = arith.constant 0 : index
    %c0_152 = arith.constant 0 : index
    %c0_153 = arith.constant 0 : index
    %257 = vector.load %arg14[%c0_151, %c0_152, %c0_153] : memref<8x8x128xf32, #tpu.memory_space<vmem>>, vector<8x8x128xf32>
    %258 = vector.shape_cast %257 : vector<8x8x128xf32> to vector<64x128xf32>
    %cst_154 = arith.constant dense<0.000000e+00> : vector<64x512xf32>
    %259 = tpu.matmul %258, %255, %cst_154 {dimension_numbers = #tpu.dot_dimension_numbers<[1], [0], [0], [1], [0, 0, 1, 1], [], []>} : vector<64x128xf32>, vector<128x512xf32>, vector<64x512xf32> -> vector<64x512xf32>
    %260 = vector.broadcast %256 : vector<1x512xf32> to vector<64x512xf32>
    %261 = arith.addf %259, %260 : vector<64x512xf32>
    %262 = vector.shape_cast %261 : vector<64x512xf32> to vector<8x8x512xf32>
    %c0_155 = arith.constant 0 : index
    %c0_156 = arith.constant 0 : index
    %c0_157 = arith.constant 0 : index
    %263 = vector.load %arg13[%c0_155, %c0_156, %c0_157] : memref<8x8x512xf32, #tpu.memory_space<vmem>>, vector<8x8x512xf32>
    tpu.vector_store %arg13[%c0_155, %c0_156, %c0_157], %262 {strides = array<i32>} : memref<8x8x512xf32, #tpu.memory_space<vmem>>, vector<8x8x512xf32>,
    %c1 = arith.constant 1 : index
    %c0_158 = arith.constant 0 : index
    %c0_159 = arith.constant 0 : index
    %264 = vector.load %arg2[%c1, %c0_158, %c0_159] : memref<2x8x128xf32, #tpu.memory_space<vmem>>, vector<1x8x128xf32>
    %265 = vector.shape_cast %264 : vector<1x8x128xf32> to vector<8x128xf32>
    %c0_160 = arith.constant 0 : index
    %c0_161 = arith.constant 0 : index
    %266 = vector.load %arg15[%c0_160, %c0_161] : memref<8x128xf32, #tpu.memory_space<vmem>>, vector<8x128xf32>
    tpu.vector_store %arg15[%c0_160, %c0_161], %265 {strides = array<i32>} : memref<8x128xf32, #tpu.memory_space<vmem>>, vector<8x128xf32>,
    %c1_162 = arith.constant 1 : index
    %c0_163 = arith.constant 0 : index
    %c0_164 = arith.constant 0 : index
    %267 = vector.load %arg3[%c1_162, %c0_163, %c0_164] : memref<2x8x128xf32, #tpu.memory_space<vmem>>, vector<1x8x128xf32>
    %268 = vector.shape_cast %267 : vector<1x8x128xf32> to vector<8x128xf32>
    %c0_165 = arith.constant 0 : index
    %c0_166 = arith.constant 0 : index
    %269 = vector.load %arg16[%c0_165, %c0_166] : memref<8x128xf32, #tpu.memory_space<vmem>>, vector<8x128xf32>
    tpu.vector_store %arg16[%c0_165, %c0_166], %268 {strides = array<i32>} : memref<8x128xf32, #tpu.memory_space<vmem>>, vector<8x128xf32>,
    %c0_i32_167 = arith.constant 0 : i32
    %c0_168 = arith.constant 0 : index
    %c0_169 = arith.constant 0 : index
    %270 = vector.load %arg15[%c0_168, %c0_169] : memref<8x128xf32, #tpu.memory_space<vmem>>, vector<8x128xf32>
    %c0_170 = arith.constant 0 : index
    %c0_171 = arith.constant 0 : index
    %271 = vector.load %arg7[%c0_170, %c0_171] : memref<128x512xf32, #tpu.memory_space<vmem>>, vector<128x512xf32>
    %cst_172 = arith.constant dense<0.000000e+00> : vector<8x512xf32>
    %272 = tpu.matmul %270, %271, %cst_172 {dimension_numbers = #tpu.dot_dimension_numbers<[1], [0], [0], [1], [0, 0, 1, 1], [], []>} : vector<8x128xf32>, vector<128x512xf32>, vector<8x512xf32> -> vector<8x512xf32>
    %273 = arith.index_cast %c0_i32_167 : i32 to index
    %c0_173 = arith.constant 0 : index
    %c0_174 = arith.constant 0 : index
    %274 = vector.load %arg13[%273, %c0_173, %c0_174] : memref<8x8x512xf32, #tpu.memory_space<vmem>>, vector<1x8x512xf32>
    %275 = vector.shape_cast %274 : vector<1x8x512xf32> to vector<8x512xf32>
    %276 = arith.addf %275, %272 : vector<8x512xf32>
    %277 = vector.extract_strided_slice %276 {offsets = [0, 0], sizes = [8, 384], strides = [1, 1]} : vector<8x512xf32> to vector<8x384xf32>
    %278 = arith.negf %277 : vector<8x384xf32>
    %279 = math.exp %278 : vector<8x384xf32>
    %cst_175 = arith.constant 1.000000e+00 : f32
    %280 = vector.broadcast %cst_175 : f32 to vector<8x384xf32>
    %281 = arith.addf %280, %279 : vector<8x384xf32>
    %282 = arith.divf %280, %281 : vector<8x384xf32>
    %283 = vector.extract_strided_slice %282 {offsets = [0, 0], sizes = [8, 128], strides = [1, 1]} : vector<8x384xf32> to vector<8x128xf32>
    %284 = vector.extract_strided_slice %282 {offsets = [0, 128], sizes = [8, 128], strides = [1, 1]} : vector<8x384xf32> to vector<8x128xf32>
    %285 = vector.extract_strided_slice %282 {offsets = [0, 256], sizes = [8, 128], strides = [1, 1]} : vector<8x384xf32> to vector<8x128xf32>
    %286 = vector.extract_strided_slice %276 {offsets = [0, 384], sizes = [8, 128], strides = [1, 1]} : vector<8x512xf32> to vector<8x128xf32>
    %287 = math.tanh %286 : vector<8x128xf32>
    %c0_176 = arith.constant 0 : index
    %c0_177 = arith.constant 0 : index
    %288 = vector.load %arg16[%c0_176, %c0_177] : memref<8x128xf32, #tpu.memory_space<vmem>>, vector<8x128xf32>
    %289 = arith.mulf %284, %288 : vector<8x128xf32>
    %290 = arith.mulf %283, %287 : vector<8x128xf32>
    %291 = arith.addf %289, %290 : vector<8x128xf32>
    %292 = math.tanh %291 : vector<8x128xf32>
    %293 = arith.mulf %285, %292 : vector<8x128xf32>
    %c0_178 = arith.constant 0 : index
    %c0_179 = arith.constant 0 : index
    %294 = vector.load %arg16[%c0_178, %c0_179] : memref<8x128xf32, #tpu.memory_space<vmem>>, vector<8x128xf32>
    tpu.vector_store %arg16[%c0_178, %c0_179], %291 {strides = array<i32>} : memref<8x128xf32, #tpu.memory_space<vmem>>, vector<8x128xf32>,
    %c0_180 = arith.constant 0 : index
    %c0_181 = arith.constant 0 : index
    %295 = vector.load %arg15[%c0_180, %c0_181] : memref<8x128xf32, #tpu.memory_space<vmem>>, vector<8x128xf32>
    tpu.vector_store %arg15[%c0_180, %c0_181], %293 {strides = array<i32>} : memref<8x128xf32, #tpu.memory_space<vmem>>, vector<8x128xf32>,
    %c1_i32_182 = arith.constant 1 : i32
    %c0_183 = arith.constant 0 : index
    %c0_184 = arith.constant 0 : index
    %296 = vector.load %arg15[%c0_183, %c0_184] : memref<8x128xf32, #tpu.memory_space<vmem>>, vector<8x128xf32>
    %c0_185 = arith.constant 0 : index
    %c0_186 = arith.constant 0 : index
    %297 = vector.load %arg7[%c0_185, %c0_186] : memref<128x512xf32, #tpu.memory_space<vmem>>, vector<128x512xf32>
    %cst_187 = arith.constant dense<0.000000e+00> : vector<8x512xf32>
    %298 = tpu.matmul %296, %297, %cst_187 {dimension_numbers = #tpu.dot_dimension_numbers<[1], [0], [0], [1], [0, 0, 1, 1], [], []>} : vector<8x128xf32>, vector<128x512xf32>, vector<8x512xf32> -> vector<8x512xf32>
    %299 = arith.index_cast %c1_i32_182 : i32 to index
    %c0_188 = arith.constant 0 : index
    %c0_189 = arith.constant 0 : index
    %300 = vector.load %arg13[%299, %c0_188, %c0_189] : memref<8x8x512xf32, #tpu.memory_space<vmem>>, vector<1x8x512xf32>
    %301 = vector.shape_cast %300 : vector<1x8x512xf32> to vector<8x512xf32>
    %302 = arith.addf %301, %298 : vector<8x512xf32>
    %303 = vector.extract_strided_slice %302 {offsets = [0, 0], sizes = [8, 384], strides = [1, 1]} : vector<8x512xf32> to vector<8x384xf32>
    %304 = arith.negf %303 : vector<8x384xf32>
    %305 = math.exp %304 : vector<8x384xf32>
    %cst_190 = arith.constant 1.000000e+00 : f32
    %306 = vector.broadcast %cst_190 : f32 to vector<8x384xf32>
    %307 = arith.addf %306, %305 : vector<8x384xf32>
    %308 = arith.divf %306, %307 : vector<8x384xf32>
    %309 = vector.extract_strided_slice %308 {offsets = [0, 0], sizes = [8, 128], strides = [1, 1]} : vector<8x384xf32> to vector<8x128xf32>
    %310 = vector.extract_strided_slice %308 {offsets = [0, 128], sizes = [8, 128], strides = [1, 1]} : vector<8x384xf32> to vector<8x128xf32>
    %311 = vector.extract_strided_slice %308 {offsets = [0, 256], sizes = [8, 128], strides = [1, 1]} : vector<8x384xf32> to vector<8x128xf32>
    %312 = vector.extract_strided_slice %302 {offsets = [0, 384], sizes = [8, 128], strides = [1, 1]} : vector<8x512xf32> to vector<8x128xf32>
    %313 = math.tanh %312 : vector<8x128xf32>
    %c0_191 = arith.constant 0 : index
    %c0_192 = arith.constant 0 : index
    %314 = vector.load %arg16[%c0_191, %c0_192] : memref<8x128xf32, #tpu.memory_space<vmem>>, vector<8x128xf32>
    %315 = arith.mulf %310, %314 : vector<8x128xf32>
    %316 = arith.mulf %309, %313 : vector<8x128xf32>
    %317 = arith.addf %315, %316 : vector<8x128xf32>
    %318 = math.tanh %317 : vector<8x128xf32>
    %319 = arith.mulf %311, %318 : vector<8x128xf32>
    %c0_193 = arith.constant 0 : index
    %c0_194 = arith.constant 0 : index
    %320 = vector.load %arg16[%c0_193, %c0_194] : memref<8x128xf32, #tpu.memory_space<vmem>>, vector<8x128xf32>
    tpu.vector_store %arg16[%c0_193, %c0_194], %317 {strides = array<i32>} : memref<8x128xf32, #tpu.memory_space<vmem>>, vector<8x128xf32>,
    %c0_195 = arith.constant 0 : index
    %c0_196 = arith.constant 0 : index
    %321 = vector.load %arg15[%c0_195, %c0_196] : memref<8x128xf32, #tpu.memory_space<vmem>>, vector<8x128xf32>
    tpu.vector_store %arg15[%c0_195, %c0_196], %319 {strides = array<i32>} : memref<8x128xf32, #tpu.memory_space<vmem>>, vector<8x128xf32>,
    %c2_i32_197 = arith.constant 2 : i32
    %c0_198 = arith.constant 0 : index
    %c0_199 = arith.constant 0 : index
    %322 = vector.load %arg15[%c0_198, %c0_199] : memref<8x128xf32, #tpu.memory_space<vmem>>, vector<8x128xf32>
    %c0_200 = arith.constant 0 : index
    %c0_201 = arith.constant 0 : index
    %323 = vector.load %arg7[%c0_200, %c0_201] : memref<128x512xf32, #tpu.memory_space<vmem>>, vector<128x512xf32>
    %cst_202 = arith.constant dense<0.000000e+00> : vector<8x512xf32>
    %324 = tpu.matmul %322, %323, %cst_202 {dimension_numbers = #tpu.dot_dimension_numbers<[1], [0], [0], [1], [0, 0, 1, 1], [], []>} : vector<8x128xf32>, vector<128x512xf32>, vector<8x512xf32> -> vector<8x512xf32>
    %325 = arith.index_cast %c2_i32_197 : i32 to index
    %c0_203 = arith.constant 0 : index
    %c0_204 = arith.constant 0 : index
    %326 = vector.load %arg13[%325, %c0_203, %c0_204] : memref<8x8x512xf32, #tpu.memory_space<vmem>>, vector<1x8x512xf32>
    %327 = vector.shape_cast %326 : vector<1x8x512xf32> to vector<8x512xf32>
    %328 = arith.addf %327, %324 : vector<8x512xf32>
    %329 = vector.extract_strided_slice %328 {offsets = [0, 0], sizes = [8, 384], strides = [1, 1]} : vector<8x512xf32> to vector<8x384xf32>
    %330 = arith.negf %329 : vector<8x384xf32>
    %331 = math.exp %330 : vector<8x384xf32>
    %cst_205 = arith.constant 1.000000e+00 : f32
    %332 = vector.broadcast %cst_205 : f32 to vector<8x384xf32>
    %333 = arith.addf %332, %331 : vector<8x384xf32>
    %334 = arith.divf %332, %333 : vector<8x384xf32>
    %335 = vector.extract_strided_slice %334 {offsets = [0, 0], sizes = [8, 128], strides = [1, 1]} : vector<8x384xf32> to vector<8x128xf32>
    %336 = vector.extract_strided_slice %334 {offsets = [0, 128], sizes = [8, 128], strides = [1, 1]} : vector<8x384xf32> to vector<8x128xf32>
    %337 = vector.extract_strided_slice %334 {offsets = [0, 256], sizes = [8, 128], strides = [1, 1]} : vector<8x384xf32> to vector<8x128xf32>
    %338 = vector.extract_strided_slice %328 {offsets = [0, 384], sizes = [8, 128], strides = [1, 1]} : vector<8x512xf32> to vector<8x128xf32>
    %339 = math.tanh %338 : vector<8x128xf32>
    %c0_206 = arith.constant 0 : index
    %c0_207 = arith.constant 0 : index
    %340 = vector.load %arg16[%c0_206, %c0_207] : memref<8x128xf32, #tpu.memory_space<vmem>>, vector<8x128xf32>
    %341 = arith.mulf %336, %340 : vector<8x128xf32>
    %342 = arith.mulf %335, %339 : vector<8x128xf32>
    %343 = arith.addf %341, %342 : vector<8x128xf32>
    %344 = math.tanh %343 : vector<8x128xf32>
    %345 = arith.mulf %337, %344 : vector<8x128xf32>
    %c0_208 = arith.constant 0 : index
    %c0_209 = arith.constant 0 : index
    %346 = vector.load %arg16[%c0_208, %c0_209] : memref<8x128xf32, #tpu.memory_space<vmem>>, vector<8x128xf32>
    tpu.vector_store %arg16[%c0_208, %c0_209], %343 {strides = array<i32>} : memref<8x128xf32, #tpu.memory_space<vmem>>, vector<8x128xf32>,
    %c0_210 = arith.constant 0 : index
    %c0_211 = arith.constant 0 : index
    %347 = vector.load %arg15[%c0_210, %c0_211] : memref<8x128xf32, #tpu.memory_space<vmem>>, vector<8x128xf32>
    tpu.vector_store %arg15[%c0_210, %c0_211], %345 {strides = array<i32>} : memref<8x128xf32, #tpu.memory_space<vmem>>, vector<8x128xf32>,
    %c3_i32_212 = arith.constant 3 : i32
    %c0_213 = arith.constant 0 : index
    %c0_214 = arith.constant 0 : index
    %348 = vector.load %arg15[%c0_213, %c0_214] : memref<8x128xf32, #tpu.memory_space<vmem>>, vector<8x128xf32>
    %c0_215 = arith.constant 0 : index
    %c0_216 = arith.constant 0 : index
    %349 = vector.load %arg7[%c0_215, %c0_216] : memref<128x512xf32, #tpu.memory_space<vmem>>, vector<128x512xf32>
    %cst_217 = arith.constant dense<0.000000e+00> : vector<8x512xf32>
    %350 = tpu.matmul %348, %349, %cst_217 {dimension_numbers = #tpu.dot_dimension_numbers<[1], [0], [0], [1], [0, 0, 1, 1], [], []>} : vector<8x128xf32>, vector<128x512xf32>, vector<8x512xf32> -> vector<8x512xf32>
    %351 = arith.index_cast %c3_i32_212 : i32 to index
    %c0_218 = arith.constant 0 : index
    %c0_219 = arith.constant 0 : index
    %352 = vector.load %arg13[%351, %c0_218, %c0_219] : memref<8x8x512xf32, #tpu.memory_space<vmem>>, vector<1x8x512xf32>
    %353 = vector.shape_cast %352 : vector<1x8x512xf32> to vector<8x512xf32>
    %354 = arith.addf %353, %350 : vector<8x512xf32>
    %355 = vector.extract_strided_slice %354 {offsets = [0, 0], sizes = [8, 384], strides = [1, 1]} : vector<8x512xf32> to vector<8x384xf32>
    %356 = arith.negf %355 : vector<8x384xf32>
    %357 = math.exp %356 : vector<8x384xf32>
    %cst_220 = arith.constant 1.000000e+00 : f32
    %358 = vector.broadcast %cst_220 : f32 to vector<8x384xf32>
    %359 = arith.addf %358, %357 : vector<8x384xf32>
    %360 = arith.divf %358, %359 : vector<8x384xf32>
    %361 = vector.extract_strided_slice %360 {offsets = [0, 0], sizes = [8, 128], strides = [1, 1]} : vector<8x384xf32> to vector<8x128xf32>
    %362 = vector.extract_strided_slice %360 {offsets = [0, 128], sizes = [8, 128], strides = [1, 1]} : vector<8x384xf32> to vector<8x128xf32>
    %363 = vector.extract_strided_slice %360 {offsets = [0, 256], sizes = [8, 128], strides = [1, 1]} : vector<8x384xf32> to vector<8x128xf32>
    %364 = vector.extract_strided_slice %354 {offsets = [0, 384], sizes = [8, 128], strides = [1, 1]} : vector<8x512xf32> to vector<8x128xf32>
    %365 = math.tanh %364 : vector<8x128xf32>
    %c0_221 = arith.constant 0 : index
    %c0_222 = arith.constant 0 : index
    %366 = vector.load %arg16[%c0_221, %c0_222] : memref<8x128xf32, #tpu.memory_space<vmem>>, vector<8x128xf32>
    %367 = arith.mulf %362, %366 : vector<8x128xf32>
    %368 = arith.mulf %361, %365 : vector<8x128xf32>
    %369 = arith.addf %367, %368 : vector<8x128xf32>
    %370 = math.tanh %369 : vector<8x128xf32>
    %371 = arith.mulf %363, %370 : vector<8x128xf32>
    %c0_223 = arith.constant 0 : index
    %c0_224 = arith.constant 0 : index
    %372 = vector.load %arg16[%c0_223, %c0_224] : memref<8x128xf32, #tpu.memory_space<vmem>>, vector<8x128xf32>
    tpu.vector_store %arg16[%c0_223, %c0_224], %369 {strides = array<i32>} : memref<8x128xf32, #tpu.memory_space<vmem>>, vector<8x128xf32>,
    %c0_225 = arith.constant 0 : index
    %c0_226 = arith.constant 0 : index
    %373 = vector.load %arg15[%c0_225, %c0_226] : memref<8x128xf32, #tpu.memory_space<vmem>>, vector<8x128xf32>
    tpu.vector_store %arg15[%c0_225, %c0_226], %371 {strides = array<i32>} : memref<8x128xf32, #tpu.memory_space<vmem>>, vector<8x128xf32>,
    %c4_i32_227 = arith.constant 4 : i32
    %c0_228 = arith.constant 0 : index
    %c0_229 = arith.constant 0 : index
    %374 = vector.load %arg15[%c0_228, %c0_229] : memref<8x128xf32, #tpu.memory_space<vmem>>, vector<8x128xf32>
    %c0_230 = arith.constant 0 : index
    %c0_231 = arith.constant 0 : index
    %375 = vector.load %arg7[%c0_230, %c0_231] : memref<128x512xf32, #tpu.memory_space<vmem>>, vector<128x512xf32>
    %cst_232 = arith.constant dense<0.000000e+00> : vector<8x512xf32>
    %376 = tpu.matmul %374, %375, %cst_232 {dimension_numbers = #tpu.dot_dimension_numbers<[1], [0], [0], [1], [0, 0, 1, 1], [], []>} : vector<8x128xf32>, vector<128x512xf32>, vector<8x512xf32> -> vector<8x512xf32>
    %377 = arith.index_cast %c4_i32_227 : i32 to index
    %c0_233 = arith.constant 0 : index
    %c0_234 = arith.constant 0 : index
    %378 = vector.load %arg13[%377, %c0_233, %c0_234] : memref<8x8x512xf32, #tpu.memory_space<vmem>>, vector<1x8x512xf32>
    %379 = vector.shape_cast %378 : vector<1x8x512xf32> to vector<8x512xf32>
    %380 = arith.addf %379, %376 : vector<8x512xf32>
    %381 = vector.extract_strided_slice %380 {offsets = [0, 0], sizes = [8, 384], strides = [1, 1]} : vector<8x512xf32> to vector<8x384xf32>
    %382 = arith.negf %381 : vector<8x384xf32>
    %383 = math.exp %382 : vector<8x384xf32>
    %cst_235 = arith.constant 1.000000e+00 : f32
    %384 = vector.broadcast %cst_235 : f32 to vector<8x384xf32>
    %385 = arith.addf %384, %383 : vector<8x384xf32>
    %386 = arith.divf %384, %385 : vector<8x384xf32>
    %387 = vector.extract_strided_slice %386 {offsets = [0, 0], sizes = [8, 128], strides = [1, 1]} : vector<8x384xf32> to vector<8x128xf32>
    %388 = vector.extract_strided_slice %386 {offsets = [0, 128], sizes = [8, 128], strides = [1, 1]} : vector<8x384xf32> to vector<8x128xf32>
    %389 = vector.extract_strided_slice %386 {offsets = [0, 256], sizes = [8, 128], strides = [1, 1]} : vector<8x384xf32> to vector<8x128xf32>
    %390 = vector.extract_strided_slice %380 {offsets = [0, 384], sizes = [8, 128], strides = [1, 1]} : vector<8x512xf32> to vector<8x128xf32>
    %391 = math.tanh %390 : vector<8x128xf32>
    %c0_236 = arith.constant 0 : index
    %c0_237 = arith.constant 0 : index
    %392 = vector.load %arg16[%c0_236, %c0_237] : memref<8x128xf32, #tpu.memory_space<vmem>>, vector<8x128xf32>
    %393 = arith.mulf %388, %392 : vector<8x128xf32>
    %394 = arith.mulf %387, %391 : vector<8x128xf32>
    %395 = arith.addf %393, %394 : vector<8x128xf32>
    %396 = math.tanh %395 : vector<8x128xf32>
    %397 = arith.mulf %389, %396 : vector<8x128xf32>
    %c0_238 = arith.constant 0 : index
    %c0_239 = arith.constant 0 : index
    %398 = vector.load %arg16[%c0_238, %c0_239] : memref<8x128xf32, #tpu.memory_space<vmem>>, vector<8x128xf32>
    tpu.vector_store %arg16[%c0_238, %c0_239], %395 {strides = array<i32>} : memref<8x128xf32, #tpu.memory_space<vmem>>, vector<8x128xf32>,
    %c0_240 = arith.constant 0 : index
    %c0_241 = arith.constant 0 : index
    %399 = vector.load %arg15[%c0_240, %c0_241] : memref<8x128xf32, #tpu.memory_space<vmem>>, vector<8x128xf32>
    tpu.vector_store %arg15[%c0_240, %c0_241], %397 {strides = array<i32>} : memref<8x128xf32, #tpu.memory_space<vmem>>, vector<8x128xf32>,
    %c5_i32_242 = arith.constant 5 : i32
    %c0_243 = arith.constant 0 : index
    %c0_244 = arith.constant 0 : index
    %400 = vector.load %arg15[%c0_243, %c0_244] : memref<8x128xf32, #tpu.memory_space<vmem>>, vector<8x128xf32>
    %c0_245 = arith.constant 0 : index
    %c0_246 = arith.constant 0 : index
    %401 = vector.load %arg7[%c0_245, %c0_246] : memref<128x512xf32, #tpu.memory_space<vmem>>, vector<128x512xf32>
    %cst_247 = arith.constant dense<0.000000e+00> : vector<8x512xf32>
    %402 = tpu.matmul %400, %401, %cst_247 {dimension_numbers = #tpu.dot_dimension_numbers<[1], [0], [0], [1], [0, 0, 1, 1], [], []>} : vector<8x128xf32>, vector<128x512xf32>, vector<8x512xf32> -> vector<8x512xf32>
    %403 = arith.index_cast %c5_i32_242 : i32 to index
    %c0_248 = arith.constant 0 : index
    %c0_249 = arith.constant 0 : index
    %404 = vector.load %arg13[%403, %c0_248, %c0_249] : memref<8x8x512xf32, #tpu.memory_space<vmem>>, vector<1x8x512xf32>
    %405 = vector.shape_cast %404 : vector<1x8x512xf32> to vector<8x512xf32>
    %406 = arith.addf %405, %402 : vector<8x512xf32>
    %407 = vector.extract_strided_slice %406 {offsets = [0, 0], sizes = [8, 384], strides = [1, 1]} : vector<8x512xf32> to vector<8x384xf32>
    %408 = arith.negf %407 : vector<8x384xf32>
    %409 = math.exp %408 : vector<8x384xf32>
    %cst_250 = arith.constant 1.000000e+00 : f32
    %410 = vector.broadcast %cst_250 : f32 to vector<8x384xf32>
    %411 = arith.addf %410, %409 : vector<8x384xf32>
    %412 = arith.divf %410, %411 : vector<8x384xf32>
    %413 = vector.extract_strided_slice %412 {offsets = [0, 0], sizes = [8, 128], strides = [1, 1]} : vector<8x384xf32> to vector<8x128xf32>
    %414 = vector.extract_strided_slice %412 {offsets = [0, 128], sizes = [8, 128], strides = [1, 1]} : vector<8x384xf32> to vector<8x128xf32>
    %415 = vector.extract_strided_slice %412 {offsets = [0, 256], sizes = [8, 128], strides = [1, 1]} : vector<8x384xf32> to vector<8x128xf32>
    %416 = vector.extract_strided_slice %406 {offsets = [0, 384], sizes = [8, 128], strides = [1, 1]} : vector<8x512xf32> to vector<8x128xf32>
    %417 = math.tanh %416 : vector<8x128xf32>
    %c0_251 = arith.constant 0 : index
    %c0_252 = arith.constant 0 : index
    %418 = vector.load %arg16[%c0_251, %c0_252] : memref<8x128xf32, #tpu.memory_space<vmem>>, vector<8x128xf32>
    %419 = arith.mulf %414, %418 : vector<8x128xf32>
    %420 = arith.mulf %413, %417 : vector<8x128xf32>
    %421 = arith.addf %419, %420 : vector<8x128xf32>
    %422 = math.tanh %421 : vector<8x128xf32>
    %423 = arith.mulf %415, %422 : vector<8x128xf32>
    %c0_253 = arith.constant 0 : index
    %c0_254 = arith.constant 0 : index
    %424 = vector.load %arg16[%c0_253, %c0_254] : memref<8x128xf32, #tpu.memory_space<vmem>>, vector<8x128xf32>
    tpu.vector_store %arg16[%c0_253, %c0_254], %421 {strides = array<i32>} : memref<8x128xf32, #tpu.memory_space<vmem>>, vector<8x128xf32>,
    %c0_255 = arith.constant 0 : index
    %c0_256 = arith.constant 0 : index
    %425 = vector.load %arg15[%c0_255, %c0_256] : memref<8x128xf32, #tpu.memory_space<vmem>>, vector<8x128xf32>
    tpu.vector_store %arg15[%c0_255, %c0_256], %423 {strides = array<i32>} : memref<8x128xf32, #tpu.memory_space<vmem>>, vector<8x128xf32>,
    %c6_i32_257 = arith.constant 6 : i32
    %c0_258 = arith.constant 0 : index
    %c0_259 = arith.constant 0 : index
    %426 = vector.load %arg15[%c0_258, %c0_259] : memref<8x128xf32, #tpu.memory_space<vmem>>, vector<8x128xf32>
    %c0_260 = arith.constant 0 : index
    %c0_261 = arith.constant 0 : index
    %427 = vector.load %arg7[%c0_260, %c0_261] : memref<128x512xf32, #tpu.memory_space<vmem>>, vector<128x512xf32>
    %cst_262 = arith.constant dense<0.000000e+00> : vector<8x512xf32>
    %428 = tpu.matmul %426, %427, %cst_262 {dimension_numbers = #tpu.dot_dimension_numbers<[1], [0], [0], [1], [0, 0, 1, 1], [], []>} : vector<8x128xf32>, vector<128x512xf32>, vector<8x512xf32> -> vector<8x512xf32>
    %429 = arith.index_cast %c6_i32_257 : i32 to index
    %c0_263 = arith.constant 0 : index
    %c0_264 = arith.constant 0 : index
    %430 = vector.load %arg13[%429, %c0_263, %c0_264] : memref<8x8x512xf32, #tpu.memory_space<vmem>>, vector<1x8x512xf32>
    %431 = vector.shape_cast %430 : vector<1x8x512xf32> to vector<8x512xf32>
    %432 = arith.addf %431, %428 : vector<8x512xf32>
    %433 = vector.extract_strided_slice %432 {offsets = [0, 0], sizes = [8, 384], strides = [1, 1]} : vector<8x512xf32> to vector<8x384xf32>
    %434 = arith.negf %433 : vector<8x384xf32>
    %435 = math.exp %434 : vector<8x384xf32>
    %cst_265 = arith.constant 1.000000e+00 : f32
    %436 = vector.broadcast %cst_265 : f32 to vector<8x384xf32>
    %437 = arith.addf %436, %435 : vector<8x384xf32>
    %438 = arith.divf %436, %437 : vector<8x384xf32>
    %439 = vector.extract_strided_slice %438 {offsets = [0, 0], sizes = [8, 128], strides = [1, 1]} : vector<8x384xf32> to vector<8x128xf32>
    %440 = vector.extract_strided_slice %438 {offsets = [0, 128], sizes = [8, 128], strides = [1, 1]} : vector<8x384xf32> to vector<8x128xf32>
    %441 = vector.extract_strided_slice %438 {offsets = [0, 256], sizes = [8, 128], strides = [1, 1]} : vector<8x384xf32> to vector<8x128xf32>
    %442 = vector.extract_strided_slice %432 {offsets = [0, 384], sizes = [8, 128], strides = [1, 1]} : vector<8x512xf32> to vector<8x128xf32>
    %443 = math.tanh %442 : vector<8x128xf32>
    %c0_266 = arith.constant 0 : index
    %c0_267 = arith.constant 0 : index
    %444 = vector.load %arg16[%c0_266, %c0_267] : memref<8x128xf32, #tpu.memory_space<vmem>>, vector<8x128xf32>
    %445 = arith.mulf %440, %444 : vector<8x128xf32>
    %446 = arith.mulf %439, %443 : vector<8x128xf32>
    %447 = arith.addf %445, %446 : vector<8x128xf32>
    %448 = math.tanh %447 : vector<8x128xf32>
    %449 = arith.mulf %441, %448 : vector<8x128xf32>
    %c0_268 = arith.constant 0 : index
    %c0_269 = arith.constant 0 : index
    %450 = vector.load %arg16[%c0_268, %c0_269] : memref<8x128xf32, #tpu.memory_space<vmem>>, vector<8x128xf32>
    tpu.vector_store %arg16[%c0_268, %c0_269], %447 {strides = array<i32>} : memref<8x128xf32, #tpu.memory_space<vmem>>, vector<8x128xf32>,
    %c0_270 = arith.constant 0 : index
    %c0_271 = arith.constant 0 : index
    %451 = vector.load %arg15[%c0_270, %c0_271] : memref<8x128xf32, #tpu.memory_space<vmem>>, vector<8x128xf32>
    tpu.vector_store %arg15[%c0_270, %c0_271], %449 {strides = array<i32>} : memref<8x128xf32, #tpu.memory_space<vmem>>, vector<8x128xf32>,
    %c7_i32_272 = arith.constant 7 : i32
    %c0_273 = arith.constant 0 : index
    %c0_274 = arith.constant 0 : index
    %452 = vector.load %arg15[%c0_273, %c0_274] : memref<8x128xf32, #tpu.memory_space<vmem>>, vector<8x128xf32>
    %c0_275 = arith.constant 0 : index
    %c0_276 = arith.constant 0 : index
    %453 = vector.load %arg7[%c0_275, %c0_276] : memref<128x512xf32, #tpu.memory_space<vmem>>, vector<128x512xf32>
    %cst_277 = arith.constant dense<0.000000e+00> : vector<8x512xf32>
    %454 = tpu.matmul %452, %453, %cst_277 {dimension_numbers = #tpu.dot_dimension_numbers<[1], [0], [0], [1], [0, 0, 1, 1], [], []>} : vector<8x128xf32>, vector<128x512xf32>, vector<8x512xf32> -> vector<8x512xf32>
    %455 = arith.index_cast %c7_i32_272 : i32 to index
    %c0_278 = arith.constant 0 : index
    %c0_279 = arith.constant 0 : index
    %456 = vector.load %arg13[%455, %c0_278, %c0_279] : memref<8x8x512xf32, #tpu.memory_space<vmem>>, vector<1x8x512xf32>
    %457 = vector.shape_cast %456 : vector<1x8x512xf32> to vector<8x512xf32>
    %458 = arith.addf %457, %454 : vector<8x512xf32>
    %459 = vector.extract_strided_slice %458 {offsets = [0, 0], sizes = [8, 384], strides = [1, 1]} : vector<8x512xf32> to vector<8x384xf32>
    %460 = arith.negf %459 : vector<8x384xf32>
    %461 = math.exp %460 : vector<8x384xf32>
    %cst_280 = arith.constant 1.000000e+00 : f32
    %462 = vector.broadcast %cst_280 : f32 to vector<8x384xf32>
    %463 = arith.addf %462, %461 : vector<8x384xf32>
    %464 = arith.divf %462, %463 : vector<8x384xf32>
    %465 = vector.extract_strided_slice %464 {offsets = [0, 0], sizes = [8, 128], strides = [1, 1]} : vector<8x384xf32> to vector<8x128xf32>
    %466 = vector.extract_strided_slice %464 {offsets = [0, 128], sizes = [8, 128], strides = [1, 1]} : vector<8x384xf32> to vector<8x128xf32>
    %467 = vector.extract_strided_slice %464 {offsets = [0, 256], sizes = [8, 128], strides = [1, 1]} : vector<8x384xf32> to vector<8x128xf32>
    %468 = vector.extract_strided_slice %458 {offsets = [0, 384], sizes = [8, 128], strides = [1, 1]} : vector<8x512xf32> to vector<8x128xf32>
    %469 = math.tanh %468 : vector<8x128xf32>
    %c0_281 = arith.constant 0 : index
    %c0_282 = arith.constant 0 : index
    %470 = vector.load %arg16[%c0_281, %c0_282] : memref<8x128xf32, #tpu.memory_space<vmem>>, vector<8x128xf32>
    %471 = arith.mulf %466, %470 : vector<8x128xf32>
    %472 = arith.mulf %465, %469 : vector<8x128xf32>
    %473 = arith.addf %471, %472 : vector<8x128xf32>
    %474 = math.tanh %473 : vector<8x128xf32>
    %475 = arith.mulf %467, %474 : vector<8x128xf32>
    %c0_283 = arith.constant 0 : index
    %c0_284 = arith.constant 0 : index
    %476 = vector.load %arg16[%c0_283, %c0_284] : memref<8x128xf32, #tpu.memory_space<vmem>>, vector<8x128xf32>
    tpu.vector_store %arg16[%c0_283, %c0_284], %473 {strides = array<i32>} : memref<8x128xf32, #tpu.memory_space<vmem>>, vector<8x128xf32>,
    %c0_285 = arith.constant 0 : index
    %c0_286 = arith.constant 0 : index
    %477 = vector.load %arg15[%c0_285, %c0_286] : memref<8x128xf32, #tpu.memory_space<vmem>>, vector<8x128xf32>
    tpu.vector_store %arg15[%c0_285, %c0_286], %475 {strides = array<i32>} : memref<8x128xf32, #tpu.memory_space<vmem>>, vector<8x128xf32>,
    %c8_i32_287 = arith.constant 8 : i32
    %c0_288 = arith.constant 0 : index
    %c0_289 = arith.constant 0 : index
    %478 = vector.load %arg15[%c0_288, %c0_289] : memref<8x128xf32, #tpu.memory_space<vmem>>, vector<8x128xf32>
    %479 = math.tanh %478 : vector<8x128xf32>
    %c0_290 = arith.constant 0 : index
    %c0_291 = arith.constant 0 : index
    %480 = vector.load %arg10[%c0_290, %c0_291] : memref<128x128xf32, #tpu.memory_space<vmem>>, vector<128x128xf32>
    %cst_292 = arith.constant dense<0.000000e+00> : vector<8x128xf32>
    %481 = tpu.matmul %479, %480, %cst_292 {dimension_numbers = #tpu.dot_dimension_numbers<[1], [0], [0], [1], [0, 0, 1, 1], [], []>} : vector<8x128xf32>, vector<128x128xf32>, vector<8x128xf32> -> vector<8x128xf32>
    %c0_293 = arith.constant 0 : index
    %c0_294 = arith.constant 0 : index
    %482 = vector.load %arg11[%c0_293, %c0_294] : memref<1x128xf32, #tpu.memory_space<vmem>>, vector<1x128xf32>
    %483 = vector.broadcast %482 : vector<1x128xf32> to vector<8x128xf32>
    %484 = arith.addf %481, %483 : vector<8x128xf32>
    %cst_295 = arith.constant dense<0xFF800000> : vector<8xf32>
    %485 = vector.multi_reduction <maximumf>, %484, %cst_295 [1] : vector<8x128xf32> to vector<8xf32>
    %486 = vector.shape_cast %485 : vector<8xf32> to vector<8x1xf32>
    %487 = vector.broadcast %486 : vector<8x1xf32> to vector<8x128xf32>
    %488 = arith.subf %484, %487 : vector<8x128xf32>
    %489 = math.exp %488 : vector<8x128xf32>
    %cst_296 = arith.constant dense<0.000000e+00> : vector<8xf32>
    %490 = vector.multi_reduction <add>, %489, %cst_296 [1] : vector<8x128xf32> to vector<8xf32>
    %491 = vector.shape_cast %490 : vector<8xf32> to vector<8x1xf32>
    %492 = tpu.reciprocal %491 {approx = true} : vector<8x1xf32> -> vector<8x1xf32>
    %493 = vector.broadcast %492 : vector<8x1xf32> to vector<8x128xf32>
    %494 = arith.mulf %489, %493 : vector<8x128xf32>
    %c0_297 = arith.constant 0 : index
    %c0_298 = arith.constant 0 : index
    %495 = vector.load %arg12[%c0_297, %c0_298] : memref<8x128xf32, #tpu.memory_space<vmem>>, vector<8x128xf32>
    tpu.vector_store %arg12[%c0_297, %c0_298], %494 {strides = array<i32>} : memref<8x128xf32, #tpu.memory_space<vmem>>, vector<8x128xf32>,
    return
  }
  func.func @transform_0(%arg0: i32) -> (i32, i32, i32) {
    %c0_i32 = arith.constant 0 : i32
    %c0_i32_0 = arith.constant 0 : i32
    %c0_i32_1 = arith.constant 0 : i32
    return %c0_i32, %arg0, %c0_i32_0 : i32, i32, i32
  }
  func.func @transform_1(%arg0: i32) -> (i32, i32, i32) {
    %c0_i32 = arith.constant 0 : i32
    %c0_i32_0 = arith.constant 0 : i32
    %c0_i32_1 = arith.constant 0 : i32
    return %c0_i32, %arg0, %c0_i32_0 : i32, i32, i32
  }
  func.func @transform_2(%arg0: i32) -> (i32, i32, i32) {
    %c0_i32 = arith.constant 0 : i32
    %c0_i32_0 = arith.constant 0 : i32
    %c0_i32_1 = arith.constant 0 : i32
    return %c0_i32, %arg0, %c0_i32_0 : i32, i32, i32
  }
  func.func @transform_3(%arg0: i32) -> (i32, i32) {
    %c0_i32 = arith.constant 0 : i32
    %c0_i32_0 = arith.constant 0 : i32
    %c0_i32_1 = arith.constant 0 : i32
    return %c0_i32, %c0_i32_0 : i32, i32
  }
  func.func @transform_4(%arg0: i32) -> (i32, i32) {
    %c0_i32 = arith.constant 0 : i32
    %c0_i32_0 = arith.constant 0 : i32
    %c0_i32_1 = arith.constant 0 : i32
    return %c0_i32, %c0_i32_0 : i32, i32
  }
  func.func @transform_5(%arg0: i32) -> (i32, i32) {
    %c0_i32 = arith.constant 0 : i32
    %c0_i32_0 = arith.constant 0 : i32
    %c0_i32_1 = arith.constant 0 : i32
    return %c0_i32, %c0_i32_0 : i32, i32
  }
  func.func @transform_6(%arg0: i32) -> (i32, i32) {
    %c0_i32 = arith.constant 0 : i32
    %c0_i32_0 = arith.constant 0 : i32
    %c0_i32_1 = arith.constant 0 : i32
    return %c0_i32, %c0_i32_0 : i32, i32
  }
  func.func @transform_7(%arg0: i32) -> (i32, i32) {
    %c0_i32 = arith.constant 0 : i32
    %c0_i32_0 = arith.constant 0 : i32
    %c0_i32_1 = arith.constant 0 : i32
    return %c0_i32, %c0_i32_0 : i32, i32
  }
  func.func @transform_8(%arg0: i32) -> (i32, i32) {
    %c0_i32 = arith.constant 0 : i32
    %c0_i32_0 = arith.constant 0 : i32
    %c0_i32_1 = arith.constant 0 : i32
    return %c0_i32, %c0_i32_0 : i32, i32
  }
  func.func @transform_9(%arg0: i32) -> (i32, i32) {
    %c0_i32 = arith.constant 0 : i32
    %c0_i32_0 = arith.constant 0 : i32
    %c0_i32_1 = arith.constant 0 : i32
    return %c0_i32, %c0_i32_0 : i32, i32
  }
  func.func @transform_10(%arg0: i32) -> (i32, i32) {
    %c0_i32 = arith.constant 0 : i32
    %c0_i32_0 = arith.constant 0 : i32
    %c0_i32_1 = arith.constant 0 : i32
    return %c0_i32, %c0_i32_0 : i32, i32
  }
  func.func @transform_11(%arg0: i32) -> (i32, i32) {
    %c0_i32 = arith.constant 0 : i32
    %c0_i32_0 = arith.constant 0 : i32
    return %arg0, %c0_i32 : i32, i32
  }
}

</mosaic_0001>

<bundles_post_ra>
// kernel: tpu_custom_call.1
= control target key start
LH: loop header
LB: loop body
LE: loop exit
PB: predicated region body
PF: predicated region fallthrough
CT: control target
= control target key end

     0   :  { %16 = vsyncpa [#allocation7], 0  ;;  %s8043_s0 = inlined_call_operand.hbm [shape: f32[8,8,128], index: 0, kind: input, shape index: {}]   ;;  %s8044_s1 = inlined_call_operand.hbm [shape: f32[2,8,128], index: 1, kind: input, shape index: {}]   ;;  %s8045_s2 = inlined_call_operand.hbm [shape: f32[2,8,128], index: 2, kind: input, shape index: {}]   ;;  %s8046_s3 = inlined_call_operand.hbm [shape: f32[128,512], index: 3, kind: input, shape index: {}]   ;;  %s8047_s4 = inlined_call_operand.hbm [shape: f32[128,512], index: 4, kind: input, shape index: {}]   ;;  %s8048_s5 = inlined_call_operand.hbm [shape: f32[128,512], index: 5, kind: input, shape index: {}]   ;;  %s8049_s6 = inlined_call_operand.hbm [shape: f32[128,512], index: 6, kind: input, shape index: {}]   ;;  %s8050_s7 = inlined_call_operand.vmem [shape: f32[1,512], index: 7, kind: input, shape index: {}]   ;;  %s8051_s8 = inlined_call_operand.vmem [shape: f32[1,512], index: 8, kind: input, shape index: {}]   ;;  %s8052_s9 = inlined_call_operand.hbm [shape: f32[128,128], index: 9, kind: input, shape index: {}]   ;;  %s8053_s10 = inlined_call_operand.vmem [shape: f32[1,128], index: 10, kind: input, shape index: {}]   ;;  %s8054_s11 = inlined_call_operand.hbm [shape: f32[8,128], index: 11, kind: output, shape index: {}]  }
   0x1   :  { %17 = vsyncpa [#allocation10], 0 }
   0x2   :  { %18 = vsyncpa [#allocation13], 0 }
   0x3   :  { %19 = vsyncpa [#allocation16], 0 }
   0x4   :  { %20 = vsyncpa [#allocation19], 0 }
   0x5   :  { %21 = vsyncpa [#allocation8], 0  ;;  %s6773_s17 = smov [#allocation9]   ;;  %s6774_s19 = smov [#allocation12]  }
   0x6   :  { %s39_s18 = sshll.u32 %s6773_s17, 4  ;;  %s63_s20 = sshll.u32 %s6774_s19, 4  ;;  %s40_s18 = int_to_ptr.vmem [resolvable:$true] %s39_s18  ;;  %s6849_s20 = int_to_ptr.vmem [resolvable:$true] %s63_s20 }
   0x7   :  { %s6563_s23 = scalar_lea.hbm %s8044_s1, 256 }
   0x8   :  { %p6564_p0 = scmp.ne.s32.totalorder %s8044_s1, %s6563_s23  ;;  %p6567_p1 = scmp.lt.u32.totalorder %s6563_s23, %s8044_s1 }
   0xa   :  { %p6569_p2 = pnand %p6567_p1, %p6564_p0 }
   0xc   :  { %6572 = shalt.err (!%p6569_p2)
}
   0xd   :  { %s6573_s28 = scalar_lea.vmem %s40_s18, 256  ;;  %p6578_p4 = scmp.lt.s32.totalorder %s40_s18, %s40_s18 }
   0xe   :  { %p6574_p3 = scmp.ne.s32.totalorder %s40_s18, %s6573_s28  ;;  %p6579_p5 = scmp.lt.s32.totalorder %s6573_s28, %s6573_s28 }
  0x10   :  { %p6580_p6 = por %p6579_p5, %p6578_p4 }
  0x12   :  { %p6581_p7 = pnand %p6580_p6, %p6574_p3 }
  0x14   :  { %6584 = shalt.err (!%p6581_p7)
}
  0x15   :  { %s6775_s29 = smov 128   ;;  %s6776_s30 = smov 8  }
  0x16   :  { %45 = dma.hbm_to_vmem [thread:$0]  %s8044_s1, 256, %s40_s18, [#allocation10], %s6775_s29, %s6775_s29, %s6776_s30  }
  0x17   :  { %s6585_s16 = scalar_lea.hbm %s8046_s3, 8192 }
  0x18   :  { %p6586_p8 = scmp.ne.s32.totalorder %s8046_s3, %s6585_s16  ;;  %p6589_p9 = scmp.lt.u32.totalorder %s6585_s16, %s8046_s3 }
  0x1a   :  { %p6591_p10 = pnand %p6589_p9, %p6586_p8 }
  0x1c   :  { %6594 = shalt.err (!%p6591_p10)
}
  0x1d   :  { %s6595_s23 = scalar_lea.vmem %s6849_s20, 8192  ;;  %p6600_p12 = scmp.lt.s32.totalorder %s6849_s20, %s6849_s20 }
  0x1e   :  { %p6596_p11 = scmp.ne.s32.totalorder %s6849_s20, %s6595_s23  ;;  %p6601_p13 = scmp.lt.s32.totalorder %s6595_s23, %s6595_s23 }
  0x20   :  { %p6602_p0 = por %p6601_p13, %p6600_p12 }
  0x22   :  { %p6603_p1 = pnand %p6602_p0, %p6596_p11 }
  0x24   :  { %6606 = shalt.err (!%p6603_p1)
}
  0x25   :  { %s6777_s1 = smov 512   ;;  %s6778_s18 = smov 32  }
  0x26   :  { %69 = dma.hbm_to_vmem [thread:$0]  %s8046_s3, 8192, %s6849_s20, [#allocation13], %s6777_s1, %s6777_s1, %s6778_s18  }
  0x27   :  { %s6779_s26 = smov [#allocation15]   ;;  %s6780_s28 = smov [#allocation6]  }
  0x28   :  { %s87_s27 = sshll.u32 %s6779_s26, 4  ;;  %s27_s12 = sshll.u32 %s6780_s28, 4  ;;  %s88_s27 = int_to_ptr.vmem [resolvable:$true] %s87_s27  ;;  %s6886_s12 = int_to_ptr.vmem [resolvable:$true] %s27_s12 }
  0x29   :  { %s6607_s15 = scalar_lea.hbm %s8048_s5, 8192 }
  0x2a   :  { %p6608_p2 = scmp.ne.s32.totalorder %s8048_s5, %s6607_s15  ;;  %p6611_p3 = scmp.lt.u32.totalorder %s6607_s15, %s8048_s5 }
  0x2c   :  { %p6613_p4 = pnand %p6611_p3, %p6608_p2 }
  0x2e   :  { %6616 = shalt.err (!%p6613_p4)
}
  0x2f   :  { %s6617_s3 = scalar_lea.vmem %s88_s27, 8192  ;;  %p6622_p6 = scmp.lt.s32.totalorder %s88_s27, %s88_s27 }
  0x30   :  { %p6618_p5 = scmp.ne.s32.totalorder %s88_s27, %s6617_s3  ;;  %p6623_p7 = scmp.lt.s32.totalorder %s6617_s3, %s6617_s3 }
  0x32   :  { %p6624_p8 = por %p6623_p7, %p6622_p6 }
  0x34   :  { %p6625_p9 = pnand %p6624_p8, %p6618_p5 }
  0x36   :  { %6628 = shalt.err (!%p6625_p9)
}
  0x37   :  { %93 = dma.hbm_to_vmem [thread:$0]  %s8048_s5, 8192, %s88_s27, [#allocation16], %s6777_s1, %s6777_s1, %s6778_s18  }
  0x38   :  { %s6629_s25 = scalar_lea.hbm %s8043_s0, 1024 }
  0x39   :  { %p6630_p10 = scmp.ne.s32.totalorder %s8043_s0, %s6629_s25  ;;  %p6633_p11 = scmp.lt.u32.totalorder %s6629_s25, %s8043_s0 }
  0x3b   :  { %p6635_p12 = pnand %p6633_p11, %p6630_p10 }
  0x3d   :  { %6638 = shalt.err (!%p6635_p12)
}
  0x3e   :  { %s6639_s15 = scalar_lea.vmem %s6886_s12, 1024  ;;  %p6644_p0 = scmp.lt.s32.totalorder %s6886_s12, %s6886_s12 }
  0x3f   :  { %p6640_p13 = scmp.ne.s32.totalorder %s6886_s12, %s6639_s15  ;;  %p6645_p1 = scmp.lt.s32.totalorder %s6639_s15, %s6639_s15 }
  0x41   :  { %p6646_p2 = por %p6645_p1, %p6644_p0 }
  0x43   :  { %p6647_p3 = pnand %p6646_p2, %p6640_p13 }
  0x45   :  { %6650 = shalt.err (!%p6647_p3)
}
  0x46   :  { %33 = dma.hbm_to_vmem [thread:$0]  %s8043_s0, 1024, %s6886_s12, [#allocation7], %s6775_s29, %s6775_s29, %s6776_s30  }
  0x47   :  { %s6781_s16 = smov [#allocation11]   ;;  %s6782_s19 = smov [#allocation14]  }
  0x48   :  { %s51_s17 = sshll.u32 %s6781_s16, 4  ;;  %s75_s21 = sshll.u32 %s6782_s19, 4  ;;  %s52_s17 = int_to_ptr.vmem [resolvable:$true] %s51_s17  ;;  %s6923_s21 = int_to_ptr.vmem [resolvable:$true] %s75_s21 }
  0x49   :  { %s6651_s22 = scalar_lea.hbm %s8045_s2, 256 }
  0x4a   :  { %p6652_p4 = scmp.ne.s32.totalorder %s8045_s2, %s6651_s22  ;;  %p6655_p5 = scmp.lt.u32.totalorder %s6651_s22, %s8045_s2 }
  0x4c   :  { %p6657_p6 = pnand %p6655_p5, %p6652_p4 }
  0x4e   :  { %6660 = shalt.err (!%p6657_p6)
}
  0x4f   :  { %s6661_s0 = scalar_lea.vmem %s52_s17, 256  ;;  %p6666_p8 = scmp.lt.s32.totalorder %s52_s17, %s52_s17 }
  0x50   :  { %p6662_p7 = scmp.ne.s32.totalorder %s52_s17, %s6661_s0  ;;  %p6667_p9 = scmp.lt.s32.totalorder %s6661_s0, %s6661_s0 }
  0x52   :  { %p6668_p10 = por %p6667_p9, %p6666_p8 }
  0x54   :  { %p6669_p11 = pnand %p6668_p10, %p6662_p7 }
  0x56   :  { %6672 = shalt.err (!%p6669_p11)
}
  0x57   :  { %57 = dma.hbm_to_vmem [thread:$0]  %s8045_s2, 256, %s52_s17, [#allocation10], %s6775_s29, %s6775_s29, %s6776_s30  }
  0x58   :  { %s6673_s15 = scalar_lea.hbm %s8047_s4, 8192 }
  0x59   :  { %p6674_p12 = scmp.ne.s32.totalorder %s8047_s4, %s6673_s15  ;;  %p6677_p13 = scmp.lt.u32.totalorder %s6673_s15, %s8047_s4 }
  0x5b   :  { %p6679_p0 = pnand %p6677_p13, %p6674_p12 }
  0x5d   :  { %6682 = shalt.err (!%p6679_p0)
}
  0x5e   :  { %s6683_s3 = scalar_lea.vmem %s6923_s21, 8192  ;;  %p6688_p2 = scmp.lt.s32.totalorder %s6923_s21, %s6923_s21 }
  0x5f   :  { %p6684_p1 = scmp.ne.s32.totalorder %s6923_s21, %s6683_s3  ;;  %p6689_p3 = scmp.lt.s32.totalorder %s6683_s3, %s6683_s3 }
  0x61   :  { %p6690_p4 = por %p6689_p3, %p6688_p2 }
  0x63   :  { %p6691_p5 = pnand %p6690_p4, %p6684_p1 }
  0x65   :  { %6694 = shalt.err (!%p6691_p5)
}
  0x66   :  { %81 = dma.hbm_to_vmem [thread:$0]  %s8047_s4, 8192, %s6923_s21, [#allocation13], %s6777_s1, %s6777_s1, %s6778_s18  }
  0x67   :  { %s6783_s20 = smov [#allocation17]   ;;  %s6784_s23 = smov [#allocation18]  }
  0x68   :  { %s99_s22 = sshll.u32 %s6783_s20, 4  ;;  %s115_s24 = sshll.u32 %s6784_s23, 4  ;;  %s100_s22 = int_to_ptr.vmem [resolvable:$true] %s99_s22  ;;  %s6960_s24 = int_to_ptr.vmem [resolvable:$true] %s115_s24 }
  0x69   :  { %s6695_s0 = scalar_lea.hbm %s8049_s6, 8192 }
  0x6a   :  { %p6696_p6 = scmp.ne.s32.totalorder %s8049_s6, %s6695_s0  ;;  %p6699_p7 = scmp.lt.u32.totalorder %s6695_s0, %s8049_s6 }
  0x6c   :  { %p6701_p8 = pnand %p6699_p7, %p6696_p6 }
  0x6e   :  { %6704 = shalt.err (!%p6701_p8)
}
  0x6f   :  { %s6705_s4 = scalar_lea.vmem %s100_s22, 8192  ;;  %p6710_p10 = scmp.lt.s32.totalorder %s100_s22, %s100_s22 }
  0x70   :  { %p6706_p9 = scmp.ne.s32.totalorder %s100_s22, %s6705_s4  ;;  %p6711_p11 = scmp.lt.s32.totalorder %s6705_s4, %s6705_s4 }
  0x72   :  { %p6712_p12 = por %p6711_p11, %p6710_p10 }
  0x74   :  { %p6713_p13 = pnand %p6712_p12, %p6706_p9 }
  0x76   :  { %6716 = shalt.err (!%p6713_p13)
}
  0x77   :  { %105 = dma.hbm_to_vmem [thread:$0]  %s8049_s6, 8192, %s100_s22, [#allocation16], %s6777_s1, %s6777_s1, %s6778_s18  }
  0x78   :  { %s6717_s16 = scalar_lea.hbm %s8052_s9, 2048 }
  0x79   :  { %p6718_p0 = scmp.ne.s32.totalorder %s8052_s9, %s6717_s16  ;;  %p6721_p1 = scmp.lt.u32.totalorder %s6717_s16, %s8052_s9 }
  0x7b   :  { %p6723_p2 = pnand %p6721_p1, %p6718_p0 }
  0x7d   :  { %6726 = shalt.err (!%p6723_p2)
}
  0x7e   :  { %s6727_s20 = scalar_lea.vmem %s6960_s24, 2048  ;;  %p6732_p4 = scmp.lt.s32.totalorder %s6960_s24, %s6960_s24 }
  0x7f   :  { %p6728_p3 = scmp.ne.s32.totalorder %s6960_s24, %s6727_s20  ;;  %p6733_p5 = scmp.lt.s32.totalorder %s6727_s20, %s6727_s20 }
  0x81   :  { %p6734_p6 = por %p6733_p5, %p6732_p4 }
  0x83   :  { %p6735_p7 = pnand %p6734_p6, %p6728_p3 }
  0x85   :  { %6738 = shalt.err (!%p6735_p7)
}
  0x86   :  { %121 = dma.hbm_to_vmem [thread:$0]  %s8052_s9, 2048, %s6960_s24, [#allocation19], %s6775_s29, %s6775_s29, %s6776_s30  }
  0x87   :  { %6761 = dma.done.wait [#allocation7], 1024  }
  0x88   :  { %6762 = vsyncadd [#allocation7], 4294966272 }
  0x89   :  { %6763 = dma.done.wait [#allocation10], 512  }
  0x8a   :  { %6764 = vsyncadd [#allocation10], 4294966784 }
  0x8b   :  { %6765 = dma.done.wait [#allocation13], 16384  }
  0x8c   :  { %6766 = vsyncadd [#allocation13], 4294950912 }
  0x8d   :  { %6767 = dma.done.wait [#allocation16], 16384  }
  0x8e   :  { %6768 = vsyncadd [#allocation16], 4294950912 }
  0x8f   :  { %6769 = dma.done.wait [#allocation19], 2048  }
  0x90   :  { %6770 = vsyncadd [#allocation19], 4294965248  ;;  %v6785_v0 = vmov 0.0   ;;  %v149_v1 = vld [vmem:[#allocation12 + $0x8] sm:$0xff]  ;;  %v151_v3 = vld [vmem:[#allocation12 + $0x18] sm:$0xff]  ;;  %vm6787_vm0 = vmmov 0  }
  0x91   :  { %306 = vmatprep.mubr.f32.mxu0 %v6785_v0  ;;  %419 = vmatprep.mubr.f32.mxu1 %v6785_v0  ;;  %v153_v2 = vld [vmem:[#allocation12 + $0x28] sm:$0xff]  ;;  %v155_v5 = vld [vmem:[#allocation12 + $0x38] sm:$0xff]  ;;  %v148_v6 = vld [vmem:[#allocation12] sm:$0xff]  ;;  %s6788_s22 = smov [#allocation20]  }
  0x92   :  { %v4981_v4 = vpack.c.bf16 %v153_v2, %v149_v1  ;;  %v152_v7 = vld [vmem:[#allocation12 + $0x20] sm:$0xff]  ;;  %v5013_v8 = vpack.c.bf16 %v155_v5, %v151_v3  ;;  %v150_v10 = vld [vmem:[#allocation12 + $0x10] sm:$0xff]  ;;  %v157_v12 = vld [vmem:[#allocation12 + $0x48] sm:$0xff]  ;;  %s4867_s23 = sshll.u32 %s6788_s22, 4  ;;  %s4868_s23 = int_to_ptr.vmem [resolvable:$true] %s4867_s23 }
  0x93   :  { %v4983_v9 = vpack.c.bf16 %v152_v7, %v148_v6  ;;  %v154_v11 = vld [vmem:[#allocation12 + $0x30] sm:$0xff]  ;;  %v161_v14 = vld [vmem:[#allocation12 + $0x68] sm:$0xff]  ;;  %v159_v15 = vld [vmem:[#allocation12 + $0x58] sm:$0xff]  ;;  %s6739_s24 = scalar_lea.vmem %s4868_s23, 128  ;;  %p6744_p9 = scmp.lt.s32.totalorder %s4868_s23, %s4868_s23 }
  0x94   :  { %4982 = vmatprep.subr.bf16.mxu0 %v4981_v4  ;;  %v5015_v13 = vpack.c.bf16 %v154_v11, %v150_v10  ;;  %v163_v16 = vld [vmem:[#allocation12 + $0x78] sm:$0xff]  ;;  %5014 = vmatprep.subr.bf16.mxu1 %v5013_v8  ;;  %v4985_v17 = vpack.c.bf16 %v161_v14, %v157_v12  ;;  %v156_v19 = vld [vmem:[#allocation12 + $0x40] sm:$0xff]  ;;  %v158_v21 = vld [vmem:[#allocation12 + $0x50] sm:$0xff]  ;;  %p6740_p8 = scmp.ne.s32.totalorder %s4868_s23, %s6739_s24  ;;  %p6745_p10 = scmp.lt.s32.totalorder %s6739_s24, %s6739_s24 }
  0x95   :  { %4984 = vmatpush1.bf16.msra.mxu0 %v4983_v9  ;;  %v5017_v18 = vpack.c.bf16 %v163_v16, %v159_v15  ;;  %v160_v20 = vld [vmem:[#allocation12 + $0x60] sm:$0xff]  ;;  %v162_v23 = vld [vmem:[#allocation12 + $0x70] sm:$0xff]  ;;  %v165_v24 = vld [vmem:[#allocation12 + $0x88] sm:$0xff] }
  0x96   :  { %5016 = vmatpush1.bf16.msra.mxu1 %v5015_v13  ;;  %v4987_v22 = vpack.c.bf16 %v160_v20, %v156_v19  ;;  %v169_v25 = vld [vmem:[#allocation12 + $0xa8] sm:$0xff]  ;;  %4986 = vmatprep.subr.bf16.mxu0 %v4985_v17  ;;  %v5019_v26 = vpack.c.bf16 %v162_v23, %v158_v21  ;;  %v167_v28 = vld [vmem:[#allocation12 + $0x98] sm:$0xff]  ;;  %v164_v30 = vld [vmem:[#allocation12 + $0x80] sm:$0xff]  ;;  %p6746_p11 = por %p6745_p10, %p6744_p9 }
  0x97   :  { %5018 = vmatprep.subr.bf16.mxu1 %v5017_v18  ;;  %v4989_v27 = vpack.c.bf16 %v169_v25, %v165_v24  ;;  %v171_v29 = vld [vmem:[#allocation12 + $0xb8] sm:$0xff]  ;;  %v168_v32 = vld [vmem:[#allocation12 + $0xa0] sm:$0xff]  ;;  %v166_v33 = vld [vmem:[#allocation12 + $0x90] sm:$0xff] }
  0x98   :  { %v5021_v31 = vpack.c.bf16 %v171_v29, %v167_v28  ;;  %v170_v34 = vld [vmem:[#allocation12 + $0xb0] sm:$0xff]  ;;  %v4991_v35 = vpack.c.bf16 %v168_v32, %v164_v30  ;;  %v173_v36 = vld [vmem:[#allocation12 + $0xc8] sm:$0xff]  ;;  %v175_v38 = vld [vmem:[#allocation12 + $0xd8] sm:$0xff]  ;;  %p6747_p12 = pnand %p6746_p11, %p6740_p8 }
  0x99   :  { %4988 = vmatpush1.bf16.msra.mxu0 %v4987_v22  ;;  %v177_v37 = vld [vmem:[#allocation12 + $0xe8] sm:$0xff]  ;;  %v5023_v39 = vpack.c.bf16 %v170_v34, %v166_v33  ;;  %v179_v41 = vld [vmem:[#allocation12 + $0xf8] sm:$0xff]  ;;  %v172_v42 = vld [vmem:[#allocation12 + $0xc0] sm:$0xff] }
  0x9a   :  { %5020 = vmatpush1.bf16.msra.mxu1 %v5019_v26  ;;  %4990 = vmatprep.subr.bf16.mxu0 %v4989_v27  ;;  %v4993_v40 = vpack.c.bf16 %v177_v37, %v173_v36  ;;  %v176_v43 = vld [vmem:[#allocation12 + $0xe0] sm:$0xff]  ;;  %v5025_v44 = vpack.c.bf16 %v179_v41, %v175_v38  ;;  %v174_v45 = vld [vmem:[#allocation12 + $0xd0] sm:$0xff]  ;;  %v181_v47 = vld [vmem:[#allocation12 + $0x108] sm:$0xff] }
  0x9b   :  { %5022 = vmatprep.subr.bf16.mxu1 %v5021_v31  ;;  %v178_v46 = vld [vmem:[#allocation12 + $0xf0] sm:$0xff]  ;;  %v185_v48 = vld [vmem:[#allocation12 + $0x128] sm:$0xff]  ;;  %v183_v49 = vld [vmem:[#allocation12 + $0x118] sm:$0xff]  ;;  %v4995_v51 = vpack.c.bf16 %v176_v43, %v172_v42 }
  0x9c   :  { %v187_v50 = vld [vmem:[#allocation12 + $0x138] sm:$0xff]  ;;  %v5027_v52 = vpack.c.bf16 %v178_v46, %v174_v45  ;;  %v4997_v53 = vpack.c.bf16 %v185_v48, %v181_v47  ;;  %v180_v54 = vld [vmem:[#allocation12 + $0x100] sm:$0xff]  ;;  %v182_v56 = vld [vmem:[#allocation12 + $0x110] sm:$0xff] }
  0x9d   :  { %4992 = vmatpush1.bf16.msra.mxu0 %v4991_v35  ;;  %v184_v55 = vld [vmem:[#allocation12 + $0x120] sm:$0xff]  ;;  %v5029_v57 = vpack.c.bf16 %v187_v50, %v183_v49  ;;  %v186_v58 = vld [vmem:[#allocation12 + $0x130] sm:$0xff]  ;;  %v189_v59 = vld [vmem:[#allocation12 + $0x148] sm:$0xff] }
  0x9e   :  { %5024 = vmatpush1.bf16.msra.mxu1 %v5023_v39  ;;  %4994 = vmatprep.subr.bf16.mxu0 %v4993_v40  ;;  %v193_v60 = vld [vmem:[#allocation12 + $0x168] sm:$0xff]  ;;  %v191_v61 = vld [vmem:[#allocation12 + $0x158] sm:$0xff]  ;;  %v4999_v63 = vpack.c.bf16 %v184_v55, %v180_v54  ;;  %v5031_v1 = vpack.c.bf16 %v186_v58, %v182_v56  ;;  %v188_v3 = vld [vmem:[#allocation12 + $0x140] sm:$0xff] }
  0x9f   :  { %5026 = vmatprep.subr.bf16.mxu1 %v5025_v44  ;;  %v195_v62 = vld [vmem:[#allocation12 + $0x178] sm:$0xff]  ;;  %v5001_v2 = vpack.c.bf16 %v193_v60, %v189_v59  ;;  %v192_v4 = vld [vmem:[#allocation12 + $0x160] sm:$0xff]  ;;  %v190_v5 = vld [vmem:[#allocation12 + $0x150] sm:$0xff] }
  0xa0   :  { %v5033_v6 = vpack.c.bf16 %v195_v62, %v191_v61  ;;  %v194_v7 = vld [vmem:[#allocation12 + $0x170] sm:$0xff]  ;;  %v197_v8 = vld [vmem:[#allocation12 + $0x188] sm:$0xff]  ;;  %v199_v10 = vld [vmem:[#allocation12 + $0x198] sm:$0xff]  ;;  %v5003_v12 = vpack.c.bf16 %v192_v4, %v188_v3 }
  0xa1   :  { %4996 = vmatpush1.bf16.msra.mxu0 %v4995_v51  ;;  %v201_v9 = vld [vmem:[#allocation12 + $0x1a8] sm:$0xff]  ;;  %v203_v11 = vld [vmem:[#allocation12 + $0x1b8] sm:$0xff]  ;;  %v5035_v13 = vpack.c.bf16 %v194_v7, %v190_v5  ;;  %v196_v15 = vld [vmem:[#allocation12 + $0x180] sm:$0xff] }
  0xa2   :  { %5028 = vmatpush1.bf16.msra.mxu1 %v5027_v52  ;;  %4998 = vmatprep.subr.bf16.mxu0 %v4997_v53  ;;  %v5005_v14 = vpack.c.bf16 %v201_v9, %v197_v8  ;;  %v200_v16 = vld [vmem:[#allocation12 + $0x1a0] sm:$0xff]  ;;  %v198_v17 = vld [vmem:[#allocation12 + $0x190] sm:$0xff]  ;;  %v5037_v18 = vpack.c.bf16 %v203_v11, %v199_v10  ;;  %v205_v20 = vld [vmem:[#allocation12 + $0x1c8] sm:$0xff] }
  0xa3   :  { %5030 = vmatprep.subr.bf16.mxu1 %v5029_v57  ;;  %v202_v19 = vld [vmem:[#allocation12 + $0x1b0] sm:$0xff]  ;;  %v209_v21 = vld [vmem:[#allocation12 + $0x1e8] sm:$0xff]  ;;  %v207_v22 = vld [vmem:[#allocation12 + $0x1d8] sm:$0xff]  ;;  %v5007_v24 = vpack.c.bf16 %v200_v16, %v196_v15 }
  0xa4   :  { %v211_v23 = vld [vmem:[#allocation12 + $0x1f8] sm:$0xff]  ;;  %v5039_v25 = vpack.c.bf16 %v202_v19, %v198_v17  ;;  %v5009_v26 = vpack.c.bf16 %v209_v21, %v205_v20  ;;  %v204_v27 = vld [vmem:[#allocation12 + $0x1c0] sm:$0xff]  ;;  %v206_v29 = vld [vmem:[#allocation12 + $0x1d0] sm:$0xff] }
  0xa5   :  { %5000 = vmatpush1.bf16.msra.mxu0 %v4999_v63  ;;  %v208_v28 = vld [vmem:[#allocation12 + $0x1e0] sm:$0xff]  ;;  %v5041_v30 = vpack.c.bf16 %v211_v23, %v207_v22  ;;  %v210_v31 = vld [vmem:[#allocation12 + $0x1f0] sm:$0xff]  ;;  %v506_v32 = vld [vmem:[#allocation15 + $0x8] sm:$0xff] }
  0xa6   :  { %5032 = vmatpush1.bf16.msra.mxu1 %v5031_v1  ;;  %5002 = vmatprep.subr.bf16.mxu0 %v5001_v2  ;;  %v510_v33 = vld [vmem:[#allocation15 + $0x28] sm:$0xff]  ;;  %v508_v34 = vld [vmem:[#allocation15 + $0x18] sm:$0xff]  ;;  %v5011_v36 = vpack.c.bf16 %v208_v28, %v204_v27  ;;  %v5043_v37 = vpack.c.bf16 %v210_v31, %v206_v29  ;;  %v505_v39 = vld [vmem:[#allocation15] sm:$0xff] }
  0xa7   :  { %5034 = vmatprep.subr.bf16.mxu1 %v5033_v6  ;;  %v512_v35 = vld [vmem:[#allocation15 + $0x38] sm:$0xff]  ;;  %v6999_v38 = vpack.c.bf16 %v510_v33, %v506_v32  ;;  %v509_v40 = vld [vmem:[#allocation15 + $0x20] sm:$0xff]  ;;  %v507_v42 = vld [vmem:[#allocation15 + $0x10] sm:$0xff] }
  0xa8   :  { %v7001_v41 = vpack.c.bf16 %v512_v35, %v508_v34  ;;  %v511_v43 = vld [vmem:[#allocation15 + $0x30] sm:$0xff]  ;;  %v514_v44 = vld [vmem:[#allocation15 + $0x48] sm:$0xff]  ;;  %v213_v46 = vld [vmem:[#allocation6] sm:$0xff]  ;;  %v7003_v47 = vpack.c.bf16 %v509_v40, %v505_v39 }
  0xa9   :  { %5004 = vmatpush1.bf16.msra.mxu0 %v5003_v12  ;;  %v518_v45 = vld [vmem:[#allocation15 + $0x68] sm:$0xff]  ;;  %v516_v48 = vld [vmem:[#allocation15 + $0x58] sm:$0xff]  ;;  %v7006_v50 = vpack.c.bf16 %v511_v43, %v507_v42  ;;  %v513_v51 = vld [vmem:[#allocation15 + $0x40] sm:$0xff] }
  0xaa   :  { %5036 = vmatpush1.bf16.msra.mxu1 %v5035_v13  ;;  %5006 = vmatprep.subr.bf16.mxu0 %v5005_v14  ;;  %v520_v49 = vld [vmem:[#allocation15 + $0x78] sm:$0xff]  ;;  %v517_v52 = vld [vmem:[#allocation15 + $0x60] sm:$0xff]  ;;  %v7009_v53 = vpack.c.bf16 %v518_v45, %v514_v44  ;;  %v515_v54 = vld [vmem:[#allocation15 + $0x50] sm:$0xff] }
  0xab   :  { %5038 = vmatprep.subr.bf16.mxu1 %v5037_v18  ;;  %v519_v55 = vld [vmem:[#allocation15 + $0x70] sm:$0xff]  ;;  %v7011_v56 = vpack.c.bf16 %v520_v49, %v516_v48  ;;  %v522_v57 = vld [vmem:[#allocation15 + $0x88] sm:$0xff]  ;;  %v7014_v60 = vpack.c.bf16 %v517_v52, %v513_v51  ;;  %v524_v61 = vld [vmem:[#allocation15 + $0x98] sm:$0xff] }
  0xac   :  { %v526_v58 = vld [vmem:[#allocation15 + $0xa8] sm:$0xff]  ;;  %v528_v62 = vld [vmem:[#allocation15 + $0xb8] sm:$0xff]  ;;  %v7018_v63 = vpack.c.bf16 %v519_v55, %v515_v54  ;;  %v521_v1 = vld [vmem:[#allocation15 + $0x80] sm:$0xff] }
  0xad   :  { %5008 = vmatpush1.bf16.msra.mxu0 %v5007_v24  ;;  %v214_v59 = vld [vmem:[#allocation6 + $0x8] sm:$0xff]  ;;  %v525_v2 = vld [vmem:[#allocation15 + $0xa0] sm:$0xff]  ;;  %v7022_v3 = vpack.c.bf16 %v526_v58, %v522_v57  ;;  %v523_v4 = vld [vmem:[#allocation15 + $0x90] sm:$0xff]  ;;  %v7025_v6 = vpack.c.bf16 %v528_v62, %v524_v61 }
  0xae   :  { %5040 = vmatpush1.bf16.msra.mxu1 %v5039_v25  ;;  %5010 = vmatprep.subr.bf16.mxu0 %v5009_v26  ;;  %v527_v5 = vld [vmem:[#allocation15 + $0xb0] sm:$0xff]  ;;  %v530_v7 = vld [vmem:[#allocation15 + $0xc8] sm:$0xff]  ;;  %v7028_v10 = vpack.c.bf16 %v525_v2, %v521_v1  ;;  %v532_v11 = vld [vmem:[#allocation15 + $0xd8] sm:$0xff] }
  0xaf   :  { %5042 = vmatprep.subr.bf16.mxu1 %v5041_v30  ;;  %v534_v8 = vld [vmem:[#allocation15 + $0xe8] sm:$0xff]  ;;  %v215_v9 = vld [vmem:[#allocation6 + $0x10] sm:$0xff]  ;;  %v536_v12 = vld [vmem:[#allocation15 + $0xf8] sm:$0xff]  ;;  %v7032_v13 = vpack.c.bf16 %v527_v5, %v523_v4 }
  0xb0   :  { %v529_v14 = vld [vmem:[#allocation15 + $0xc0] sm:$0xff]  ;;  %v7036_v16 = vpack.c.bf16 %v534_v8, %v530_v7  ;;  %v531_v17 = vld [vmem:[#allocation15 + $0xd0] sm:$0xff]  ;;  %v7039_v19 = vpack.c.bf16 %v536_v12, %v532_v11  ;;  %v538_v20 = vld [vmem:[#allocation15 + $0x108] sm:$0xff] }
  0xb1   :  { %5012 = vmatpush1.bf16.msra.mxu0 %v5011_v36  ;;  %v533_v15 = vld [vmem:[#allocation15 + $0xe0] sm:$0xff]  ;;  %v535_v18 = vld [vmem:[#allocation15 + $0xf0] sm:$0xff]  ;;  %v542_v21 = vld [vmem:[#allocation15 + $0x128] sm:$0xff] }
  0xb2   :  { %5044 = vmatpush1.bf16.msra.mxu1 %v5043_v37  ;;  %5046 = vmatprep.subr.bf16.mxu0 %v6999_v38  ;;  %v216_v22 = vld [vmem:[#allocation6 + $0x18] sm:$0xff]  ;;  %v7042_v23 = vpack.c.bf16 %v533_v15, %v529_v14  ;;  %v7046_v26 = vpack.c.bf16 %v535_v18, %v531_v17  ;;  %v537_v27 = vld [vmem:[#allocation15 + $0x100] sm:$0xff]  ;;  %v7050_v29 = vpack.c.bf16 %v542_v21, %v538_v20  ;;  %v539_v30 = vld [vmem:[#allocation15 + $0x110] sm:$0xff] }
  0xb3   :  { %5078 = vmatprep.subr.bf16.mxu1 %v7001_v41  ;;  %v540_v24 = vld [vmem:[#allocation15 + $0x118] sm:$0xff]  ;;  %v541_v28 = vld [vmem:[#allocation15 + $0x120] sm:$0xff]  ;;  %v543_v31 = vld [vmem:[#allocation15 + $0x130] sm:$0xff] }
  0xb4   :  { %307 = vmatmul.mubr.f32.vlgmr.msra.gmra.mrb[0].mxu0 %v213_v46  ;;  %v544_v25 = vld [vmem:[#allocation15 + $0x138] sm:$0xff]  ;;  %v546_v33 = vld [vmem:[#allocation15 + $0x148] sm:$0xff]  ;;  %v217_v35 = vld [vmem:[#allocation6 + $0x20] sm:$0xff]  ;;  %v7056_v36 = vpack.c.bf16 %v541_v28, %v537_v27  ;;  %v7060_v40 = vpack.c.bf16 %v543_v31, %v539_v30  ;;  %v222_v30 = vlaneseq }
  0xb5   :  { %420 = vmatmul.mubr.f32.vlgmr.msra.gmra.mrb[0].mxu1 %v213_v46  ;;  %5048 = vmatpush1.bf16.msra.mxu0 %v7003_v47  ;;  %v7053_v32 = vpack.c.bf16 %v544_v25, %v540_v24  ;;  %v550_v34 = vld [vmem:[#allocation15 + $0x168] sm:$0xff]  ;;  %v548_v37 = vld [vmem:[#allocation15 + $0x158] sm:$0xff]  ;;  %v545_v42 = vld [vmem:[#allocation15 + $0x140] sm:$0xff] }
  0xb6   :  { %5080 = vmatpush1.bf16.msra.mxu1 %v7006_v50  ;;  %312 = vmatprep.mubr.f32.mxu0 %v6785_v0  ;;  %v552_v39 = vld [vmem:[#allocation15 + $0x178] sm:$0xff]  ;;  %v549_v43 = vld [vmem:[#allocation15 + $0x160] sm:$0xff]  ;;  %v7064_v44 = vpack.c.bf16 %v550_v34, %v546_v33  ;;  %v547_v45 = vld [vmem:[#allocation15 + $0x150] sm:$0xff]  ;;  %v7147_v31 = vshrl.u32 %v222_v30, 7 }
  0xb7   :  { %425 = vmatprep.mubr.f32.mxu1 %v6785_v0  ;;  %5050 = vmatprep.subr.bf16.mxu0 %v7009_v53  ;;  %v551_v46 = vld [vmem:[#allocation15 + $0x170] sm:$0xff]  ;;  %v7067_v48 = vpack.c.bf16 %v552_v39, %v548_v37  ;;  %v554_v49 = vld [vmem:[#allocation15 + $0x188] sm:$0xff]  ;;  %v7070_v54 = vpack.c.bf16 %v549_v43, %v545_v42  ;;  %v556_v55 = vld [vmem:[#allocation15 + $0x198] sm:$0xff] }
  0xb8   :  { %313 = vmatmul.mubr.f32.gmra.mrb[2].mxu0 %v214_v59  ;;  %5082 = vmatprep.subr.bf16.mxu1 %v7011_v56  ;;  %v558_v51 = vld [vmem:[#allocation15 + $0x1a8] sm:$0xff]  ;;  %v560_v57 = vld [vmem:[#allocation15 + $0x1b8] sm:$0xff]  ;;  %v7074_v58 = vpack.c.bf16 %v551_v46, %v547_v45  ;;  %v557_v61 = vld [vmem:[#allocation15 + $0x1a0] sm:$0xff]  ;;  %v224_v33 = vsub.s32 0, %v7147_v31  ;;  %v232_v39 = vsub.s32 2, %v7147_v31 }
  0xb9   :  { %426 = vmatmul.mubr.f32.gmra.mrb[2].mxu1 %v214_v59  ;;  %5052 = vmatpush1.bf16.msra.mxu0 %v7014_v60  ;;  %v218_v52 = vld [vmem:[#allocation6 + $0x28] sm:$0xff]  ;;  %v553_v59 = vld [vmem:[#allocation15 + $0x180] sm:$0xff]  ;;  %v7078_v62 = vpack.c.bf16 %v558_v51, %v554_v49  ;;  %v555_v1 = vld [vmem:[#allocation15 + $0x190] sm:$0xff]  ;;  %v7081_v4 = vpack.c.bf16 %v560_v57, %v556_v55  ;;  %v236_v57 = vsub.s32 3, %v7147_v31 }
  0xba   :  { %5084 = vmatpush1.bf16.msra.mxu1 %v7018_v63  ;;  %318 = vmatprep.mubr.f32.mxu0 %v6785_v0  ;;  %v559_v2 = vld [vmem:[#allocation15 + $0x1b0] sm:$0xff]  ;;  %v562_v5 = vld [vmem:[#allocation15 + $0x1c8] sm:$0xff]  ;;  %v564_v11 = vld [vmem:[#allocation15 + $0x1d8] sm:$0xff] }
  0xbb   :  { %431 = vmatprep.mubr.f32.mxu1 %v6785_v0  ;;  %5054 = vmatprep.subr.bf16.mxu0 %v7022_v3  ;;  %v566_v7 = vld [vmem:[#allocation15 + $0x1e8] sm:$0xff]  ;;  %v219_v8 = vld [vmem:[#allocation6 + $0x30] sm:$0xff]  ;;  %v568_v12 = vld [vmem:[#allocation15 + $0x1f8] sm:$0xff]  ;;  %v7088_v14 = vpack.c.bf16 %v559_v2, %v555_v1 }
  0xbc   :  { %319 = vmatmul.mubr.f32.gmra.mrb[4].mxu0 %v215_v9  ;;  %5086 = vmatprep.subr.bf16.mxu1 %v7025_v6  ;;  %v561_v15 = vld [vmem:[#allocation15 + $0x1c0] sm:$0xff]  ;;  %v7092_v18 = vpack.c.bf16 %v566_v7, %v562_v5  ;;  %v563_v20 = vld [vmem:[#allocation15 + $0x1d0] sm:$0xff]  ;;  %v220_v24 = vld [vmem:[#allocation6 + $0x38] sm:$0xff] }
  0xbd   :  { %432 = vmatmul.mubr.f32.gmra.mrb[4].mxu1 %v215_v9  ;;  %5056 = vmatpush1.bf16.msra.mxu0 %v7028_v10  ;;  %v7084_v9 = vpack.c.bf16 %v557_v61, %v553_v59  ;;  %v565_v17 = vld [vmem:[#allocation15 + $0x1e0] sm:$0xff]  ;;  %v567_v21 = vld [vmem:[#allocation15 + $0x1f0] sm:$0xff] }
  0xbe   :  { %5088 = vmatpush1.bf16.msra.mxu1 %v7032_v13  ;;  %324 = vmatprep.mubr.f32.mxu0 %v6785_v0  ;;  %v7098_v25 = vpack.c.bf16 %v565_v17, %v561_v15  ;;  %v7102_v27 = vpack.c.bf16 %v567_v21, %v563_v20  ;;  %v500_v28 = vld [vmem:[#allocation9] sm:$0xff]  ;;  %v502_v20 = vld [vmem:[#allocation11] sm:$0xff] }
  0xbf   :  { %437 = vmatprep.mubr.f32.mxu1 %v6785_v0  ;;  %5058 = vmatprep.subr.bf16.mxu0 %v7036_v16  ;;  %v212_v34 = vld [vmem:[%s8050_s7] sm:$0xf] }
  0xc0   :  { %325 = vmatmul.mubr.f32.gmra.mrb[6].mxu0 %v216_v22  ;;  %5090 = vmatprep.subr.bf16.mxu1 %v7039_v19  ;;  %v7156_v37 = vrot.slane %v212_v34, %v224_v33  ;;  %v7173_v61 = vrot.slane %v212_v34, %v236_v57 }
  0xc1   :  { %438 = vmatmul.mubr.f32.gmra.mrb[6].mxu1 %v216_v22  ;;  %5060 = vmatpush1.bf16.msra.mxu0 %v7042_v23  ;;  %v7095_v22 = vpack.c.bf16 %v568_v12, %v564_v11 }
  0xc2   :  { %5092 = vmatpush1.bf16.msra.mxu1 %v7046_v26  ;;  %330 = vmatprep.mubr.f32.mxu0 %v6785_v0 }
  0xc3   :  { %443 = vmatprep.mubr.f32.mxu1 %v6785_v0  ;;  %5062 = vmatprep.subr.bf16.mxu0 %v7050_v29 }
  0xc4   :  { %331 = vmatmul.mubr.f32.gmra.mrb[8].mxu0 %v217_v35  ;;  %5094 = vmatprep.subr.bf16.mxu1 %v7053_v32 }
  0xc5   :  { %444 = vmatmul.mubr.f32.gmra.mrb[8].mxu1 %v217_v35  ;;  %5064 = vmatpush1.bf16.msra.mxu0 %v7056_v36  ;;  %v228_v35 = vsub.s32 1, %v7147_v31 }
  0xc6   :  { %5096 = vmatpush1.bf16.msra.mxu1 %v7060_v40  ;;  %336 = vmatprep.mubr.f32.mxu0 %v6785_v0 }
  0xc7   :  { %449 = vmatprep.mubr.f32.mxu1 %v6785_v0  ;;  %5066 = vmatprep.subr.bf16.mxu0 %v7064_v44 }
  0xc8   :  { %337 = vmatmul.mubr.f32.gmra.mrb[10].mxu0 %v218_v52  ;;  %5098 = vmatprep.subr.bf16.mxu1 %v7067_v48 }
  0xc9   :  { %450 = vmatmul.mubr.f32.gmra.mrb[10].mxu1 %v218_v52  ;;  %5068 = vmatpush1.bf16.msra.mxu0 %v7070_v54  ;;  %v7167_v52 = vrot.slane %v212_v34, %v232_v39 }
  0xca   :  { %5100 = vmatpush1.bf16.msra.mxu1 %v7074_v58  ;;  %342 = vmatprep.mubr.f32.mxu0 %v6785_v0 }
  0xcb   :  { %455 = vmatprep.mubr.f32.mxu1 %v6785_v0  ;;  %5070 = vmatprep.subr.bf16.mxu0 %v7078_v62 }
  0xcc   :  { %343 = vmatmul.mubr.f32.gmra.mrb[12].mxu0 %v219_v8  ;;  %5102 = vmatprep.subr.bf16.mxu1 %v7081_v4 }
  0xcd   :  { %456 = vmatmul.mubr.f32.gmra.mrb[12].mxu1 %v219_v8  ;;  %5072 = vmatpush1.bf16.msra.mxu0 %v7084_v9 }
  0xce   :  { %5104 = vmatpush1.bf16.msra.mxu1 %v7088_v14  ;;  %348 = vmatprep.mubr.f32.mxu0 %v6785_v0 }
  0xcf   :  { %461 = vmatprep.mubr.f32.mxu1 %v6785_v0  ;;  %5074 = vmatprep.subr.bf16.mxu0 %v7092_v18 }
  0xd0   :  { %349 = vmatmul.mubr.f32.gmra.mrb[14].mxu0 %v220_v24  ;;  %5106 = vmatprep.subr.bf16.mxu1 %v7095_v22 }
  0xd1   :  { %462 = vmatmul.mubr.f32.gmra.mrb[14].mxu1 %v220_v24  ;;  %5076 = vmatpush1.bf16.msra.mxu0 %v7098_v25 }
  0xd2   :  { %5108 = vmatpush1.bf16.msra.mxu1 %v7102_v27  ;;  %633 = vmatprep.mubr.f32.mxu0 %v6785_v0 }
  0xd3   :  { %704 = vmatprep.mubr.f32.mxu1 %v6785_v0  ;;  %5110 = vmatprep.subr.bf16.mxu0 %v6999_v38 }
  0xd4   :  { %634 = vmatmul.mubr.f32.vlgmr.msra.gmra.mrb[0].mxu0 %v500_v28  ;;  %5142 = vmatprep.subr.bf16.mxu1 %v7001_v41 }
  0xd5   :  { %705 = vmatmul.mubr.f32.vlgmr.msra.gmra.mrb[0].mxu1 %v500_v28  ;;  %5112 = vmatpush1.bf16.msra.mxu0 %v7003_v47 }
  0xd6   :  { %5144 = vmatpush1.bf16.msra.mxu1 %v7006_v50  ;;  %5114 = vmatprep.subr.bf16.mxu0 %v7009_v53 }
  0xd7   :  { %5146 = vmatprep.subr.bf16.mxu1 %v7011_v56  ;;  %876 = vmatprep.mubr.f32.mxu0 %v6785_v0 }
  0xd8   :  { %947 = vmatprep.mubr.f32.mxu1 %v6785_v0 }
  0xd9   :  { %5116 = vmatpush1.bf16.msra.mxu0 %v7014_v60 }
  0xda   :  { %5148 = vmatpush1.bf16.msra.mxu1 %v7018_v63  ;;  %5118 = vmatprep.subr.bf16.mxu0 %v7022_v3 }
  0xdb   :  { %5150 = vmatprep.subr.bf16.mxu1 %v7025_v6 }
  0xdd   :  { %5120 = vmatpush1.bf16.msra.mxu0 %v7028_v10 }
  0xde   :  { %5152 = vmatpush1.bf16.msra.mxu1 %v7032_v13  ;;  %5122 = vmatprep.subr.bf16.mxu0 %v7036_v16 }
  0xdf   :  { %5154 = vmatprep.subr.bf16.mxu1 %v7039_v19 }
  0xe1   :  { %5124 = vmatpush1.bf16.msra.mxu0 %v7042_v23 }
  0xe2   :  { %5156 = vmatpush1.bf16.msra.mxu1 %v7046_v26  ;;  %5126 = vmatprep.subr.bf16.mxu0 %v7050_v29 }
  0xe3   :  { %5158 = vmatprep.subr.bf16.mxu1 %v7053_v32 }
  0xe5   :  { %5128 = vmatpush1.bf16.msra.mxu0 %v7056_v36 }
  0xe6   :  { %5160 = vmatpush1.bf16.msra.mxu1 %v7060_v40  ;;  %5130 = vmatprep.subr.bf16.mxu0 %v7064_v44 }
  0xe7   :  { %5162 = vmatprep.subr.bf16.mxu1 %v7067_v48 }
  0xe9   :  { %5132 = vmatpush1.bf16.msra.mxu0 %v7070_v54 }
  0xea   :  { %5164 = vmatpush1.bf16.msra.mxu1 %v7074_v58  ;;  %5134 = vmatprep.subr.bf16.mxu0 %v7078_v62 }
  0xeb   :  { %5166 = vmatprep.subr.bf16.mxu1 %v7081_v4 }
  0xed   :  { %5136 = vmatpush1.bf16.msra.mxu0 %v7084_v9 }
  0xee   :  { %5168 = vmatpush1.bf16.msra.mxu1 %v7088_v14  ;;  %5138 = vmatprep.subr.bf16.mxu0 %v7092_v18 }
  0xef   :  { %5170 = vmatprep.subr.bf16.mxu1 %v7095_v22 }
  0xf1   :  { %5140 = vmatpush1.bf16.msra.mxu0 %v7098_v25 }
  0xf2   :  { %5172 = vmatpush1.bf16.msra.mxu1 %v7102_v27  ;;  %5174 = vmatprep.subr.bf16.mxu0 %v6999_v38  ;;  %v7160_v38 = vrot.slane %v212_v34, %v228_v35 }
  0xf3   :  { %5206 = vmatprep.subr.bf16.mxu1 %v7001_v41 }
 0x1a7   :  { %v635_v41 = vpop.f32.mrb[0].mxu0 }
 0x1a8   :  { %v6157_v42 = vadd.f32 %v635_v41, %v7156_v37  ;;  %v706_v43 = vpop.f32.mrb[0].mxu1  ;;  %v637_v45 = vpop.f32.mrb[1].mxu0 }
 0x1a9   :  { %v6158_v46 = vadd.f32 %v637_v45, %v7160_v38  ;;  %v708_v49 = vpop.f32.mrb[1].mxu1  ;;  %v6173_v59 = vadd.f32 %v706_v43, %v7167_v52 }
 0x1aa   :  { %v4880_v51 = vmul.f32 -1.442695, %v6157_v42  ;;  %v6174_v2 = vadd.f32 %v708_v49, %v7173_v61 }
 0x1ab   :  { %v4881_v55 = vmul.f32 -1.442695, %v6158_v46  ;;  %v4882_v1 = vmul.f32 -1.442695, %v6173_v59 }
 0x1ac   :  { %6301 = vpow2.f32 %v4880_v51 }
 0x1ad   :  { %6303 = vpow2.f32 %v4881_v55 }
 0x1ae   :  { %6305 = vpow2.f32 %v4882_v1 }
 0x1af   :  { %6307 = vtanh.f32 %v6174_v2 }
 0x1b6   :  { %v6302_v5 = vpop.eup %6301 }
 0x1b7   :  { %v728_v7 = vadd.f32 1.0, %v6302_v5  ;;  %v6304_v8 = vpop.eup %6303 }
 0x1b8   :  { %v729_v11 = vadd.f32 1.0, %v6304_v8  ;;  %v6306_v12 = vpop.eup %6305 }
 0x1b9   :  { %6309 = vrcp.f32 %v728_v7  ;;  %v6308_v15 = vpop.eup %6307  ;;  %v730_v28 = vadd.f32 1.0, %v6306_v12 }
 0x1ba   :  { %6311 = vrcp.f32 %v729_v11 }
 0x1bb   :  { %6313 = vrcp.f32 %v730_v28 }
 0x1c3   :  { %v6310_v17 = vpop.eup %6309 }
 0x1c4   :  { %v740_v21 = vmul.f32 %v6310_v17, %v6308_v15  ;;  %v6312_v24 = vpop.eup %6311 }
 0x1c5   :  { %v739_v30 = vmul.f32 %v6312_v24, %v502_v20  ;;  %v6314_v41 = vpop.eup %6313 }
 0x1c7   :  { %v7176_v34 = vadd.f32 %v740_v21, %v739_v30 }
 0x1c9   :  { %6315 = vtanh.f32 %v7176_v34 }
 0x1d3   :  { %v6316_v42 = vpop.eup %6315 }
 0x1d4   :  { %v7179_v43 = vmul.f32 %v6316_v42, %v6314_v41  ;;  %v1239_v41 = vld [vmem:[#allocation15 + $0x8] sm:$0xff] }
 0x1d5   :  { %v1243_v42 = vld [vmem:[#allocation15 + $0x28] sm:$0xff] }
 0x1d6   :  { %877 = vmatmul.mubr.f32.vlgmr.msra.gmra.mrb[2].mxu0 %v7179_v43  ;;  %948 = vmatmul.mubr.f32.vlgmr.msra.gmra.mrb[2].mxu1 %v7179_v43 }
 0x1d7   :  { %5176 = vmatpush1.bf16.msra.mxu0 %v7003_v47  ;;  %5208 = vmatpush1.bf16.msra.mxu1 %v7006_v50 }
 0x1d8   :  { %5178 = vmatprep.subr.bf16.mxu0 %v7009_v53  ;;  %5210 = vmatprep.subr.bf16.mxu1 %v7011_v56 }
 0x1d9   :  { %1121 = vmatprep.mubr.f32.mxu0 %v6785_v0  ;;  %1192 = vmatprep.mubr.f32.mxu1 %v6785_v0 }
 0x1db   :  { %5180 = vmatpush1.bf16.msra.mxu0 %v7014_v60  ;;  %5212 = vmatpush1.bf16.msra.mxu1 %v7018_v63 }
 0x1dc   :  { %5182 = vmatprep.subr.bf16.mxu0 %v7022_v3  ;;  %5214 = vmatprep.subr.bf16.mxu1 %v7025_v6 }
 0x1df   :  { %5184 = vmatpush1.bf16.msra.mxu0 %v7028_v10  ;;  %5216 = vmatpush1.bf16.msra.mxu1 %v7032_v13 }
 0x1e0   :  { %5186 = vmatprep.subr.bf16.mxu0 %v7036_v16  ;;  %5218 = vmatprep.subr.bf16.mxu1 %v7039_v19 }
 0x1e3   :  { %5188 = vmatpush1.bf16.msra.mxu0 %v7042_v23  ;;  %5220 = vmatpush1.bf16.msra.mxu1 %v7046_v26 }
 0x1e4   :  { %5190 = vmatprep.subr.bf16.mxu0 %v7050_v29  ;;  %5222 = vmatprep.subr.bf16.mxu1 %v7053_v32 }
 0x1e7   :  { %5192 = vmatpush1.bf16.msra.mxu0 %v7056_v36  ;;  %5224 = vmatpush1.bf16.msra.mxu1 %v7060_v40 }
 0x1e8   :  { %5194 = vmatprep.subr.bf16.mxu0 %v7064_v44  ;;  %5226 = vmatprep.subr.bf16.mxu1 %v7067_v48 }
 0x1eb   :  { %5196 = vmatpush1.bf16.msra.mxu0 %v7070_v54  ;;  %5228 = vmatpush1.bf16.msra.mxu1 %v7074_v58 }
 0x1ec   :  { %5198 = vmatprep.subr.bf16.mxu0 %v7078_v62  ;;  %5230 = vmatprep.subr.bf16.mxu1 %v7081_v4 }
 0x1ef   :  { %5200 = vmatpush1.bf16.msra.mxu0 %v7084_v9  ;;  %5232 = vmatpush1.bf16.msra.mxu1 %v7088_v14 }
 0x1f0   :  { %5202 = vmatprep.subr.bf16.mxu0 %v7092_v18  ;;  %5234 = vmatprep.subr.bf16.mxu1 %v7095_v22 }
 0x1f3   :  { %5204 = vmatpush1.bf16.msra.mxu0 %v7098_v25  ;;  %5236 = vmatpush1.bf16.msra.mxu1 %v7102_v27 }
 0x2a9   :  { %v878_v47 = vpop.f32.mrb[2].mxu0  ;;  %v949_v50 = vpop.f32.mrb[2].mxu1 }
 0x2aa   :  { %v6159_v53 = vadd.f32 %v878_v47, %v7156_v37  ;;  %v880_v56 = vpop.f32.mrb[3].mxu0  ;;  %v951_v60 = vpop.f32.mrb[3].mxu1  ;;  %v6175_v49 = vadd.f32 %v949_v50, %v7167_v52  ;;  %v7229_v47 = vpack.c.bf16 %v1243_v42, %v1239_v41  ;;  %v1245_v50 = vld [vmem:[#allocation15 + $0x38] sm:$0xff] }
 0x2ab   :  { %v6160_v63 = vadd.f32 %v880_v56, %v7160_v38  ;;  %v6176_v51 = vadd.f32 %v951_v60, %v7173_v61  ;;  %v1242_v56 = vld [vmem:[#allocation15 + $0x20] sm:$0xff]  ;;  %v1502_v41 = vld [vmem:[#allocation15 + $0x98] sm:$0xff] }
 0x2ac   :  { %v4883_v45 = vmul.f32 -1.442695, %v6159_v53  ;;  %v4885_v55 = vmul.f32 -1.442695, %v6175_v49  ;;  %v1238_v53 = vld [vmem:[#allocation15] sm:$0xff]  ;;  %5238 = vmatprep.subr.bf16.mxu0 %v7229_v47 }
 0x2ad   :  { %v4884_v46 = vmul.f32 -1.442695, %v6160_v63  ;;  %v7233_v63 = vpack.c.bf16 %v1242_v56, %v1238_v53  ;;  %v1503_v53 = vld [vmem:[#allocation15 + $0xa0] sm:$0xff] }
 0x2ae   :  { %6317 = vpow2.f32 %v4883_v45  ;;  %v1240_v45 = vld [vmem:[#allocation15 + $0x10] sm:$0xff] }
 0x2af   :  { %6319 = vpow2.f32 %v4884_v46  ;;  %v1244_v46 = vld [vmem:[#allocation15 + $0x30] sm:$0xff] }
 0x2b0   :  { %6321 = vtanh.f32 %v6176_v51  ;;  %v7236_v49 = vpack.c.bf16 %v1244_v46, %v1240_v45  ;;  %v1247_v51 = vld [vmem:[#allocation15 + $0x48] sm:$0xff]  ;;  %v1501_v46 = vld [vmem:[#allocation15 + $0x90] sm:$0xff] }
 0x2b1   :  { %6323 = vpow2.f32 %v4885_v55  ;;  %v1251_v55 = vld [vmem:[#allocation15 + $0x68] sm:$0xff] }
 0x2b8   :  { %v6318_v59 = vpop.eup %6317 }
 0x2b9   :  { %v972_v1 = vadd.f32 1.0, %v6318_v59  ;;  %v6320_v2 = vpop.eup %6319  ;;  %v1249_v59 = vld [vmem:[#allocation15 + $0x58] sm:$0xff] }
 0x2ba   :  { %v973_v5 = vadd.f32 1.0, %v6320_v2  ;;  %v6322_v7 = vpop.eup %6321  ;;  %v1253_v2 = vld [vmem:[#allocation15 + $0x78] sm:$0xff] }
 0x2bb   :  { %6325 = vrcp.f32 %v972_v1  ;;  %v6324_v8 = vpop.eup %6323  ;;  %v7241_v1 = vpack.c.bf16 %v1251_v55, %v1247_v51  ;;  %v1505_v51 = vld [vmem:[#allocation15 + $0xb0] sm:$0xff] }
 0x2bc   :  { %6327 = vrcp.f32 %v973_v5  ;;  %v974_v17 = vadd.f32 1.0, %v6324_v8  ;;  %v1246_v5 = vld [vmem:[#allocation15 + $0x40] sm:$0xff]  ;;  %v7243_v8 = vpack.c.bf16 %v1253_v2, %v1249_v59  ;;  %v7306_v55 = vpack.c.bf16 %v1505_v51, %v1501_v46  ;;  %v1508_v59 = vld [vmem:[#allocation15 + $0xc8] sm:$0xff] }
 0x2bd   :  { %v1512_v2 = vld [vmem:[#allocation15 + $0xe8] sm:$0xff] }
 0x2be   :  { %6329 = vrcp.f32 %v974_v17  ;;  %v1536_v51 = vld [vmem:[#allocation15 + $0x1a8] sm:$0xff] }
 0x2c5   :  { %v6326_v11 = vpop.eup %6325 }
 0x2c6   :  { %v984_v12 = vmul.f32 %v6326_v11, %v6322_v7  ;;  %v6328_v15 = vpop.eup %6327  ;;  %v1250_v7 = vld [vmem:[#allocation15 + $0x60] sm:$0xff] }
 0x2c7   :  { %v983_v20 = vmul.f32 %v6328_v15, %v7176_v34  ;;  %v1241_v34 = vld [vmem:[#allocation15 + $0x18] sm:$0xff]  ;;  %v7245_v11 = vpack.c.bf16 %v1250_v7, %v1246_v5  ;;  %v1252_v15 = vld [vmem:[#allocation15 + $0x70] sm:$0xff]  ;;  %v7311_v7 = vpack.c.bf16 %v1512_v2, %v1508_v59 }
 0x2c8   :  { %v6330_v24 = vpop.eup %6329  ;;  %v7231_v60 = vpack.c.bf16 %v1245_v50, %v1241_v34  ;;  %v1506_v34 = vld [vmem:[#allocation15 + $0xb8] sm:$0xff]  ;;  %v1499_v50 = vld [vmem:[#allocation15 + $0x80] sm:$0xff] }
 0x2c9   :  { %v7220_v21 = vadd.f32 %v984_v12, %v983_v20  ;;  %v1248_v12 = vld [vmem:[#allocation15 + $0x50] sm:$0xff]  ;;  %v7301_v56 = vpack.c.bf16 %v1506_v34, %v1502_v41  ;;  %v7303_v45 = vpack.c.bf16 %v1503_v53, %v1499_v50  ;;  %v1510_v5 = vld [vmem:[#allocation15 + $0xd8] sm:$0xff]  ;;  %v1532_v53 = vld [vmem:[#allocation15 + $0x188] sm:$0xff] }
 0x2ca   :  { %5270 = vmatprep.subr.bf16.mxu1 %v7231_v60  ;;  %v7248_v17 = vpack.c.bf16 %v1252_v15, %v1248_v12  ;;  %v1514_v12 = vld [vmem:[#allocation15 + $0xf8] sm:$0xff]  ;;  %v1507_v15 = vld [vmem:[#allocation15 + $0xc0] sm:$0xff]  ;;  %v1525_v34 = vld [vmem:[#allocation15 + $0x150] sm:$0xff] }
 0x2cb   :  { %6331 = vtanh.f32 %v7220_v21  ;;  %v1529_v50 = vld [vmem:[#allocation15 + $0x170] sm:$0xff]  ;;  %v1534_v59 = vld [vmem:[#allocation15 + $0x198] sm:$0xff] }
 0x2cc   :  { %v7342_v46 = vpack.c.bf16 %v1529_v50, %v1525_v34  ;;  %v1538_v2 = vld [vmem:[#allocation15 + $0x1b8] sm:$0xff] }
 0x2d5   :  { %v6332_v28 = vpop.eup %6331 }
 0x2d6   :  { %v7223_v30 = vmul.f32 %v6332_v28, %v6330_v24  ;;  %v1504_v28 = vld [vmem:[#allocation15 + $0xa8] sm:$0xff] }
 0x2d8   :  { %1122 = vmatmul.mubr.f32.vlgmr.msra.gmra.mrb[4].mxu0 %v7223_v30  ;;  %1193 = vmatmul.mubr.f32.vlgmr.msra.gmra.mrb[4].mxu1 %v7223_v30 }
 0x2d9   :  { %1366 = vmatprep.mubr.f32.mxu0 %v6785_v0  ;;  %1437 = vmatprep.mubr.f32.mxu1 %v6785_v0 }
 0x2da   :  { %5240 = vmatpush1.bf16.msra.mxu0 %v7233_v63  ;;  %5272 = vmatpush1.bf16.msra.mxu1 %v7236_v49 }
 0x2db   :  { %5242 = vmatprep.subr.bf16.mxu0 %v7241_v1  ;;  %5274 = vmatprep.subr.bf16.mxu1 %v7243_v8 }
 0x2de   :  { %5244 = vmatpush1.bf16.msra.mxu0 %v7245_v11  ;;  %5276 = vmatpush1.bf16.msra.mxu1 %v7248_v17 }
 0x2df   :  { %5246 = vmatprep.subr.bf16.mxu0 %v7022_v3  ;;  %5278 = vmatprep.subr.bf16.mxu1 %v7025_v6 }
 0x2e2   :  { %5248 = vmatpush1.bf16.msra.mxu0 %v7028_v10  ;;  %5280 = vmatpush1.bf16.msra.mxu1 %v7032_v13 }
 0x2e3   :  { %5250 = vmatprep.subr.bf16.mxu0 %v7036_v16  ;;  %5282 = vmatprep.subr.bf16.mxu1 %v7039_v19 }
 0x2e6   :  { %5252 = vmatpush1.bf16.msra.mxu0 %v7042_v23  ;;  %5284 = vmatpush1.bf16.msra.mxu1 %v7046_v26 }
 0x2e7   :  { %5254 = vmatprep.subr.bf16.mxu0 %v7050_v29  ;;  %5286 = vmatprep.subr.bf16.mxu1 %v7053_v32 }
 0x2ea   :  { %5256 = vmatpush1.bf16.msra.mxu0 %v7056_v36  ;;  %5288 = vmatpush1.bf16.msra.mxu1 %v7060_v40 }
 0x2eb   :  { %5258 = vmatprep.subr.bf16.mxu0 %v7064_v44  ;;  %5290 = vmatprep.subr.bf16.mxu1 %v7067_v48 }
 0x2ee   :  { %5260 = vmatpush1.bf16.msra.mxu0 %v7070_v54  ;;  %5292 = vmatpush1.bf16.msra.mxu1 %v7074_v58 }
 0x2ef   :  { %5262 = vmatprep.subr.bf16.mxu0 %v7078_v62  ;;  %5294 = vmatprep.subr.bf16.mxu1 %v7081_v4 }
 0x2f2   :  { %5264 = vmatpush1.bf16.msra.mxu0 %v7084_v9  ;;  %5296 = vmatpush1.bf16.msra.mxu1 %v7088_v14 }
 0x2f3   :  { %5266 = vmatprep.subr.bf16.mxu0 %v7092_v18  ;;  %5298 = vmatprep.subr.bf16.mxu1 %v7095_v22 }
 0x2f6   :  { %5268 = vmatpush1.bf16.msra.mxu0 %v7098_v25  ;;  %5300 = vmatpush1.bf16.msra.mxu1 %v7102_v27 }
 0x2f7   :  { %5302 = vmatprep.subr.bf16.mxu0 %v7229_v47  ;;  %5334 = vmatprep.subr.bf16.mxu1 %v7231_v60 }
 0x3ab   :  { %v1123_v3 = vpop.f32.mrb[4].mxu0  ;;  %v1194_v6 = vpop.f32.mrb[4].mxu1 }
 0x3ac   :  { %v6161_v10 = vadd.f32 %v1123_v3, %v7156_v37  ;;  %v1125_v13 = vpop.f32.mrb[5].mxu0  ;;  %v1196_v16 = vpop.f32.mrb[5].mxu1  ;;  %v6177_v29 = vadd.f32 %v1194_v6, %v7167_v52  ;;  %v1511_v3 = vld [vmem:[#allocation15 + $0xe0] sm:$0xff]  ;;  %v7313_v6 = vpack.c.bf16 %v1514_v12, %v1510_v5  ;;  %v7346_v5 = vpack.c.bf16 %v1536_v51, %v1532_v53 }
 0x3ad   :  { %v6162_v19 = vadd.f32 %v1125_v13, %v7160_v38  ;;  %v6178_v32 = vadd.f32 %v1196_v16, %v7173_v61  ;;  %v1509_v13 = vld [vmem:[#allocation15 + $0xd0] sm:$0xff]  ;;  %v7348_v12 = vpack.c.bf16 %v1538_v2, %v1534_v59 }
 0x3ae   :  { %v4886_v23 = vmul.f32 -1.442695, %v6161_v10  ;;  %v4888_v36 = vmul.f32 -1.442695, %v6177_v29  ;;  %v7315_v10 = vpack.c.bf16 %v1511_v3, %v1507_v15  ;;  %v1513_v16 = vld [vmem:[#allocation15 + $0xf0] sm:$0xff]  ;;  %v1518_v29 = vld [vmem:[#allocation15 + $0x118] sm:$0xff] }
 0x3af   :  { %v4887_v26 = vmul.f32 -1.442695, %v6162_v19  ;;  %v7318_v19 = vpack.c.bf16 %v1513_v16, %v1509_v13  ;;  %v1531_v15 = vld [vmem:[#allocation15 + $0x180] sm:$0xff]  ;;  %v1533_v13 = vld [vmem:[#allocation15 + $0x190] sm:$0xff] }
 0x3b0   :  { %6333 = vpow2.f32 %v4886_v23  ;;  %v1516_v23 = vld [vmem:[#allocation15 + $0x108] sm:$0xff]  ;;  %v1535_v3 = vld [vmem:[#allocation15 + $0x1a0] sm:$0xff] }
 0x3b1   :  { %6335 = vpow2.f32 %v4887_v26  ;;  %v1520_v26 = vld [vmem:[#allocation15 + $0x128] sm:$0xff]  ;;  %v7351_v16 = vpack.c.bf16 %v1535_v3, %v1531_v15 }
 0x3b2   :  { %6337 = vtanh.f32 %v6178_v32  ;;  %v7323_v32 = vpack.c.bf16 %v1520_v26, %v1516_v23  ;;  %v1537_v23 = vld [vmem:[#allocation15 + $0x1b0] sm:$0xff]  ;;  %v1540_v26 = vld [vmem:[#allocation15 + $0x1c8] sm:$0xff] }
 0x3b3   :  { %6339 = vpow2.f32 %v4888_v36  ;;  %v1522_v36 = vld [vmem:[#allocation15 + $0x138] sm:$0xff] }
 0x3ba   :  { %v6334_v40 = vpop.eup %6333 }
 0x3bb   :  { %v1217_v44 = vadd.f32 1.0, %v6334_v40  ;;  %v6336_v48 = vpop.eup %6335  ;;  %v1515_v40 = vld [vmem:[#allocation15 + $0x100] sm:$0xff] }
 0x3bc   :  { %v1218_v54 = vadd.f32 1.0, %v6336_v48  ;;  %v6338_v58 = vpop.eup %6337  ;;  %v7325_v48 = vpack.c.bf16 %v1522_v36, %v1518_v29  ;;  %v1544_v29 = vld [vmem:[#allocation15 + $0x1e8] sm:$0xff]  ;;  %v7355_v36 = vpack.c.bf16 %v1537_v23, %v1533_v13 }
 0x3bd   :  { %6341 = vrcp.f32 %v1217_v44  ;;  %v6340_v62 = vpop.eup %6339  ;;  %v1519_v44 = vld [vmem:[#allocation15 + $0x120] sm:$0xff] }
 0x3be   :  { %6343 = vrcp.f32 %v1218_v54  ;;  %v1219_v18 = vadd.f32 1.0, %v6340_v62  ;;  %v7327_v54 = vpack.c.bf16 %v1519_v44, %v1515_v40  ;;  %v1521_v62 = vld [vmem:[#allocation15 + $0x130] sm:$0xff]  ;;  %v7357_v40 = vpack.c.bf16 %v1544_v29, %v1540_v26  ;;  %v1542_v44 = vld [vmem:[#allocation15 + $0x1d8] sm:$0xff] }
 0x3c0   :  { %6345 = vrcp.f32 %v1219_v18  ;;  %v1526_v18 = vld [vmem:[#allocation15 + $0x158] sm:$0xff] }
 0x3c7   :  { %v6342_v4 = vpop.eup %6341 }
 0x3c8   :  { %v1229_v9 = vmul.f32 %v6342_v4, %v6338_v58  ;;  %v6344_v14 = vpop.eup %6343  ;;  %v1517_v58 = vld [vmem:[#allocation15 + $0x110] sm:$0xff] }
 0x3c9   :  { %v1228_v22 = vmul.f32 %v6344_v14, %v7220_v21  ;;  %v1500_v21 = vld [vmem:[#allocation15 + $0x88] sm:$0xff]  ;;  %v7330_v4 = vpack.c.bf16 %v1521_v62, %v1517_v58  ;;  %v1546_v58 = vld [vmem:[#allocation15 + $0x1f8] sm:$0xff]  ;;  %v1539_v62 = vld [vmem:[#allocation15 + $0x1c0] sm:$0xff] }
 0x3ca   :  { %v6346_v27 = vpop.eup %6345  ;;  %v7299_v42 = vpack.c.bf16 %v1504_v28, %v1500_v21  ;;  %v1528_v14 = vld [vmem:[#allocation15 + $0x168] sm:$0xff]  ;;  %v1527_v21 = vld [vmem:[#allocation15 + $0x160] sm:$0xff] }
 0x3cb   :  { %v7284_v25 = vadd.f32 %v1229_v9, %v1228_v22  ;;  %v1524_v9 = vld [vmem:[#allocation15 + $0x148] sm:$0xff] }
 0x3cc   :  { %v7335_v22 = vpack.c.bf16 %v1528_v14, %v1524_v9  ;;  %v7359_v9 = vpack.c.bf16 %v1546_v58, %v1542_v44  ;;  %v1543_v14 = vld [vmem:[#allocation15 + $0x1e0] sm:$0xff] }
 0x3cd   :  { %6347 = vtanh.f32 %v7284_v25 }
 0x3d7   :  { %v6348_v20 = vpop.eup %6347 }
 0x3d8   :  { %v7287_v24 = vmul.f32 %v6348_v20, %v6346_v27  ;;  %v1530_v27 = vld [vmem:[#allocation15 + $0x178] sm:$0xff]  ;;  %v1523_v20 = vld [vmem:[#allocation15 + $0x140] sm:$0xff] }
 0x3d9   :  { %v7337_v28 = vpack.c.bf16 %v1530_v27, %v1526_v18  ;;  %v7339_v41 = vpack.c.bf16 %v1527_v21, %v1523_v20  ;;  %v1541_v18 = vld [vmem:[#allocation15 + $0x1d0] sm:$0xff]  ;;  %v7362_v20 = vpack.c.bf16 %v1543_v14, %v1539_v62 }
 0x3da   :  { %1367 = vmatmul.mubr.f32.vlgmr.msra.gmra.mrb[6].mxu0 %v7287_v24  ;;  %1438 = vmatmul.mubr.f32.vlgmr.msra.gmra.mrb[6].mxu1 %v7287_v24  ;;  %v1545_v27 = vld [vmem:[#allocation15 + $0x1f0] sm:$0xff] }
 0x3db   :  { %5304 = vmatpush1.bf16.msra.mxu0 %v7233_v63  ;;  %5336 = vmatpush1.bf16.msra.mxu1 %v7236_v49  ;;  %v7366_v21 = vpack.c.bf16 %v1545_v27, %v1541_v18 }
 0x3dc   :  { %5306 = vmatprep.subr.bf16.mxu0 %v7241_v1  ;;  %5338 = vmatprep.subr.bf16.mxu1 %v7243_v8 }
 0x3dd   :  { %1611 = vmatprep.mubr.f32.mxu0 %v6785_v0  ;;  %1682 = vmatprep.mubr.f32.mxu1 %v6785_v0 }
 0x3df   :  { %5308 = vmatpush1.bf16.msra.mxu0 %v7245_v11  ;;  %5340 = vmatpush1.bf16.msra.mxu1 %v7248_v17 }
 0x3e0   :  { %5310 = vmatprep.subr.bf16.mxu0 %v7299_v42  ;;  %5342 = vmatprep.subr.bf16.mxu1 %v7301_v56 }
 0x3e3   :  { %5312 = vmatpush1.bf16.msra.mxu0 %v7303_v45  ;;  %5344 = vmatpush1.bf16.msra.mxu1 %v7306_v55 }
 0x3e4   :  { %5314 = vmatprep.subr.bf16.mxu0 %v7311_v7  ;;  %5346 = vmatprep.subr.bf16.mxu1 %v7313_v6 }
 0x3e7   :  { %5316 = vmatpush1.bf16.msra.mxu0 %v7315_v10  ;;  %5348 = vmatpush1.bf16.msra.mxu1 %v7318_v19 }
 0x3e8   :  { %5318 = vmatprep.subr.bf16.mxu0 %v7323_v32  ;;  %5350 = vmatprep.subr.bf16.mxu1 %v7325_v48 }
 0x3eb   :  { %5320 = vmatpush1.bf16.msra.mxu0 %v7327_v54  ;;  %5352 = vmatpush1.bf16.msra.mxu1 %v7330_v4 }
 0x3ec   :  { %5322 = vmatprep.subr.bf16.mxu0 %v7335_v22  ;;  %5354 = vmatprep.subr.bf16.mxu1 %v7337_v28 }
 0x3ef   :  { %5324 = vmatpush1.bf16.msra.mxu0 %v7339_v41  ;;  %5356 = vmatpush1.bf16.msra.mxu1 %v7342_v46 }
 0x3f0   :  { %5326 = vmatprep.subr.bf16.mxu0 %v7346_v5  ;;  %5358 = vmatprep.subr.bf16.mxu1 %v7348_v12 }
 0x3f3   :  { %5328 = vmatpush1.bf16.msra.mxu0 %v7351_v16  ;;  %5360 = vmatpush1.bf16.msra.mxu1 %v7355_v36 }
 0x3f4   :  { %5330 = vmatprep.subr.bf16.mxu0 %v7357_v40  ;;  %5362 = vmatprep.subr.bf16.mxu1 %v7359_v9 }
 0x3f7   :  { %5332 = vmatpush1.bf16.msra.mxu0 %v7362_v20  ;;  %5364 = vmatpush1.bf16.msra.mxu1 %v7366_v21 }
 0x3f8   :  { %5366 = vmatprep.subr.bf16.mxu0 %v7229_v47  ;;  %5398 = vmatprep.subr.bf16.mxu1 %v7231_v60 }
 0x4ad   :  { %v1368_v34 = vpop.f32.mrb[6].mxu0  ;;  %v1439_v50 = vpop.f32.mrb[6].mxu1 }
 0x4ae   :  { %v6163_v53 = vadd.f32 %v1368_v34, %v7156_v37  ;;  %v1370_v51 = vpop.f32.mrb[7].mxu0  ;;  %v1441_v59 = vpop.f32.mrb[7].mxu1  ;;  %v6179_v13 = vadd.f32 %v1439_v50, %v7167_v52 }
 0x4af   :  { %v6164_v2 = vadd.f32 %v1370_v51, %v7160_v38  ;;  %v6180_v23 = vadd.f32 %v1441_v59, %v7173_v61 }
 0x4b0   :  { %v4889_v15 = vmul.f32 -1.442695, %v6163_v53  ;;  %v4891_v26 = vmul.f32 -1.442695, %v6179_v13 }
 0x4b1   :  { %v4890_v3 = vmul.f32 -1.442695, %v6164_v2 }
 0x4b2   :  { %6349 = vpow2.f32 %v4889_v15 }
 0x4b3   :  { %6351 = vpow2.f32 %v4890_v3 }
 0x4b4   :  { %6353 = vtanh.f32 %v6180_v23 }
 0x4b5   :  { %6355 = vpow2.f32 %v4891_v26 }
 0x4bc   :  { %v6350_v29 = vpop.eup %6349 }
 0x4bd   :  { %v1462_v44 = vadd.f32 1.0, %v6350_v29  ;;  %v6352_v58 = vpop.eup %6351 }
 0x4be   :  { %v1463_v62 = vadd.f32 1.0, %v6352_v58  ;;  %v6354_v14 = vpop.eup %6353 }
 0x4bf   :  { %6357 = vrcp.f32 %v1462_v44  ;;  %v6356_v18 = vpop.eup %6355 }
 0x4c0   :  { %6359 = vrcp.f32 %v1463_v62  ;;  %v1464_v51 = vadd.f32 1.0, %v6356_v18 }
 0x4c2   :  { %6361 = vrcp.f32 %v1464_v51 }
 0x4c9   :  { %v6358_v27 = vpop.eup %6357 }
 0x4ca   :  { %v1474_v34 = vmul.f32 %v6358_v27, %v6354_v14  ;;  %v6360_v53 = vpop.eup %6359 }
 0x4cb   :  { %v1473_v2 = vmul.f32 %v6360_v53, %v7284_v25 }
 0x4cc   :  { %v6362_v59 = vpop.eup %6361 }
 0x4cd   :  { %v7378_v50 = vadd.f32 %v1474_v34, %v1473_v2 }
 0x4cf   :  { %6363 = vtanh.f32 %v7378_v50 }
 0x4d9   :  { %v6364_v15 = vpop.eup %6363 }
 0x4da   :  { %v7381_v3 = vmul.f32 %v6364_v15, %v6362_v59 }
 0x4dc   :  { %1612 = vmatmul.mubr.f32.vlgmr.msra.gmra.mrb[8].mxu0 %v7381_v3  ;;  %1683 = vmatmul.mubr.f32.vlgmr.msra.gmra.mrb[8].mxu1 %v7381_v3 }
 0x4dd   :  { %5368 = vmatpush1.bf16.msra.mxu0 %v7233_v63  ;;  %5400 = vmatpush1.bf16.msra.mxu1 %v7236_v49 }
 0x4de   :  { %5370 = vmatprep.subr.bf16.mxu0 %v7241_v1  ;;  %5402 = vmatprep.subr.bf16.mxu1 %v7243_v8 }
 0x4df   :  { %1856 = vmatprep.mubr.f32.mxu0 %v6785_v0  ;;  %1927 = vmatprep.mubr.f32.mxu1 %v6785_v0 }
 0x4e1   :  { %5372 = vmatpush1.bf16.msra.mxu0 %v7245_v11  ;;  %5404 = vmatpush1.bf16.msra.mxu1 %v7248_v17 }
 0x4e2   :  { %5374 = vmatprep.subr.bf16.mxu0 %v7299_v42  ;;  %5406 = vmatprep.subr.bf16.mxu1 %v7301_v56 }
 0x4e5   :  { %5376 = vmatpush1.bf16.msra.mxu0 %v7303_v45  ;;  %5408 = vmatpush1.bf16.msra.mxu1 %v7306_v55 }
 0x4e6   :  { %5378 = vmatprep.subr.bf16.mxu0 %v7311_v7  ;;  %5410 = vmatprep.subr.bf16.mxu1 %v7313_v6 }
 0x4e9   :  { %5380 = vmatpush1.bf16.msra.mxu0 %v7315_v10  ;;  %5412 = vmatpush1.bf16.msra.mxu1 %v7318_v19 }
 0x4ea   :  { %5382 = vmatprep.subr.bf16.mxu0 %v7323_v32  ;;  %5414 = vmatprep.subr.bf16.mxu1 %v7325_v48 }
 0x4ed   :  { %5384 = vmatpush1.bf16.msra.mxu0 %v7327_v54  ;;  %5416 = vmatpush1.bf16.msra.mxu1 %v7330_v4 }
 0x4ee   :  { %5386 = vmatprep.subr.bf16.mxu0 %v7335_v22  ;;  %5418 = vmatprep.subr.bf16.mxu1 %v7337_v28 }
 0x4f1   :  { %5388 = vmatpush1.bf16.msra.mxu0 %v7339_v41  ;;  %5420 = vmatpush1.bf16.msra.mxu1 %v7342_v46 }
 0x4f2   :  { %5390 = vmatprep.subr.bf16.mxu0 %v7346_v5  ;;  %5422 = vmatprep.subr.bf16.mxu1 %v7348_v12 }
 0x4f5   :  { %5392 = vmatpush1.bf16.msra.mxu0 %v7351_v16  ;;  %5424 = vmatpush1.bf16.msra.mxu1 %v7355_v36 }
 0x4f6   :  { %5394 = vmatprep.subr.bf16.mxu0 %v7357_v40  ;;  %5426 = vmatprep.subr.bf16.mxu1 %v7359_v9 }
 0x4f9   :  { %5396 = vmatpush1.bf16.msra.mxu0 %v7362_v20  ;;  %5428 = vmatpush1.bf16.msra.mxu1 %v7366_v21 }
 0x4fa   :  { %5430 = vmatprep.subr.bf16.mxu0 %v7229_v47  ;;  %5462 = vmatprep.subr.bf16.mxu1 %v7231_v60 }
 0x5af   :  { %v1613_v25 = vpop.f32.mrb[8].mxu0  ;;  %v1684_v13 = vpop.f32.mrb[8].mxu1 }
 0x5b0   :  { %v6165_v23 = vadd.f32 %v1613_v25, %v7156_v37  ;;  %v1615_v26 = vpop.f32.mrb[9].mxu0  ;;  %v1686_v29 = vpop.f32.mrb[9].mxu1  ;;  %v6181_v14 = vadd.f32 %v1684_v13, %v7167_v52 }
 0x5b1   :  { %v6166_v44 = vadd.f32 %v1615_v26, %v7160_v38  ;;  %v6182_v18 = vadd.f32 %v1686_v29, %v7173_v61 }
 0x5b2   :  { %v4892_v58 = vmul.f32 -1.442695, %v6165_v23  ;;  %v4894_v27 = vmul.f32 -1.442695, %v6181_v14 }
 0x5b3   :  { %v4893_v62 = vmul.f32 -1.442695, %v6166_v44 }
 0x5b4   :  { %6365 = vpow2.f32 %v4892_v58 }
 0x5b5   :  { %6367 = vpow2.f32 %v4893_v62 }
 0x5b6   :  { %6369 = vtanh.f32 %v6182_v18 }
 0x5b7   :  { %6371 = vpow2.f32 %v4894_v27 }
 0x5be   :  { %v6366_v47 = vpop.eup %6365 }
 0x5bf   :  { %v1707_v34 = vadd.f32 1.0, %v6366_v47  ;;  %v6368_v60 = vpop.eup %6367 }
 0x5c0   :  { %v1708_v53 = vadd.f32 1.0, %v6368_v60  ;;  %v6370_v51 = vpop.eup %6369 }
 0x5c1   :  { %6373 = vrcp.f32 %v1707_v34  ;;  %v6372_v2 = vpop.eup %6371 }
 0x5c2   :  { %6375 = vrcp.f32 %v1708_v53  ;;  %v1709_v23 = vadd.f32 1.0, %v6372_v2 }
 0x5c4   :  { %6377 = vrcp.f32 %v1709_v23 }
 0x5cb   :  { %v6374_v59 = vpop.eup %6373 }
 0x5cc   :  { %v1719_v15 = vmul.f32 %v6374_v59, %v6370_v51  ;;  %v6376_v25 = vpop.eup %6375 }
 0x5cd   :  { %v1718_v26 = vmul.f32 %v6376_v25, %v7378_v50 }
 0x5ce   :  { %v6378_v29 = vpop.eup %6377 }
 0x5cf   :  { %v7424_v13 = vadd.f32 %v1719_v15, %v1718_v26 }
 0x5d1   :  { %6379 = vtanh.f32 %v7424_v13 }
 0x5db   :  { %v6380_v44 = vpop.eup %6379 }
 0x5dc   :  { %v7427_v58 = vmul.f32 %v6380_v44, %v6378_v29 }
 0x5de   :  { %1857 = vmatmul.mubr.f32.vlgmr.msra.gmra.mrb[10].mxu0 %v7427_v58  ;;  %1928 = vmatmul.mubr.f32.vlgmr.msra.gmra.mrb[10].mxu1 %v7427_v58 }
 0x5df   :  { %5432 = vmatpush1.bf16.msra.mxu0 %v7233_v63  ;;  %5464 = vmatpush1.bf16.msra.mxu1 %v7236_v49 }
 0x5e0   :  { %5434 = vmatprep.subr.bf16.mxu0 %v7241_v1  ;;  %5466 = vmatprep.subr.bf16.mxu1 %v7243_v8 }
 0x5e1   :  { %2101 = vmatprep.mubr.f32.mxu0 %v6785_v0  ;;  %2172 = vmatprep.mubr.f32.mxu1 %v6785_v0 }
 0x5e3   :  { %5436 = vmatpush1.bf16.msra.mxu0 %v7245_v11  ;;  %5468 = vmatpush1.bf16.msra.mxu1 %v7248_v17 }
 0x5e4   :  { %5438 = vmatprep.subr.bf16.mxu0 %v7299_v42  ;;  %5470 = vmatprep.subr.bf16.mxu1 %v7301_v56 }
 0x5e7   :  { %5440 = vmatpush1.bf16.msra.mxu0 %v7303_v45  ;;  %5472 = vmatpush1.bf16.msra.mxu1 %v7306_v55 }
 0x5e8   :  { %5442 = vmatprep.subr.bf16.mxu0 %v7311_v7  ;;  %5474 = vmatprep.subr.bf16.mxu1 %v7313_v6 }
 0x5eb   :  { %5444 = vmatpush1.bf16.msra.mxu0 %v7315_v10  ;;  %5476 = vmatpush1.bf16.msra.mxu1 %v7318_v19 }
 0x5ec   :  { %5446 = vmatprep.subr.bf16.mxu0 %v7323_v32  ;;  %5478 = vmatprep.subr.bf16.mxu1 %v7325_v48 }
 0x5ef   :  { %5448 = vmatpush1.bf16.msra.mxu0 %v7327_v54  ;;  %5480 = vmatpush1.bf16.msra.mxu1 %v7330_v4 }
 0x5f0   :  { %5450 = vmatprep.subr.bf16.mxu0 %v7335_v22  ;;  %5482 = vmatprep.subr.bf16.mxu1 %v7337_v28 }
 0x5f3   :  { %5452 = vmatpush1.bf16.msra.mxu0 %v7339_v41  ;;  %5484 = vmatpush1.bf16.msra.mxu1 %v7342_v46 }
 0x5f4   :  { %5454 = vmatprep.subr.bf16.mxu0 %v7346_v5  ;;  %5486 = vmatprep.subr.bf16.mxu1 %v7348_v12 }
 0x5f7   :  { %5456 = vmatpush1.bf16.msra.mxu0 %v7351_v16  ;;  %5488 = vmatpush1.bf16.msra.mxu1 %v7355_v36 }
 0x5f8   :  { %5458 = vmatprep.subr.bf16.mxu0 %v7357_v40  ;;  %5490 = vmatprep.subr.bf16.mxu1 %v7359_v9 }
 0x5fb   :  { %5460 = vmatpush1.bf16.msra.mxu0 %v7362_v20  ;;  %5492 = vmatpush1.bf16.msra.mxu1 %v7366_v21 }
 0x6b1   :  { %v1858_v63 = vpop.f32.mrb[10].mxu0  ;;  %v1929_v49 = vpop.f32.mrb[10].mxu1 }
 0x6b2   :  { %v6167_v1 = vadd.f32 %v1858_v63, %v7156_v37  ;;  %v1860_v8 = vpop.f32.mrb[11].mxu0  ;;  %v1931_v11 = vpop.f32.mrb[11].mxu1  ;;  %v6183_v14 = vadd.f32 %v1929_v49, %v7167_v52 }
 0x6b3   :  { %v6168_v17 = vadd.f32 %v1860_v8, %v7160_v38  ;;  %v6184_v18 = vadd.f32 %v1931_v11, %v7173_v61  ;;  %v2223_v8 = vld [vmem:[#allocation15 + $0x28] sm:$0xff] }
 0x6b4   :  { %v4895_v50 = vmul.f32 -1.442695, %v6167_v1  ;;  %v4897_v27 = vmul.f32 -1.442695, %v6183_v14  ;;  %v2219_v1 = vld [vmem:[#allocation15 + $0x8] sm:$0xff] }
 0x6b5   :  { %v4896_v62 = vmul.f32 -1.442695, %v6168_v17  ;;  %v5493_v11 = vpack.c.bf16 %v2223_v8, %v2219_v1  ;;  %v2225_v17 = vld [vmem:[#allocation15 + $0x38] sm:$0xff] }
 0x6b6   :  { %6381 = vpow2.f32 %v4895_v50  ;;  %v2218_v50 = vld [vmem:[#allocation15] sm:$0xff] }
 0x6b7   :  { %6383 = vpow2.f32 %v4896_v62  ;;  %v2222_v62 = vld [vmem:[#allocation15 + $0x20] sm:$0xff]  ;;  %5494 = vmatprep.subr.bf16.mxu0 %v5493_v11 }
 0x6b8   :  { %6385 = vtanh.f32 %v6184_v18  ;;  %v5495_v18 = vpack.c.bf16 %v2222_v62, %v2218_v50  ;;  %v2462_v62 = vld [vmem:[#allocation14] sm:$0xff] }
 0x6b9   :  { %6387 = vpow2.f32 %v4897_v27  ;;  %v2220_v27 = vld [vmem:[#allocation15 + $0x10] sm:$0xff] }
 0x6c0   :  { %v6382_v47 = vpop.eup %6381 }
 0x6c1   :  { %v1952_v34 = vadd.f32 1.0, %v6382_v47  ;;  %v6384_v60 = vpop.eup %6383  ;;  %v2224_v47 = vld [vmem:[#allocation15 + $0x30] sm:$0xff] }
 0x6c2   :  { %v1953_v53 = vadd.f32 1.0, %v6384_v60  ;;  %v6386_v51 = vpop.eup %6385  ;;  %v2227_v60 = vld [vmem:[#allocation15 + $0x48] sm:$0xff] }
 0x6c3   :  { %6389 = vrcp.f32 %v1952_v34  ;;  %v6388_v2 = vpop.eup %6387  ;;  %v5527_v34 = vpack.c.bf16 %v2224_v47, %v2220_v27  ;;  %v2468_v27 = vld [vmem:[#allocation14 + $0x30] sm:$0xff]  ;;  %v2471_v47 = vld [vmem:[#allocation14 + $0x48] sm:$0xff] }
 0x6c4   :  { %6391 = vrcp.f32 %v1953_v53  ;;  %v1954_v23 = vadd.f32 1.0, %v6388_v2  ;;  %v2231_v53 = vld [vmem:[#allocation15 + $0x68] sm:$0xff] }
 0x6c5   :  { %v5497_v2 = vpack.c.bf16 %v2231_v53, %v2227_v60  ;;  %v2473_v60 = vld [vmem:[#allocation14 + $0x58] sm:$0xff] }
 0x6c6   :  { %6393 = vrcp.f32 %v1954_v23  ;;  %v2477_v53 = vld [vmem:[#allocation14 + $0x78] sm:$0xff] }
 0x6cd   :  { %v6390_v59 = vpop.eup %6389 }
 0x6ce   :  { %v1964_v15 = vmul.f32 %v6390_v59, %v6386_v51  ;;  %v6392_v25 = vpop.eup %6391  ;;  %v2229_v51 = vld [vmem:[#allocation15 + $0x58] sm:$0xff] }
 0x6cf   :  { %v1963_v26 = vmul.f32 %v6392_v25, %v7424_v13  ;;  %v2221_v13 = vld [vmem:[#allocation15 + $0x18] sm:$0xff]  ;;  %v2230_v25 = vld [vmem:[#allocation15 + $0x60] sm:$0xff] }
 0x6d0   :  { %v6394_v44 = vpop.eup %6393  ;;  %v5525_v14 = vpack.c.bf16 %v2225_v17, %v2221_v13  ;;  %v2233_v59 = vld [vmem:[#allocation15 + $0x78] sm:$0xff] }
 0x6d1   :  { %v7468_v29 = vadd.f32 %v1964_v15, %v1963_v26  ;;  %v2226_v15 = vld [vmem:[#allocation15 + $0x40] sm:$0xff]  ;;  %v5529_v23 = vpack.c.bf16 %v2233_v59, %v2229_v51 }
 0x6d2   :  { %5526 = vmatprep.subr.bf16.mxu1 %v5525_v14  ;;  %v5499_v26 = vpack.c.bf16 %v2230_v25, %v2226_v15  ;;  %v2466_v14 = vld [vmem:[#allocation14 + $0x20] sm:$0xff] }
 0x6d3   :  { %6395 = vtanh.f32 %v7468_v29  ;;  %v5559_v59 = vpack.c.bf16 %v2466_v14, %v2462_v62  ;;  %v2470_v25 = vld [vmem:[#allocation14 + $0x40] sm:$0xff] }
 0x6dd   :  { %v6396_v63 = vpop.eup %6395 }
 0x6de   :  { %v7471_v49 = vmul.f32 %v6396_v63, %v6394_v44  ;;  %v2228_v44 = vld [vmem:[#allocation15 + $0x50] sm:$0xff] }
 0x6df   :  { %v2232_v63 = vld [vmem:[#allocation15 + $0x70] sm:$0xff] }
 0x6e0   :  { %2102 = vmatmul.mubr.f32.vlgmr.msra.gmra.mrb[12].mxu0 %v7471_v49  ;;  %2173 = vmatmul.mubr.f32.vlgmr.msra.gmra.mrb[12].mxu1 %v7471_v49  ;;  %v5531_v1 = vpack.c.bf16 %v2232_v63, %v2228_v44  ;;  %v5593_v44 = vpack.c.bf16 %v2477_v53, %v2473_v60  ;;  %v2472_v63 = vld [vmem:[#allocation14 + $0x50] sm:$0xff] }
 0x6e1   :  { %2346 = vmatprep.mubr.f32.mxu0 %v6785_v0  ;;  %2417 = vmatprep.mubr.f32.mxu1 %v6785_v0  ;;  %v2496_v60 = vld [vmem:[#allocation14 + $0x110] sm:$0xff] }
 0x6e2   :  { %5496 = vmatpush1.bf16.msra.mxu0 %v5495_v18  ;;  %5528 = vmatpush1.bf16.msra.mxu1 %v5527_v34  ;;  %v2464_v18 = vld [vmem:[#allocation14 + $0x10] sm:$0xff]  ;;  %v2475_v34 = vld [vmem:[#allocation14 + $0x68] sm:$0xff] }
 0x6e3   :  { %5498 = vmatprep.subr.bf16.mxu0 %v5497_v2  ;;  %5530 = vmatprep.subr.bf16.mxu1 %v5529_v23  ;;  %v5591_v15 = vpack.c.bf16 %v2468_v27, %v2464_v18  ;;  %v2474_v23 = vld [vmem:[#allocation14 + $0x60] sm:$0xff]  ;;  %v2500_v53 = vld [vmem:[#allocation14 + $0x130] sm:$0xff] }
 0x6e4   :  { %v2494_v18 = vld [vmem:[#allocation14 + $0x100] sm:$0xff] }
 0x6e5   :  { %v2498_v27 = vld [vmem:[#allocation14 + $0x120] sm:$0xff] }
 0x6e6   :  { %5500 = vmatpush1.bf16.msra.mxu0 %v5499_v26  ;;  %5532 = vmatpush1.bf16.msra.mxu1 %v5531_v1  ;;  %v5561_v26 = vpack.c.bf16 %v2475_v34, %v2471_v47  ;;  %v2476_v1 = vld [vmem:[#allocation14 + $0x70] sm:$0xff] }
 0x6e7   :  { %5502 = vmatprep.subr.bf16.mxu0 %v7299_v42  ;;  %5534 = vmatprep.subr.bf16.mxu1 %v7301_v56  ;;  %v2463_v42 = vld [vmem:[#allocation14 + $0x8] sm:$0xff] }
 0x6e8   :  { %v2467_v56 = vld [vmem:[#allocation14 + $0x28] sm:$0xff] }
 0x6ea   :  { %5504 = vmatpush1.bf16.msra.mxu0 %v7303_v45  ;;  %5536 = vmatpush1.bf16.msra.mxu1 %v7306_v55  ;;  %v2465_v45 = vld [vmem:[#allocation14 + $0x18] sm:$0xff] }
 0x6eb   :  { %5506 = vmatprep.subr.bf16.mxu0 %v7311_v7  ;;  %5538 = vmatprep.subr.bf16.mxu1 %v7313_v6  ;;  %v2469_v55 = vld [vmem:[#allocation14 + $0x38] sm:$0xff]  ;;  %v5557_v7 = vpack.c.bf16 %v2467_v56, %v2463_v42  ;;  %v2479_v42 = vld [vmem:[#allocation14 + $0x88] sm:$0xff] }
 0x6ec   :  { %v5589_v6 = vpack.c.bf16 %v2469_v55, %v2465_v45  ;;  %v2483_v56 = vld [vmem:[#allocation14 + $0xa8] sm:$0xff]  ;;  %v2481_v45 = vld [vmem:[#allocation14 + $0x98] sm:$0xff] }
 0x6ed   :  { %v2485_v55 = vld [vmem:[#allocation14 + $0xb8] sm:$0xff] }
 0x6ee   :  { %5508 = vmatpush1.bf16.msra.mxu0 %v7315_v10  ;;  %5540 = vmatpush1.bf16.msra.mxu1 %v7318_v19 }
 0x6ef   :  { %5510 = vmatprep.subr.bf16.mxu0 %v7323_v32  ;;  %5542 = vmatprep.subr.bf16.mxu1 %v7325_v48 }
 0x6f2   :  { %5512 = vmatpush1.bf16.msra.mxu0 %v7327_v54  ;;  %5544 = vmatpush1.bf16.msra.mxu1 %v7330_v4 }
 0x6f3   :  { %5514 = vmatprep.subr.bf16.mxu0 %v7335_v22  ;;  %5546 = vmatprep.subr.bf16.mxu1 %v7337_v28 }
 0x6f6   :  { %5516 = vmatpush1.bf16.msra.mxu0 %v7339_v41  ;;  %5548 = vmatpush1.bf16.msra.mxu1 %v7342_v46 }
 0x6f7   :  { %5518 = vmatprep.subr.bf16.mxu0 %v7346_v5  ;;  %5550 = vmatprep.subr.bf16.mxu1 %v7348_v12 }
 0x6fa   :  { %5520 = vmatpush1.bf16.msra.mxu0 %v7351_v16  ;;  %5552 = vmatpush1.bf16.msra.mxu1 %v7355_v36 }
 0x6fb   :  { %5522 = vmatprep.subr.bf16.mxu0 %v7357_v40  ;;  %5554 = vmatprep.subr.bf16.mxu1 %v7359_v9 }
 0x6fe   :  { %5524 = vmatpush1.bf16.msra.mxu0 %v7362_v20  ;;  %5556 = vmatpush1.bf16.msra.mxu1 %v7366_v21 }
 0x6ff   :  { %5558 = vmatprep.subr.bf16.mxu0 %v5557_v7  ;;  %5590 = vmatprep.subr.bf16.mxu1 %v5589_v6  ;;  %v5563_v7 = vpack.c.bf16 %v2474_v23, %v2470_v25  ;;  %v5595_v6 = vpack.c.bf16 %v2476_v1, %v2472_v63  ;;  %v5575_v25 = vpack.c.bf16 %v2498_v27, %v2494_v18  ;;  %v2823_v27 = vld [vmem:[#allocation17 + $0x10] sm:$0xff] }
 0x700   :  { %v5607_v23 = vpack.c.bf16 %v2500_v53, %v2496_v60  ;;  %v2834_v60 = vld [vmem:[#allocation17 + $0x68] sm:$0xff]  ;;  %v2832_v53 = vld [vmem:[#allocation17 + $0x58] sm:$0xff] }
 0x7b3   :  { %v2103_v10 = vpop.f32.mrb[12].mxu0  ;;  %v2174_v19 = vpop.f32.mrb[12].mxu1 }
 0x7b4   :  { %v6169_v32 = vadd.f32 %v2103_v10, %v7156_v37  ;;  %v2105_v48 = vpop.f32.mrb[13].mxu0  ;;  %v2176_v54 = vpop.f32.mrb[13].mxu1  ;;  %v6185_v41 = vadd.f32 %v2174_v19, %v7167_v52  ;;  %v2478_v10 = vld [vmem:[#allocation14 + $0x80] sm:$0xff] }
 0x7b5   :  { %v6170_v4 = vadd.f32 %v2105_v48, %v7160_v38  ;;  %v6186_v46 = vadd.f32 %v2176_v54, %v7173_v61  ;;  %v2482_v19 = vld [vmem:[#allocation14 + $0xa0] sm:$0xff]  ;;  %v5597_v48 = vpack.c.bf16 %v2485_v55, %v2481_v45  ;;  %v2480_v54 = vld [vmem:[#allocation14 + $0x90] sm:$0xff]  ;;  %v2511_v45 = vld [vmem:[#allocation14 + $0x188] sm:$0xff] }
 0x7b6   :  { %v4898_v22 = vmul.f32 -1.442695, %v6169_v32  ;;  %v4900_v5 = vmul.f32 -1.442695, %v6185_v41  ;;  %v5565_v32 = vpack.c.bf16 %v2483_v56, %v2479_v42  ;;  %v2489_v41 = vld [vmem:[#allocation14 + $0xd8] sm:$0xff]  ;;  %v2504_v42 = vld [vmem:[#allocation14 + $0x150] sm:$0xff] }
 0x7b7   :  { %v4899_v28 = vmul.f32 -1.442695, %v6170_v4  ;;  %v2484_v4 = vld [vmem:[#allocation14 + $0xb0] sm:$0xff]  ;;  %v2515_v55 = vld [vmem:[#allocation14 + $0x1a8] sm:$0xff] }
 0x7b8   :  { %6397 = vpow2.f32 %v4898_v22  ;;  %v2487_v22 = vld [vmem:[#allocation14 + $0xc8] sm:$0xff]  ;;  %v2508_v56 = vld [vmem:[#allocation14 + $0x170] sm:$0xff] }
 0x7b9   :  { %6399 = vpow2.f32 %v4899_v28  ;;  %v2491_v28 = vld [vmem:[#allocation14 + $0xe8] sm:$0xff] }
 0x7ba   :  { %6401 = vtanh.f32 %v6186_v46  ;;  %v2493_v46 = vld [vmem:[#allocation14 + $0xf8] sm:$0xff] }
 0x7bb   :  { %6403 = vpow2.f32 %v4900_v5  ;;  %v5567_v5 = vpack.c.bf16 %v2482_v19, %v2478_v10  ;;  %v5611_v19 = vpack.c.bf16 %v2508_v56, %v2504_v42  ;;  %v2842_v42 = vld [vmem:[#allocation17 + $0xa8] sm:$0xff]  ;;  %v2840_v56 = vld [vmem:[#allocation17 + $0x98] sm:$0xff] }
 0x7c2   :  { %v6398_v12 = vpop.eup %6397 }
 0x7c3   :  { %v2197_v16 = vadd.f32 1.0, %v6398_v12  ;;  %v6400_v36 = vpop.eup %6399  ;;  %v5599_v12 = vpack.c.bf16 %v2484_v4, %v2480_v54  ;;  %v5581_v54 = vpack.c.bf16 %v2515_v55, %v2511_v45  ;;  %v2844_v55 = vld [vmem:[#allocation17 + $0xb8] sm:$0xff] }
 0x7c4   :  { %v2198_v40 = vadd.f32 1.0, %v6400_v36  ;;  %v6402_v9 = vpop.eup %6401  ;;  %v2490_v36 = vld [vmem:[#allocation14 + $0xe0] sm:$0xff] }
 0x7c5   :  { %6405 = vrcp.f32 %v2197_v16  ;;  %v6404_v20 = vpop.eup %6403  ;;  %v2486_v16 = vld [vmem:[#allocation14 + $0xc0] sm:$0xff] }
 0x7c6   :  { %6407 = vrcp.f32 %v2198_v40  ;;  %v2199_v11 = vadd.f32 1.0, %v6404_v20  ;;  %v5569_v40 = vpack.c.bf16 %v2491_v28, %v2487_v22  ;;  %v2488_v20 = vld [vmem:[#allocation14 + $0xd0] sm:$0xff]  ;;  %v5571_v62 = vpack.c.bf16 %v2490_v36, %v2486_v16 }
 0x7c7   :  { %v2512_v22 = vld [vmem:[#allocation14 + $0x190] sm:$0xff] }
 0x7c8   :  { %6409 = vrcp.f32 %v2199_v11  ;;  %v2497_v11 = vld [vmem:[#allocation14 + $0x118] sm:$0xff]  ;;  %v2516_v28 = vld [vmem:[#allocation14 + $0x1b0] sm:$0xff] }
 0x7c9   :  { %v5615_v36 = vpack.c.bf16 %v2516_v28, %v2512_v22  ;;  %v2850_v22 = vld [vmem:[#allocation17 + $0xe8] sm:$0xff]  ;;  %v2848_v28 = vld [vmem:[#allocation17 + $0xd8] sm:$0xff] }
 0x7cf   :  { %v6406_v21 = vpop.eup %6405 }
 0x7d0   :  { %v2209_v8 = vmul.f32 %v6406_v21, %v6402_v9  ;;  %v6408_v13 = vpop.eup %6407  ;;  %v5601_v9 = vpack.c.bf16 %v2493_v46, %v2489_v41  ;;  %v2492_v21 = vld [vmem:[#allocation14 + $0xf0] sm:$0xff]  ;;  %v2519_v41 = vld [vmem:[#allocation14 + $0x1c8] sm:$0xff] }
 0x7d1   :  { %v2208_v17 = vmul.f32 %v6408_v13, %v7468_v29  ;;  %v2499_v13 = vld [vmem:[#allocation14 + $0x128] sm:$0xff]  ;;  %v5603_v14 = vpack.c.bf16 %v2492_v21, %v2488_v20  ;;  %v2522_v21 = vld [vmem:[#allocation14 + $0x1e0] sm:$0xff] }
 0x7d2   :  { %v6410_v51 = vpop.eup %6409  ;;  %v2523_v46 = vld [vmem:[#allocation14 + $0x1e8] sm:$0xff] }
 0x7d3   :  { %v7506_v50 = vadd.f32 %v2209_v8, %v2208_v17  ;;  %v2495_v8 = vld [vmem:[#allocation14 + $0x108] sm:$0xff]  ;;  %v2501_v17 = vld [vmem:[#allocation14 + $0x138] sm:$0xff] }
 0x7d4   :  { %v5573_v47 = vpack.c.bf16 %v2499_v13, %v2495_v8  ;;  %v5605_v34 = vpack.c.bf16 %v2501_v17, %v2497_v11  ;;  %v2520_v8 = vld [vmem:[#allocation14 + $0x1d0] sm:$0xff] }
 0x7d5   :  { %6411 = vtanh.f32 %v7506_v50  ;;  %v2524_v13 = vld [vmem:[#allocation14 + $0x1f0] sm:$0xff] }
 0x7d6   :  { %v5619_v17 = vpack.c.bf16 %v2524_v13, %v2520_v8  ;;  %v2858_v8 = vld [vmem:[#allocation17 + $0x128] sm:$0xff]  ;;  %v2856_v13 = vld [vmem:[#allocation17 + $0x118] sm:$0xff] }
 0x7df   :  { %v6412_v2 = vpop.eup %6411 }
 0x7e0   :  { %v7509_v29 = vmul.f32 %v6412_v2, %v6410_v51  ;;  %v2503_v51 = vld [vmem:[#allocation14 + $0x148] sm:$0xff] }
 0x7e1   :  { %v2507_v2 = vld [vmem:[#allocation14 + $0x168] sm:$0xff] }
 0x7e2   :  { %2347 = vmatmul.mubr.f32.vlgmr.msra.gmra.mrb[14].mxu0 %v7509_v29  ;;  %2418 = vmatmul.mubr.f32.vlgmr.msra.gmra.mrb[14].mxu1 %v7509_v29  ;;  %v5577_v63 = vpack.c.bf16 %v2507_v2, %v2503_v51  ;;  %v2836_v2 = vld [vmem:[#allocation17 + $0x78] sm:$0xff] }
 0x7e3   :  { %5560 = vmatpush1.bf16.msra.mxu0 %v5559_v59  ;;  %5592 = vmatpush1.bf16.msra.mxu1 %v5591_v15  ;;  %v2505_v59 = vld [vmem:[#allocation14 + $0x158] sm:$0xff] }
 0x7e4   :  { %5562 = vmatprep.subr.bf16.mxu0 %v5561_v26  ;;  %5594 = vmatprep.subr.bf16.mxu1 %v5593_v44  ;;  %v2509_v15 = vld [vmem:[#allocation14 + $0x178] sm:$0xff]  ;;  %v2502_v26 = vld [vmem:[#allocation14 + $0x140] sm:$0xff] }
 0x7e5   :  { %2620 = vmatprep.mubr.f32.mxu0 %v6785_v0  ;;  %2733 = vmatprep.mubr.f32.mxu1 %v6785_v0  ;;  %v2506_v44 = vld [vmem:[#allocation14 + $0x160] sm:$0xff]  ;;  %v5609_v1 = vpack.c.bf16 %v2509_v15, %v2505_v59 }
 0x7e6   :  { %v5579_v10 = vpack.c.bf16 %v2506_v44, %v2502_v26  ;;  %v2829_v59 = vld [vmem:[#allocation17 + $0x40] sm:$0xff]  ;;  %v2831_v26 = vld [vmem:[#allocation17 + $0x50] sm:$0xff] }
 0x7e7   :  { %5564 = vmatpush1.bf16.msra.mxu0 %v5563_v7  ;;  %5596 = vmatpush1.bf16.msra.mxu1 %v5595_v6  ;;  %v2513_v7 = vld [vmem:[#allocation14 + $0x198] sm:$0xff]  ;;  %v2833_v15 = vld [vmem:[#allocation17 + $0x60] sm:$0xff]  ;;  %v2835_v44 = vld [vmem:[#allocation17 + $0x70] sm:$0xff] }
 0x7e8   :  { %5566 = vmatprep.subr.bf16.mxu0 %v5565_v32  ;;  %5598 = vmatprep.subr.bf16.mxu1 %v5597_v48  ;;  %v2517_v6 = vld [vmem:[#allocation14 + $0x1b8] sm:$0xff]  ;;  %v2510_v32 = vld [vmem:[#allocation14 + $0x180] sm:$0xff] }
 0x7e9   :  { %v2514_v48 = vld [vmem:[#allocation14 + $0x1a0] sm:$0xff]  ;;  %v5613_v4 = vpack.c.bf16 %v2517_v6, %v2513_v7 }
 0x7ea   :  { %v5583_v16 = vpack.c.bf16 %v2514_v48, %v2510_v32  ;;  %v2837_v7 = vld [vmem:[#allocation17 + $0x80] sm:$0xff]  ;;  %v2839_v32 = vld [vmem:[#allocation17 + $0x90] sm:$0xff] }
 0x7eb   :  { %5568 = vmatpush1.bf16.msra.mxu0 %v5567_v5  ;;  %5600 = vmatpush1.bf16.msra.mxu1 %v5599_v12  ;;  %v2521_v5 = vld [vmem:[#allocation14 + $0x1d8] sm:$0xff]  ;;  %v2841_v6 = vld [vmem:[#allocation17 + $0xa0] sm:$0xff]  ;;  %v2843_v48 = vld [vmem:[#allocation17 + $0xb0] sm:$0xff] }
 0x7ec   :  { %5570 = vmatprep.subr.bf16.mxu0 %v5569_v40  ;;  %5602 = vmatprep.subr.bf16.mxu1 %v5601_v9  ;;  %v2525_v12 = vld [vmem:[#allocation14 + $0x1f8] sm:$0xff]  ;;  %v2518_v40 = vld [vmem:[#allocation14 + $0x1c0] sm:$0xff]  ;;  %v5585_v9 = vpack.c.bf16 %v2523_v46, %v2519_v41 }
 0x7ed   :  { %v5617_v20 = vpack.c.bf16 %v2525_v12, %v2521_v5  ;;  %v5587_v11 = vpack.c.bf16 %v2522_v21, %v2518_v40  ;;  %v2852_v46 = vld [vmem:[#allocation17 + $0xf8] sm:$0xff]  ;;  %v2845_v5 = vld [vmem:[#allocation17 + $0xc0] sm:$0xff]  ;;  %v2847_v40 = vld [vmem:[#allocation17 + $0xd0] sm:$0xff] }
 0x7ee   :  { %v2849_v12 = vld [vmem:[#allocation17 + $0xe0] sm:$0xff]  ;;  %v2854_v21 = vld [vmem:[#allocation17 + $0x108] sm:$0xff] }
 0x7ef   :  { %5572 = vmatpush1.bf16.msra.mxu0 %v5571_v62  ;;  %5604 = vmatpush1.bf16.msra.mxu1 %v5603_v14  ;;  %v2821_v62 = vld [vmem:[#allocation17] sm:$0xff] }
 0x7f0   :  { %5574 = vmatprep.subr.bf16.mxu0 %v5573_v47  ;;  %5606 = vmatprep.subr.bf16.mxu1 %v5605_v34  ;;  %v2827_v47 = vld [vmem:[#allocation17 + $0x30] sm:$0xff]  ;;  %v2830_v34 = vld [vmem:[#allocation17 + $0x48] sm:$0xff] }
 0x7f1   :  { %v7555_v51 = vpack.c.bf16 %v2834_v60, %v2830_v34  ;;  %v2866_v34 = vld [vmem:[#allocation17 + $0x168] sm:$0xff]  ;;  %v2864_v60 = vld [vmem:[#allocation17 + $0x158] sm:$0xff] }
 0x7f3   :  { %5576 = vmatpush1.bf16.msra.mxu0 %v5575_v25  ;;  %5608 = vmatpush1.bf16.msra.mxu1 %v5607_v23  ;;  %v7557_v25 = vpack.c.bf16 %v2836_v2, %v2832_v53  ;;  %v7559_v23 = vpack.c.bf16 %v2833_v15, %v2829_v59  ;;  %v2868_v53 = vld [vmem:[#allocation17 + $0x178] sm:$0xff]  ;;  %v2861_v15 = vld [vmem:[#allocation17 + $0x140] sm:$0xff] }
 0x7f4   :  { %5578 = vmatprep.subr.bf16.mxu0 %v5577_v63  ;;  %5610 = vmatprep.subr.bf16.mxu1 %v5609_v1  ;;  %v7562_v63 = vpack.c.bf16 %v2835_v44, %v2831_v26  ;;  %v2838_v1 = vld [vmem:[#allocation17 + $0x88] sm:$0xff]  ;;  %v7604_v59 = vpack.c.bf16 %v2868_v53, %v2864_v60  ;;  %v2865_v26 = vld [vmem:[#allocation17 + $0x160] sm:$0xff]  ;;  %v2863_v44 = vld [vmem:[#allocation17 + $0x150] sm:$0xff] }
 0x7f5   :  { %v7567_v45 = vpack.c.bf16 %v2842_v42, %v2838_v1  ;;  %v7607_v1 = vpack.c.bf16 %v2865_v26, %v2861_v15  ;;  %v2867_v42 = vld [vmem:[#allocation17 + $0x170] sm:$0xff] }
 0x7f7   :  { %5580 = vmatpush1.bf16.msra.mxu0 %v5579_v10  ;;  %5612 = vmatpush1.bf16.msra.mxu1 %v5611_v19  ;;  %v7569_v10 = vpack.c.bf16 %v2844_v55, %v2840_v56  ;;  %v7571_v19 = vpack.c.bf16 %v2841_v6, %v2837_v7  ;;  %v2870_v56 = vld [vmem:[#allocation17 + $0x188] sm:$0xff]  ;;  %v7611_v7 = vpack.c.bf16 %v2867_v42, %v2863_v44 }
 0x7f8   :  { %5582 = vmatprep.subr.bf16.mxu0 %v5581_v54  ;;  %5614 = vmatprep.subr.bf16.mxu1 %v5613_v4  ;;  %v7574_v54 = vpack.c.bf16 %v2843_v48, %v2839_v32  ;;  %v2846_v4 = vld [vmem:[#allocation17 + $0xc8] sm:$0xff]  ;;  %v2872_v32 = vld [vmem:[#allocation17 + $0x198] sm:$0xff] }
 0x7f9   :  { %v7579_v41 = vpack.c.bf16 %v2850_v22, %v2846_v4  ;;  %v2874_v55 = vld [vmem:[#allocation17 + $0x1a8] sm:$0xff]  ;;  %v2876_v48 = vld [vmem:[#allocation17 + $0x1b8] sm:$0xff]  ;;  %v2869_v4 = vld [vmem:[#allocation17 + $0x180] sm:$0xff] }
 0x7fa   :  { %v7613_v6 = vpack.c.bf16 %v2874_v55, %v2870_v56  ;;  %v7615_v22 = vpack.c.bf16 %v2876_v48, %v2872_v32 }
 0x7fb   :  { %5584 = vmatpush1.bf16.msra.mxu0 %v5583_v16  ;;  %5616 = vmatpush1.bf16.msra.mxu1 %v5615_v36  ;;  %v7581_v16 = vpack.c.bf16 %v2852_v46, %v2848_v28  ;;  %v7583_v36 = vpack.c.bf16 %v2849_v12, %v2845_v5  ;;  %v2873_v28 = vld [vmem:[#allocation17 + $0x1a0] sm:$0xff]  ;;  %v2871_v46 = vld [vmem:[#allocation17 + $0x190] sm:$0xff] }
 0x7fc   :  { %5586 = vmatprep.subr.bf16.mxu0 %v5585_v9  ;;  %5618 = vmatprep.subr.bf16.mxu1 %v5617_v20  ;;  %v2851_v9 = vld [vmem:[#allocation17 + $0xf0] sm:$0xff]  ;;  %v7618_v12 = vpack.c.bf16 %v2873_v28, %v2869_v4 }
 0x7fd   :  { %v7586_v20 = vpack.c.bf16 %v2851_v9, %v2847_v40  ;;  %v2875_v5 = vld [vmem:[#allocation17 + $0x1b0] sm:$0xff]  ;;  %v2878_v9 = vld [vmem:[#allocation17 + $0x1c8] sm:$0xff] }
 0x7fe   :  { %v7622_v40 = vpack.c.bf16 %v2875_v5, %v2871_v46 }
 0x7ff   :  { %5588 = vmatpush1.bf16.msra.mxu0 %v5587_v11  ;;  %5620 = vmatpush1.bf16.msra.mxu1 %v5619_v17  ;;  %v7591_v11 = vpack.c.bf16 %v2858_v8, %v2854_v21  ;;  %v2860_v17 = vld [vmem:[#allocation17 + $0x138] sm:$0xff]  ;;  %v2882_v21 = vld [vmem:[#allocation17 + $0x1e8] sm:$0xff] }
 0x800   :  { %v2880_v8 = vld [vmem:[#allocation17 + $0x1d8] sm:$0xff] }
 0x802   :  { %2621 = vmatmul.mubr.f32.vlgmr.msra.gmra.mrb[16].mxu0 %v7179_v43  ;;  %2734 = vmatmul.mubr.f32.vlgmr.msra.gmra.mrb[16].mxu1 %v7179_v43  ;;  %v2822_v43 = vld [vmem:[#allocation17 + $0x8] sm:$0xff] }
 0x803   :  { %2626 = vmatprep.mubr.f32.mxu0 %v6785_v0  ;;  %2739 = vmatprep.mubr.f32.mxu1 %v6785_v0 }
 0x806   :  { %2627 = vmatmul.mubr.f32.gmra.mrb[18].mxu0 %v7223_v30  ;;  %2740 = vmatmul.mubr.f32.gmra.mrb[18].mxu1 %v7223_v30  ;;  %v2826_v30 = vld [vmem:[#allocation17 + $0x28] sm:$0xff] }
 0x807   :  { %2632 = vmatprep.mubr.f32.mxu0 %v6785_v0  ;;  %2745 = vmatprep.mubr.f32.mxu1 %v6785_v0 }
 0x80a   :  { %2633 = vmatmul.mubr.f32.gmra.mrb[20].mxu0 %v7287_v24  ;;  %2746 = vmatmul.mubr.f32.gmra.mrb[20].mxu1 %v7287_v24  ;;  %v2824_v24 = vld [vmem:[#allocation17 + $0x18] sm:$0xff] }
 0x80b   :  { %2638 = vmatprep.mubr.f32.mxu0 %v6785_v0  ;;  %2751 = vmatprep.mubr.f32.mxu1 %v6785_v0 }
 0x80e   :  { %2639 = vmatmul.mubr.f32.gmra.mrb[22].mxu0 %v7381_v3  ;;  %2752 = vmatmul.mubr.f32.gmra.mrb[22].mxu1 %v7381_v3  ;;  %v7543_v3 = vpack.c.bf16 %v2826_v30, %v2822_v43  ;;  %v2853_v43 = vld [vmem:[#allocation17 + $0x100] sm:$0xff] }
 0x80f   :  { %2644 = vmatprep.mubr.f32.mxu0 %v6785_v0  ;;  %2757 = vmatprep.mubr.f32.mxu1 %v6785_v0  ;;  %v2857_v30 = vld [vmem:[#allocation17 + $0x120] sm:$0xff] }
 0x810   :  { %5622 = vmatprep.subr.bf16.mxu0 %v7543_v3 }
 0x812   :  { %2645 = vmatmul.mubr.f32.gmra.mrb[24].mxu0 %v7427_v58  ;;  %2758 = vmatmul.mubr.f32.gmra.mrb[24].mxu1 %v7427_v58  ;;  %v2828_v58 = vld [vmem:[#allocation17 + $0x38] sm:$0xff] }
 0x813   :  { %2650 = vmatprep.mubr.f32.mxu0 %v6785_v0  ;;  %2763 = vmatprep.mubr.f32.mxu1 %v6785_v0  ;;  %v7545_v14 = vpack.c.bf16 %v2828_v58, %v2824_v24  ;;  %v7593_v24 = vpack.c.bf16 %v2860_v17, %v2856_v13  ;;  %v7595_v58 = vpack.c.bf16 %v2857_v30, %v2853_v43  ;;  %v2884_v17 = vld [vmem:[#allocation17 + $0x1f8] sm:$0xff]  ;;  %v2877_v43 = vld [vmem:[#allocation17 + $0x1c0] sm:$0xff] }
 0x814   :  { %v7627_v13 = vpack.c.bf16 %v2882_v21, %v2878_v9  ;;  %v2881_v30 = vld [vmem:[#allocation17 + $0x1e0] sm:$0xff] }
 0x815   :  { %5654 = vmatprep.subr.bf16.mxu1 %v7545_v14 }
 0x816   :  { %2651 = vmatmul.mubr.f32.gmra.mrb[26].mxu0 %v7471_v49  ;;  %2764 = vmatmul.mubr.f32.gmra.mrb[26].mxu1 %v7471_v49  ;;  %v2825_v49 = vld [vmem:[#allocation17 + $0x20] sm:$0xff] }
 0x817   :  { %2656 = vmatprep.mubr.f32.mxu0 %v6785_v0  ;;  %2769 = vmatprep.mubr.f32.mxu1 %v6785_v0  ;;  %v7547_v18 = vpack.c.bf16 %v2825_v49, %v2821_v62  ;;  %v2855_v62 = vld [vmem:[#allocation17 + $0x110] sm:$0xff] }
 0x818   :  { %v2859_v49 = vld [vmem:[#allocation17 + $0x130] sm:$0xff] }
 0x819   :  { %5624 = vmatpush1.bf16.msra.mxu0 %v7547_v18 }
 0x81a   :  { %2657 = vmatmul.mubr.f32.gmra.mrb[28].mxu0 %v7509_v29  ;;  %2770 = vmatmul.mubr.f32.gmra.mrb[28].mxu1 %v7509_v29  ;;  %v7550_v29 = vpack.c.bf16 %v2827_v47, %v2823_v27  ;;  %v2862_v27 = vld [vmem:[#allocation17 + $0x148] sm:$0xff]  ;;  %v7598_v47 = vpack.c.bf16 %v2859_v49, %v2855_v62  ;;  %v7629_v62 = vpack.c.bf16 %v2884_v17, %v2880_v8 }
 0x81b   :  { %2662 = vmatprep.mubr.f32.mxu0 %v6785_v0  ;;  %2775 = vmatprep.mubr.f32.mxu1 %v6785_v0  ;;  %v7602_v2 = vpack.c.bf16 %v2866_v34, %v2862_v27  ;;  %v7631_v49 = vpack.c.bf16 %v2881_v30, %v2877_v43  ;;  %v2879_v27 = vld [vmem:[#allocation17 + $0x1d0] sm:$0xff] }
 0x81c   :  { %5656 = vmatpush1.bf16.msra.mxu1 %v7550_v29  ;;  %5626 = vmatprep.subr.bf16.mxu0 %v7555_v51  ;;  %v2883_v34 = vld [vmem:[#allocation17 + $0x1f0] sm:$0xff] }
 0x81d   :  { %5658 = vmatprep.subr.bf16.mxu1 %v7557_v25  ;;  %5628 = vmatpush1.bf16.msra.mxu0 %v7559_v23  ;;  %v7634_v60 = vpack.c.bf16 %v2883_v34, %v2879_v27 }
 0x81e   :  { %5630 = vmatprep.subr.bf16.mxu0 %v7567_v45 }
 0x820   :  { %5660 = vmatpush1.bf16.msra.mxu1 %v7562_v63 }
 0x821   :  { %5662 = vmatprep.subr.bf16.mxu1 %v7569_v10  ;;  %5632 = vmatpush1.bf16.msra.mxu0 %v7571_v19 }
 0x822   :  { %5634 = vmatprep.subr.bf16.mxu0 %v7579_v41 }
 0x824   :  { %5664 = vmatpush1.bf16.msra.mxu1 %v7574_v54 }
 0x825   :  { %5666 = vmatprep.subr.bf16.mxu1 %v7581_v16  ;;  %5636 = vmatpush1.bf16.msra.mxu0 %v7583_v36 }
 0x826   :  { %5638 = vmatprep.subr.bf16.mxu0 %v7591_v11 }
 0x828   :  { %5668 = vmatpush1.bf16.msra.mxu1 %v7586_v20 }
 0x829   :  { %5670 = vmatprep.subr.bf16.mxu1 %v7593_v24  ;;  %5640 = vmatpush1.bf16.msra.mxu0 %v7595_v58 }
 0x82a   :  { %5642 = vmatprep.subr.bf16.mxu0 %v7602_v2 }
 0x82c   :  { %5672 = vmatpush1.bf16.msra.mxu1 %v7598_v47 }
 0x82d   :  { %5674 = vmatprep.subr.bf16.mxu1 %v7604_v59  ;;  %5644 = vmatpush1.bf16.msra.mxu0 %v7607_v1 }
 0x82e   :  { %5646 = vmatprep.subr.bf16.mxu0 %v7613_v6 }
 0x830   :  { %5676 = vmatpush1.bf16.msra.mxu1 %v7611_v7 }
 0x831   :  { %5678 = vmatprep.subr.bf16.mxu1 %v7615_v22  ;;  %5648 = vmatpush1.bf16.msra.mxu0 %v7618_v12 }
 0x832   :  { %5650 = vmatprep.subr.bf16.mxu0 %v7627_v13 }
 0x834   :  { %5680 = vmatpush1.bf16.msra.mxu1 %v7622_v40 }
 0x835   :  { %5682 = vmatprep.subr.bf16.mxu1 %v7629_v62  ;;  %5652 = vmatpush1.bf16.msra.mxu0 %v7631_v49 }
 0x836   :  { %5686 = vmatprep.subr.bf16.mxu0 %v7543_v3 }
 0x838   :  { %5684 = vmatpush1.bf16.msra.mxu1 %v7634_v60 }
 0x839   :  { %5718 = vmatprep.subr.bf16.mxu1 %v7545_v14 }
 0x8b5   :  { %v2348_v53 = vpop.f32.mrb[14].mxu0  ;;  %v2419_v15 = vpop.f32.mrb[14].mxu1 }
 0x8b6   :  { %v6171_v26 = vadd.f32 %v2348_v53, %v7156_v37  ;;  %v2350_v44 = vpop.f32.mrb[15].mxu0  ;;  %v2421_v42 = vpop.f32.mrb[15].mxu1  ;;  %v6187_v48 = vadd.f32 %v2419_v15, %v7167_v52  ;;  %v2815_v15 = vld [vmem:[#allocation9 + $0x8] sm:$0xff] }
 0x8b7   :  { %v6172_v56 = vadd.f32 %v2350_v44, %v7160_v38  ;;  %v6188_v4 = vadd.f32 %v2421_v42, %v7173_v61 }
 0x8b8   :  { %v4901_v55 = vmul.f32 -1.442695, %v6171_v26  ;;  %v4903_v28 = vmul.f32 -1.442695, %v6187_v48 }
 0x8b9   :  { %v4902_v32 = vmul.f32 -1.442695, %v6172_v56 }
 0x8ba   :  { %6413 = vpow2.f32 %v4901_v55 }
 0x8bb   :  { %6415 = vpow2.f32 %v4902_v32 }
 0x8bc   :  { %6417 = vtanh.f32 %v6188_v4 }
 0x8bd   :  { %6419 = vpow2.f32 %v4903_v28 }
 0x8c4   :  { %v6414_v46 = vpop.eup %6413 }
 0x8c5   :  { %v2442_v5 = vadd.f32 1.0, %v6414_v46  ;;  %v6416_v9 = vpop.eup %6415 }
 0x8c6   :  { %v2443_v37 = vadd.f32 1.0, %v6416_v9  ;;  %v6418_v21 = vpop.eup %6417 }
 0x8c7   :  { %6421 = vrcp.f32 %v2442_v5  ;;  %v6420_v8 = vpop.eup %6419 }
 0x8c8   :  { %6423 = vrcp.f32 %v2443_v37  ;;  %v2444_v30 = vadd.f32 1.0, %v6420_v8 }
 0x8ca   :  { %6425 = vrcp.f32 %v2444_v30 }
 0x8d1   :  { %v6422_v38 = vpop.eup %6421 }
 0x8d2   :  { %v2454_v17 = vmul.f32 %v6422_v38, %v6418_v21  ;;  %v6424_v43 = vpop.eup %6423 }
 0x8d3   :  { %v2453_v27 = vmul.f32 %v6424_v43, %v7506_v50  ;;  %v2526_v50 = vld [vmem:[%s8051_s8] sm:$0xf] }
 0x8d4   :  { %v6426_v61 = vpop.eup %6425  ;;  %v7687_v26 = vrot.slane %v2526_v50, %v224_v33  ;;  %v7691_v44 = vrot.slane %v2526_v50, %v228_v35  ;;  %v7697_v5 = vrot.slane %v2526_v50, %v232_v39  ;;  %v7701_v33 = vrot.slane %v2526_v50, %v236_v57 }
 0x8d5   :  { %v2455_v52 = vadd.f32 %v2454_v17, %v2453_v27  ;;  %v2818_v27 = vld [vmem:[#allocation11 + $0x8] sm:$0xff] }
 0x8d7   :  { %6427 = vtanh.f32 %v2455_v52 }
 0x8e1   :  { %v6428_v34 = vpop.eup %6427 }
 0x8e2   :  { %v2457_v53 = vmul.f32 %v6428_v34, %v6426_v61 }
 0x8e4   :  { %2663 = vmatmul.mubr.f32.gmra.mrb[30].mxu0 %v2457_v53  ;;  %2776 = vmatmul.mubr.f32.gmra.mrb[30].mxu1 %v2457_v53 }
 0x8e5   :  { %2949 = vmatprep.mubr.f32.mxu0 %v6785_v0  ;;  %3020 = vmatprep.mubr.f32.mxu1 %v6785_v0 }
 0x8e8   :  { %2950 = vmatmul.mubr.f32.vlgmr.msra.gmra.mrb[16].mxu0 %v2815_v15  ;;  %3021 = vmatmul.mubr.f32.vlgmr.msra.gmra.mrb[16].mxu1 %v2815_v15 }
 0x8e9   :  { %5688 = vmatpush1.bf16.msra.mxu0 %v7547_v18  ;;  %5720 = vmatpush1.bf16.msra.mxu1 %v7550_v29 }
 0x8ea   :  { %5690 = vmatprep.subr.bf16.mxu0 %v7555_v51  ;;  %5722 = vmatprep.subr.bf16.mxu1 %v7557_v25 }
 0x8eb   :  { %3191 = vmatprep.mubr.f32.mxu0 %v6785_v0  ;;  %3262 = vmatprep.mubr.f32.mxu1 %v6785_v0 }
 0x8ed   :  { %5692 = vmatpush1.bf16.msra.mxu0 %v7559_v23  ;;  %5724 = vmatpush1.bf16.msra.mxu1 %v7562_v63 }
 0x8ee   :  { %5694 = vmatprep.subr.bf16.mxu0 %v7567_v45  ;;  %5726 = vmatprep.subr.bf16.mxu1 %v7569_v10 }
 0x8f1   :  { %5696 = vmatpush1.bf16.msra.mxu0 %v7571_v19  ;;  %5728 = vmatpush1.bf16.msra.mxu1 %v7574_v54 }
 0x8f2   :  { %5698 = vmatprep.subr.bf16.mxu0 %v7579_v41  ;;  %5730 = vmatprep.subr.bf16.mxu1 %v7581_v16 }
 0x8f5   :  { %5700 = vmatpush1.bf16.msra.mxu0 %v7583_v36  ;;  %5732 = vmatpush1.bf16.msra.mxu1 %v7586_v20 }
 0x8f6   :  { %5702 = vmatprep.subr.bf16.mxu0 %v7591_v11  ;;  %5734 = vmatprep.subr.bf16.mxu1 %v7593_v24 }
 0x8f9   :  { %5704 = vmatpush1.bf16.msra.mxu0 %v7595_v58  ;;  %5736 = vmatpush1.bf16.msra.mxu1 %v7598_v47 }
 0x8fa   :  { %5706 = vmatprep.subr.bf16.mxu0 %v7602_v2  ;;  %5738 = vmatprep.subr.bf16.mxu1 %v7604_v59 }
 0x8fd   :  { %5708 = vmatpush1.bf16.msra.mxu0 %v7607_v1  ;;  %5740 = vmatpush1.bf16.msra.mxu1 %v7611_v7 }
 0x8fe   :  { %5710 = vmatprep.subr.bf16.mxu0 %v7613_v6  ;;  %5742 = vmatprep.subr.bf16.mxu1 %v7615_v22 }
 0x901   :  { %5712 = vmatpush1.bf16.msra.mxu0 %v7618_v12  ;;  %5744 = vmatpush1.bf16.msra.mxu1 %v7622_v40 }
 0x902   :  { %5714 = vmatprep.subr.bf16.mxu0 %v7627_v13  ;;  %5746 = vmatprep.subr.bf16.mxu1 %v7629_v62 }
 0x905   :  { %5716 = vmatpush1.bf16.msra.mxu0 %v7631_v49  ;;  %5748 = vmatpush1.bf16.msra.mxu1 %v7634_v60 }
 0x906   :  { %5750 = vmatprep.subr.bf16.mxu0 %v7543_v3  ;;  %5782 = vmatprep.subr.bf16.mxu1 %v7545_v14 }
 0x9bb   :  { %v2951_v42 = vpop.f32.mrb[16].mxu0  ;;  %v3022_v56 = vpop.f32.mrb[16].mxu1 }
 0x9bc   :  { %v6189_v55 = vadd.f32 %v2951_v42, %v7687_v26  ;;  %v2953_v32 = vpop.f32.mrb[17].mxu0  ;;  %v3024_v48 = vpop.f32.mrb[17].mxu1  ;;  %v6205_v35 = vadd.f32 %v3022_v56, %v7697_v5 }
 0x9bd   :  { %v6190_v4 = vadd.f32 %v2953_v32, %v7691_v44  ;;  %v6206_v9 = vadd.f32 %v3024_v48, %v7701_v33 }
 0x9be   :  { %v4904_v28 = vmul.f32 -1.442695, %v6189_v55  ;;  %v4906_v37 = vmul.f32 -1.442695, %v6205_v35 }
 0x9bf   :  { %v4905_v46 = vmul.f32 -1.442695, %v6190_v4 }
 0x9c0   :  { %6429 = vpow2.f32 %v4904_v28 }
 0x9c1   :  { %6431 = vpow2.f32 %v4905_v46 }
 0x9c2   :  { %6433 = vtanh.f32 %v6206_v9 }
 0x9c3   :  { %6435 = vpow2.f32 %v4906_v37 }
 0x9ca   :  { %v6430_v21 = vpop.eup %6429 }
 0x9cb   :  { %v3044_v8 = vadd.f32 1.0, %v6430_v21  ;;  %v6432_v38 = vpop.eup %6431 }
 0x9cc   :  { %v3045_v17 = vadd.f32 1.0, %v6432_v38  ;;  %v6434_v39 = vpop.eup %6433 }
 0x9cd   :  { %6437 = vrcp.f32 %v3044_v8  ;;  %v6436_v43 = vpop.eup %6435 }
 0x9ce   :  { %6439 = vrcp.f32 %v3045_v17  ;;  %v3046_v52 = vadd.f32 1.0, %v6436_v43 }
 0x9d0   :  { %6441 = vrcp.f32 %v3046_v52 }
 0x9d7   :  { %v6438_v30 = vpop.eup %6437 }
 0x9d8   :  { %v3056_v31 = vmul.f32 %v6438_v30, %v6434_v39  ;;  %v6440_v57 = vpop.eup %6439 }
 0x9d9   :  { %v3055_v61 = vmul.f32 %v6440_v57, %v2818_v27 }
 0x9da   :  { %v6442_v53 = vpop.eup %6441 }
 0x9db   :  { %v7705_v34 = vadd.f32 %v3056_v31, %v3055_v61 }
 0x9dd   :  { %6443 = vtanh.f32 %v7705_v34 }
 0x9e7   :  { %v6444_v15 = vpop.eup %6443 }
 0x9e8   :  { %v3059_v50 = vmul.f32 %v6444_v15, %v6442_v53  ;;  %v3789_v15 = vld [vmem:[#allocation17] sm:$0xff] }
 0x9ea   :  { %3192 = vmatmul.mubr.f32.vlgmr.msra.gmra.mrb[18].mxu0 %v3059_v50  ;;  %3263 = vmatmul.mubr.f32.vlgmr.msra.gmra.mrb[18].mxu1 %v3059_v50  ;;  %v3793_v50 = vld [vmem:[#allocation17 + $0x20] sm:$0xff] }
 0x9eb   :  { %5752 = vmatpush1.bf16.msra.mxu0 %v7547_v18  ;;  %5784 = vmatpush1.bf16.msra.mxu1 %v7550_v29 }
 0x9ec   :  { %5754 = vmatprep.subr.bf16.mxu0 %v7555_v51  ;;  %5786 = vmatprep.subr.bf16.mxu1 %v7557_v25 }
 0x9ed   :  { %3433 = vmatprep.mubr.f32.mxu0 %v6785_v0  ;;  %3504 = vmatprep.mubr.f32.mxu1 %v6785_v0 }
 0x9ef   :  { %5756 = vmatpush1.bf16.msra.mxu0 %v7559_v23  ;;  %5788 = vmatpush1.bf16.msra.mxu1 %v7562_v63 }
 0x9f0   :  { %5758 = vmatprep.subr.bf16.mxu0 %v7567_v45  ;;  %5790 = vmatprep.subr.bf16.mxu1 %v7569_v10 }
 0x9f3   :  { %5760 = vmatpush1.bf16.msra.mxu0 %v7571_v19  ;;  %5792 = vmatpush1.bf16.msra.mxu1 %v7574_v54 }
 0x9f4   :  { %5762 = vmatprep.subr.bf16.mxu0 %v7579_v41  ;;  %5794 = vmatprep.subr.bf16.mxu1 %v7581_v16 }
 0x9f7   :  { %5764 = vmatpush1.bf16.msra.mxu0 %v7583_v36  ;;  %5796 = vmatpush1.bf16.msra.mxu1 %v7586_v20 }
 0x9f8   :  { %5766 = vmatprep.subr.bf16.mxu0 %v7591_v11  ;;  %5798 = vmatprep.subr.bf16.mxu1 %v7593_v24 }
 0x9fb   :  { %5768 = vmatpush1.bf16.msra.mxu0 %v7595_v58  ;;  %5800 = vmatpush1.bf16.msra.mxu1 %v7598_v47 }
 0x9fc   :  { %5770 = vmatprep.subr.bf16.mxu0 %v7602_v2  ;;  %5802 = vmatprep.subr.bf16.mxu1 %v7604_v59 }
 0x9ff   :  { %5772 = vmatpush1.bf16.msra.mxu0 %v7607_v1  ;;  %5804 = vmatpush1.bf16.msra.mxu1 %v7611_v7 }
 0xa00   :  { %5774 = vmatprep.subr.bf16.mxu0 %v7613_v6  ;;  %5806 = vmatprep.subr.bf16.mxu1 %v7615_v22 }
 0xa03   :  { %5776 = vmatpush1.bf16.msra.mxu0 %v7618_v12  ;;  %5808 = vmatpush1.bf16.msra.mxu1 %v7622_v40 }
 0xa04   :  { %5778 = vmatprep.subr.bf16.mxu0 %v7627_v13  ;;  %5810 = vmatprep.subr.bf16.mxu1 %v7629_v62 }
 0xa07   :  { %5780 = vmatpush1.bf16.msra.mxu0 %v7631_v49  ;;  %5812 = vmatpush1.bf16.msra.mxu1 %v7634_v60 }
 0xa08   :  { %5814 = vmatprep.subr.bf16.mxu0 %v7543_v3  ;;  %5846 = vmatprep.subr.bf16.mxu1 %v7545_v14 }
 0xabd   :  { %v3193_v42 = vpop.f32.mrb[18].mxu0  ;;  %v3264_v56 = vpop.f32.mrb[18].mxu1 }
 0xabe   :  { %v6191_v55 = vadd.f32 %v3193_v42, %v7687_v26  ;;  %v3195_v32 = vpop.f32.mrb[19].mxu0  ;;  %v3266_v48 = vpop.f32.mrb[19].mxu1  ;;  %v6207_v35 = vadd.f32 %v3264_v56, %v7697_v5  ;;  %v7796_v56 = vpack.c.bf16 %v3793_v50, %v3789_v15  ;;  %v3832_v15 = vld [vmem:[#allocation17 + $0x158] sm:$0xff] }
 0xabf   :  { %v6192_v4 = vadd.f32 %v3195_v32, %v7691_v44  ;;  %v6208_v9 = vadd.f32 %v3266_v48, %v7701_v33  ;;  %v3795_v32 = vld [vmem:[#allocation17 + $0x30] sm:$0xff] }
 0xac0   :  { %v4907_v28 = vmul.f32 -1.442695, %v6191_v55  ;;  %v4909_v37 = vmul.f32 -1.442695, %v6207_v35  ;;  %v3791_v55 = vld [vmem:[#allocation17 + $0x10] sm:$0xff] }
 0xac1   :  { %v4908_v46 = vmul.f32 -1.442695, %v6192_v4  ;;  %v7799_v48 = vpack.c.bf16 %v3795_v32, %v3791_v55  ;;  %v3798_v4 = vld [vmem:[#allocation17 + $0x48] sm:$0xff]  ;;  %v3836_v55 = vld [vmem:[#allocation17 + $0x178] sm:$0xff]  ;;  %v3829_v32 = vld [vmem:[#allocation17 + $0x140] sm:$0xff] }
 0xac2   :  { %6445 = vpow2.f32 %v4907_v28  ;;  %v3802_v28 = vld [vmem:[#allocation17 + $0x68] sm:$0xff] }
 0xac3   :  { %6447 = vpow2.f32 %v4908_v46  ;;  %v3800_v46 = vld [vmem:[#allocation17 + $0x58] sm:$0xff]  ;;  %v7804_v35 = vpack.c.bf16 %v3802_v28, %v3798_v4  ;;  %v3833_v4 = vld [vmem:[#allocation17 + $0x160] sm:$0xff]  ;;  %v7854_v28 = vpack.c.bf16 %v3836_v55, %v3832_v15 }
 0xac4   :  { %6449 = vtanh.f32 %v6208_v9  ;;  %v3804_v9 = vld [vmem:[#allocation17 + $0x78] sm:$0xff] }
 0xac5   :  { %6451 = vpow2.f32 %v4909_v37  ;;  %v3797_v37 = vld [vmem:[#allocation17 + $0x40] sm:$0xff] }
 0xacc   :  { %v6446_v3 = vpop.eup %6445 }
 0xacd   :  { %v3286_v21 = vadd.f32 1.0, %v6446_v3  ;;  %v6448_v14 = vpop.eup %6447  ;;  %v3801_v3 = vld [vmem:[#allocation17 + $0x60] sm:$0xff] }
 0xace   :  { %v3287_v8 = vadd.f32 1.0, %v6448_v14  ;;  %v6450_v38 = vpop.eup %6449  ;;  %v7808_v14 = vpack.c.bf16 %v3801_v3, %v3797_v37  ;;  %v3835_v37 = vld [vmem:[#allocation17 + $0x170] sm:$0xff]  ;;  %v3838_v3 = vld [vmem:[#allocation17 + $0x188] sm:$0xff] }
 0xacf   :  { %6453 = vrcp.f32 %v3286_v21  ;;  %v6452_v17 = vpop.eup %6451  ;;  %v7806_v21 = vpack.c.bf16 %v3804_v9, %v3800_v46  ;;  %v7856_v46 = vpack.c.bf16 %v3833_v4, %v3829_v32  ;;  %v3831_v9 = vld [vmem:[#allocation17 + $0x150] sm:$0xff] }
 0xad0   :  { %6455 = vrcp.f32 %v3287_v8  ;;  %v3288_v27 = vadd.f32 1.0, %v6452_v17  ;;  %v3799_v8 = vld [vmem:[#allocation17 + $0x50] sm:$0xff] }
 0xad2   :  { %6457 = vrcp.f32 %v3288_v27 }
 0xad9   :  { %v6454_v39 = vpop.eup %6453 }
 0xada   :  { %v3298_v43 = vmul.f32 %v6454_v39, %v6450_v38  ;;  %v6456_v30 = vpop.eup %6455  ;;  %v3803_v38 = vld [vmem:[#allocation17 + $0x70] sm:$0xff]  ;;  %v3806_v39 = vld [vmem:[#allocation17 + $0x88] sm:$0xff] }
 0xadb   :  { %v3297_v31 = vmul.f32 %v6456_v30, %v7705_v34  ;;  %v3796_v34 = vld [vmem:[#allocation17 + $0x38] sm:$0xff]  ;;  %v7811_v17 = vpack.c.bf16 %v3803_v38, %v3799_v8  ;;  %v7859_v8 = vpack.c.bf16 %v3835_v37, %v3831_v9  ;;  %v3842_v38 = vld [vmem:[#allocation17 + $0x1a8] sm:$0xff] }
 0xadc   :  { %v6458_v52 = vpop.eup %6457  ;;  %v3808_v30 = vld [vmem:[#allocation17 + $0x98] sm:$0xff] }
 0xadd   :  { %v7747_v57 = vadd.f32 %v3298_v43, %v3297_v31  ;;  %v3810_v43 = vld [vmem:[#allocation17 + $0xa8] sm:$0xff]  ;;  %v3812_v31 = vld [vmem:[#allocation17 + $0xb8] sm:$0xff] }
 0xade   :  { %v7816_v27 = vpack.c.bf16 %v3810_v43, %v3806_v39  ;;  %v3840_v39 = vld [vmem:[#allocation17 + $0x198] sm:$0xff] }
 0xadf   :  { %6459 = vtanh.f32 %v7747_v57  ;;  %v3844_v43 = vld [vmem:[#allocation17 + $0x1b8] sm:$0xff] }
 0xae9   :  { %v6460_v61 = vpop.eup %6459 }
 0xaea   :  { %v3301_v53 = vmul.f32 %v6460_v61, %v6458_v52  ;;  %v3809_v52 = vld [vmem:[#allocation17 + $0xa0] sm:$0xff]  ;;  %v7818_v61 = vpack.c.bf16 %v3812_v31, %v3808_v30  ;;  %v7863_v30 = vpack.c.bf16 %v3842_v38, %v3838_v3  ;;  %v7865_v31 = vpack.c.bf16 %v3844_v43, %v3840_v39 }
 0xaec   :  { %3434 = vmatmul.mubr.f32.vlgmr.msra.gmra.mrb[20].mxu0 %v3301_v53  ;;  %3505 = vmatmul.mubr.f32.vlgmr.msra.gmra.mrb[20].mxu1 %v3301_v53 }
 0xaed   :  { %5816 = vmatpush1.bf16.msra.mxu0 %v7547_v18  ;;  %5848 = vmatpush1.bf16.msra.mxu1 %v7550_v29 }
 0xaee   :  { %5818 = vmatprep.subr.bf16.mxu0 %v7555_v51  ;;  %5850 = vmatprep.subr.bf16.mxu1 %v7557_v25 }
 0xaef   :  { %3675 = vmatprep.mubr.f32.mxu0 %v6785_v0  ;;  %3746 = vmatprep.mubr.f32.mxu1 %v6785_v0 }
 0xaf1   :  { %5820 = vmatpush1.bf16.msra.mxu0 %v7559_v23  ;;  %5852 = vmatpush1.bf16.msra.mxu1 %v7562_v63 }
 0xaf2   :  { %5822 = vmatprep.subr.bf16.mxu0 %v7567_v45  ;;  %5854 = vmatprep.subr.bf16.mxu1 %v7569_v10 }
 0xaf5   :  { %5824 = vmatpush1.bf16.msra.mxu0 %v7571_v19  ;;  %5856 = vmatpush1.bf16.msra.mxu1 %v7574_v54 }
 0xaf6   :  { %5826 = vmatprep.subr.bf16.mxu0 %v7579_v41  ;;  %5858 = vmatprep.subr.bf16.mxu1 %v7581_v16 }
 0xaf9   :  { %5828 = vmatpush1.bf16.msra.mxu0 %v7583_v36  ;;  %5860 = vmatpush1.bf16.msra.mxu1 %v7586_v20 }
 0xafa   :  { %5830 = vmatprep.subr.bf16.mxu0 %v7591_v11  ;;  %5862 = vmatprep.subr.bf16.mxu1 %v7593_v24 }
 0xafd   :  { %5832 = vmatpush1.bf16.msra.mxu0 %v7595_v58  ;;  %5864 = vmatpush1.bf16.msra.mxu1 %v7598_v47 }
 0xafe   :  { %5834 = vmatprep.subr.bf16.mxu0 %v7602_v2  ;;  %5866 = vmatprep.subr.bf16.mxu1 %v7604_v59 }
 0xb01   :  { %5836 = vmatpush1.bf16.msra.mxu0 %v7607_v1  ;;  %5868 = vmatpush1.bf16.msra.mxu1 %v7611_v7 }
 0xb02   :  { %5838 = vmatprep.subr.bf16.mxu0 %v7613_v6  ;;  %5870 = vmatprep.subr.bf16.mxu1 %v7615_v22 }
 0xb05   :  { %5840 = vmatpush1.bf16.msra.mxu0 %v7618_v12  ;;  %5872 = vmatpush1.bf16.msra.mxu1 %v7622_v40 }
 0xb06   :  { %5842 = vmatprep.subr.bf16.mxu0 %v7627_v13  ;;  %5874 = vmatprep.subr.bf16.mxu1 %v7629_v62  ;;  %v3790_v13 = vld [vmem:[#allocation17 + $0x8] sm:$0xff] }
 0xb07   :  { %v3794_v62 = vld [vmem:[#allocation17 + $0x28] sm:$0xff] }
 0xb09   :  { %5844 = vmatpush1.bf16.msra.mxu0 %v7631_v49  ;;  %5876 = vmatpush1.bf16.msra.mxu1 %v7634_v60  ;;  %v3792_v49 = vld [vmem:[#allocation17 + $0x18] sm:$0xff]  ;;  %v7792_v60 = vpack.c.bf16 %v3794_v62, %v3790_v13  ;;  %v3827_v13 = vld [vmem:[#allocation17 + $0x130] sm:$0xff] }
 0xb0a   :  { %v7794_v42 = vpack.c.bf16 %v3796_v34, %v3792_v49  ;;  %v3830_v49 = vld [vmem:[#allocation17 + $0x148] sm:$0xff] }
 0xb0b   :  { %5878 = vmatprep.subr.bf16.mxu0 %v7792_v60  ;;  %v3834_v34 = vld [vmem:[#allocation17 + $0x168] sm:$0xff] }
 0xb0c   :  { %5910 = vmatprep.subr.bf16.mxu1 %v7794_v42  ;;  %v7852_v50 = vpack.c.bf16 %v3834_v34, %v3830_v49 }
 0xbbf   :  { %v3435_v18 = vpop.f32.mrb[20].mxu0  ;;  %v3506_v29 = vpop.f32.mrb[20].mxu1 }
 0xbc0   :  { %v6193_v51 = vadd.f32 %v3435_v18, %v7687_v26  ;;  %v3437_v25 = vpop.f32.mrb[21].mxu0  ;;  %v3508_v23 = vpop.f32.mrb[21].mxu1  ;;  %v6209_v19 = vadd.f32 %v3506_v29, %v7697_v5  ;;  %v3807_v18 = vld [vmem:[#allocation17 + $0x90] sm:$0xff] }
 0xbc1   :  { %v6194_v63 = vadd.f32 %v3437_v25, %v7691_v44  ;;  %v6210_v54 = vadd.f32 %v3508_v23, %v7701_v33  ;;  %v3811_v29 = vld [vmem:[#allocation17 + $0xb0] sm:$0xff]  ;;  %v3814_v25 = vld [vmem:[#allocation17 + $0xc8] sm:$0xff] }
 0xbc2   :  { %v4910_v45 = vmul.f32 -1.442695, %v6193_v51  ;;  %v4912_v41 = vmul.f32 -1.442695, %v6209_v19  ;;  %v7823_v51 = vpack.c.bf16 %v3811_v29, %v3807_v18  ;;  %v3818_v23 = vld [vmem:[#allocation17 + $0xe8] sm:$0xff]  ;;  %v3813_v19 = vld [vmem:[#allocation17 + $0xc0] sm:$0xff] }
 0xbc3   :  { %v4911_v10 = vmul.f32 -1.442695, %v6194_v63  ;;  %v3816_v63 = vld [vmem:[#allocation17 + $0xd8] sm:$0xff]  ;;  %v3839_v18 = vld [vmem:[#allocation17 + $0x190] sm:$0xff] }
 0xbc4   :  { %6461 = vpow2.f32 %v4910_v45  ;;  %v7828_v45 = vpack.c.bf16 %v3818_v23, %v3814_v25  ;;  %v3843_v25 = vld [vmem:[#allocation17 + $0x1b0] sm:$0xff]  ;;  %v3846_v23 = vld [vmem:[#allocation17 + $0x1c8] sm:$0xff] }
 0xbc5   :  { %6463 = vpow2.f32 %v4911_v10  ;;  %v3820_v10 = vld [vmem:[#allocation17 + $0xf8] sm:$0xff] }
 0xbc6   :  { %6465 = vtanh.f32 %v6210_v54  ;;  %v3817_v54 = vld [vmem:[#allocation17 + $0xe0] sm:$0xff] }
 0xbc7   :  { %6467 = vpow2.f32 %v4912_v41  ;;  %v7830_v41 = vpack.c.bf16 %v3820_v10, %v3816_v63  ;;  %v3850_v63 = vld [vmem:[#allocation17 + $0x1e8] sm:$0xff]  ;;  %v7872_v10 = vpack.c.bf16 %v3843_v25, %v3839_v18 }
 0xbce   :  { %v6462_v16 = vpop.eup %6461 }
 0xbcf   :  { %v3528_v36 = vadd.f32 1.0, %v6462_v16  ;;  %v6464_v20 = vpop.eup %6463  ;;  %v7832_v16 = vpack.c.bf16 %v3817_v54, %v3813_v19  ;;  %v7874_v19 = vpack.c.bf16 %v3850_v63, %v3846_v23  ;;  %v3848_v54 = vld [vmem:[#allocation17 + $0x1d8] sm:$0xff] }
 0xbd0   :  { %v3529_v11 = vadd.f32 1.0, %v6464_v20  ;;  %v6466_v24 = vpop.eup %6465  ;;  %v3819_v20 = vld [vmem:[#allocation17 + $0xf0] sm:$0xff] }
 0xbd1   :  { %6469 = vrcp.f32 %v3528_v36  ;;  %v6468_v58 = vpop.eup %6467  ;;  %v3815_v36 = vld [vmem:[#allocation17 + $0xd0] sm:$0xff] }
 0xbd2   :  { %6471 = vrcp.f32 %v3529_v11  ;;  %v3530_v1 = vadd.f32 1.0, %v6468_v58  ;;  %v7835_v11 = vpack.c.bf16 %v3819_v20, %v3815_v36  ;;  %v3826_v58 = vld [vmem:[#allocation17 + $0x128] sm:$0xff]  ;;  %v3852_v36 = vld [vmem:[#allocation17 + $0x1f8] sm:$0xff]  ;;  %v3845_v20 = vld [vmem:[#allocation17 + $0x1c0] sm:$0xff] }
 0xbd4   :  { %6473 = vrcp.f32 %v3530_v1  ;;  %v3821_v1 = vld [vmem:[#allocation17 + $0x100] sm:$0xff] }
 0xbdb   :  { %v6470_v47 = vpop.eup %6469 }
 0xbdc   :  { %v3540_v2 = vmul.f32 %v6470_v47, %v6466_v24  ;;  %v6472_v59 = vpop.eup %6471  ;;  %v3822_v24 = vld [vmem:[#allocation17 + $0x108] sm:$0xff]  ;;  %v3824_v47 = vld [vmem:[#allocation17 + $0x118] sm:$0xff] }
 0xbdd   :  { %v3539_v7 = vmul.f32 %v6472_v59, %v7747_v57  ;;  %v3805_v57 = vld [vmem:[#allocation17 + $0x80] sm:$0xff]  ;;  %v3828_v59 = vld [vmem:[#allocation17 + $0x138] sm:$0xff] }
 0xbde   :  { %v6474_v22 = vpop.eup %6473  ;;  %v7820_v53 = vpack.c.bf16 %v3809_v52, %v3805_v57  ;;  %v3837_v57 = vld [vmem:[#allocation17 + $0x180] sm:$0xff] }
 0xbdf   :  { %v7787_v6 = vadd.f32 %v3540_v2, %v3539_v7  ;;  %v7840_v2 = vpack.c.bf16 %v3826_v58, %v3822_v24  ;;  %v3825_v7 = vld [vmem:[#allocation17 + $0x120] sm:$0xff]  ;;  %v7876_v24 = vpack.c.bf16 %v3852_v36, %v3848_v54 }
 0xbe0   :  { %v3841_v52 = vld [vmem:[#allocation17 + $0x1a0] sm:$0xff] }
 0xbe1   :  { %6475 = vtanh.f32 %v7787_v6  ;;  %v7868_v29 = vpack.c.bf16 %v3841_v52, %v3837_v57  ;;  %v3849_v58 = vld [vmem:[#allocation17 + $0x1e0] sm:$0xff] }
 0xbeb   :  { %v6476_v12 = vpop.eup %6475 }
 0xbec   :  { %v3543_v40 = vmul.f32 %v6476_v12, %v6474_v22  ;;  %v7842_v22 = vpack.c.bf16 %v3828_v59, %v3824_v47  ;;  %v7844_v12 = vpack.c.bf16 %v3825_v7, %v3821_v1  ;;  %v3847_v47 = vld [vmem:[#allocation17 + $0x1d0] sm:$0xff]  ;;  %v7879_v1 = vpack.c.bf16 %v3849_v58, %v3845_v20 }
 0xbed   :  { %v3851_v59 = vld [vmem:[#allocation17 + $0x1f0] sm:$0xff] }
 0xbee   :  { %3676 = vmatmul.mubr.f32.vlgmr.msra.gmra.mrb[22].mxu0 %v3543_v40  ;;  %3747 = vmatmul.mubr.f32.vlgmr.msra.gmra.mrb[22].mxu1 %v3543_v40  ;;  %v3823_v40 = vld [vmem:[#allocation17 + $0x110] sm:$0xff]  ;;  %v7883_v7 = vpack.c.bf16 %v3851_v59, %v3847_v47 }
 0xbef   :  { %3917 = vmatprep.mubr.f32.mxu0 %v6785_v0  ;;  %3988 = vmatprep.mubr.f32.mxu1 %v6785_v0  ;;  %v7847_v62 = vpack.c.bf16 %v3827_v13, %v3823_v40 }
 0xbf0   :  { %5880 = vmatpush1.bf16.msra.mxu0 %v7796_v56  ;;  %5912 = vmatpush1.bf16.msra.mxu1 %v7799_v48 }
 0xbf1   :  { %5882 = vmatprep.subr.bf16.mxu0 %v7804_v35  ;;  %5914 = vmatprep.subr.bf16.mxu1 %v7806_v21 }
 0xbf4   :  { %5884 = vmatpush1.bf16.msra.mxu0 %v7808_v14  ;;  %5916 = vmatpush1.bf16.msra.mxu1 %v7811_v17 }
 0xbf5   :  { %5886 = vmatprep.subr.bf16.mxu0 %v7816_v27  ;;  %5918 = vmatprep.subr.bf16.mxu1 %v7818_v61 }
 0xbf8   :  { %5888 = vmatpush1.bf16.msra.mxu0 %v7820_v53  ;;  %5920 = vmatpush1.bf16.msra.mxu1 %v7823_v51 }
 0xbf9   :  { %5890 = vmatprep.subr.bf16.mxu0 %v7828_v45  ;;  %5922 = vmatprep.subr.bf16.mxu1 %v7830_v41 }
 0xbfc   :  { %5892 = vmatpush1.bf16.msra.mxu0 %v7832_v16  ;;  %5924 = vmatpush1.bf16.msra.mxu1 %v7835_v11 }
 0xbfd   :  { %5894 = vmatprep.subr.bf16.mxu0 %v7840_v2  ;;  %5926 = vmatprep.subr.bf16.mxu1 %v7842_v22 }
 0xc00   :  { %5896 = vmatpush1.bf16.msra.mxu0 %v7844_v12  ;;  %5928 = vmatpush1.bf16.msra.mxu1 %v7847_v62 }
 0xc01   :  { %5898 = vmatprep.subr.bf16.mxu0 %v7852_v50  ;;  %5930 = vmatprep.subr.bf16.mxu1 %v7854_v28 }
 0xc04   :  { %5900 = vmatpush1.bf16.msra.mxu0 %v7856_v46  ;;  %5932 = vmatpush1.bf16.msra.mxu1 %v7859_v8 }
 0xc05   :  { %5902 = vmatprep.subr.bf16.mxu0 %v7863_v30  ;;  %5934 = vmatprep.subr.bf16.mxu1 %v7865_v31 }
 0xc08   :  { %5904 = vmatpush1.bf16.msra.mxu0 %v7868_v29  ;;  %5936 = vmatpush1.bf16.msra.mxu1 %v7872_v10 }
 0xc09   :  { %5906 = vmatprep.subr.bf16.mxu0 %v7874_v19  ;;  %5938 = vmatprep.subr.bf16.mxu1 %v7876_v24 }
 0xc0c   :  { %5908 = vmatpush1.bf16.msra.mxu0 %v7879_v1  ;;  %5940 = vmatpush1.bf16.msra.mxu1 %v7883_v7 }
 0xc0d   :  { %5942 = vmatprep.subr.bf16.mxu0 %v7792_v60  ;;  %5974 = vmatprep.subr.bf16.mxu1 %v7794_v42 }
 0xcc1   :  { %v3677_v40 = vpop.f32.mrb[22].mxu0  ;;  %v3748_v13 = vpop.f32.mrb[22].mxu1 }
 0xcc2   :  { %v6195_v49 = vadd.f32 %v3677_v40, %v7687_v26  ;;  %v3679_v34 = vpop.f32.mrb[23].mxu0  ;;  %v3750_v15 = vpop.f32.mrb[23].mxu1  ;;  %v6211_v9 = vadd.f32 %v3748_v13, %v7697_v5 }
 0xcc3   :  { %v6196_v55 = vadd.f32 %v3679_v34, %v7691_v44  ;;  %v6212_v37 = vadd.f32 %v3750_v15, %v7701_v33 }
 0xcc4   :  { %v4913_v32 = vmul.f32 -1.442695, %v6195_v49  ;;  %v4915_v3 = vmul.f32 -1.442695, %v6211_v9 }
 0xcc5   :  { %v4914_v4 = vmul.f32 -1.442695, %v6196_v55 }
 0xcc6   :  { %6477 = vpow2.f32 %v4913_v32 }
 0xcc7   :  { %6479 = vpow2.f32 %v4914_v4 }
 0xcc8   :  { %6481 = vtanh.f32 %v6212_v37 }
 0xcc9   :  { %6483 = vpow2.f32 %v4915_v3 }
 0xcd0   :  { %v6478_v38 = vpop.eup %6477 }
 0xcd1   :  { %v3770_v39 = vadd.f32 1.0, %v6478_v38  ;;  %v6480_v43 = vpop.eup %6479 }
 0xcd2   :  { %v3771_v57 = vadd.f32 1.0, %v6480_v43  ;;  %v6482_v52 = vpop.eup %6481 }
 0xcd3   :  { %6485 = vrcp.f32 %v3770_v39  ;;  %v6484_v18 = vpop.eup %6483 }
 0xcd4   :  { %6487 = vrcp.f32 %v3771_v57  ;;  %v3772_v54 = vadd.f32 1.0, %v6484_v18 }
 0xcd6   :  { %6489 = vrcp.f32 %v3772_v54 }
 0xcdd   :  { %v6486_v25 = vpop.eup %6485 }
 0xcde   :  { %v3782_v23 = vmul.f32 %v6486_v25, %v6482_v52  ;;  %v6488_v63 = vpop.eup %6487 }
 0xcdf   :  { %v3781_v36 = vmul.f32 %v6488_v63, %v7787_v6 }
 0xce0   :  { %v6490_v58 = vpop.eup %6489 }
 0xce1   :  { %v7895_v20 = vadd.f32 %v3782_v23, %v3781_v36 }
 0xce3   :  { %6491 = vtanh.f32 %v7895_v20 }
 0xced   :  { %v6492_v47 = vpop.eup %6491 }
 0xcee   :  { %v3785_v59 = vmul.f32 %v6492_v47, %v6490_v58 }
 0xcf0   :  { %3918 = vmatmul.mubr.f32.vlgmr.msra.gmra.mrb[24].mxu0 %v3785_v59  ;;  %3989 = vmatmul.mubr.f32.vlgmr.msra.gmra.mrb[24].mxu1 %v3785_v59 }
 0xcf1   :  { %5944 = vmatpush1.bf16.msra.mxu0 %v7796_v56  ;;  %5976 = vmatpush1.bf16.msra.mxu1 %v7799_v48 }
 0xcf2   :  { %5946 = vmatprep.subr.bf16.mxu0 %v7804_v35  ;;  %5978 = vmatprep.subr.bf16.mxu1 %v7806_v21 }
 0xcf3   :  { %4159 = vmatprep.mubr.f32.mxu0 %v6785_v0  ;;  %4230 = vmatprep.mubr.f32.mxu1 %v6785_v0 }
 0xcf5   :  { %5948 = vmatpush1.bf16.msra.mxu0 %v7808_v14  ;;  %5980 = vmatpush1.bf16.msra.mxu1 %v7811_v17 }
 0xcf6   :  { %5950 = vmatprep.subr.bf16.mxu0 %v7816_v27  ;;  %5982 = vmatprep.subr.bf16.mxu1 %v7818_v61 }
 0xcf9   :  { %5952 = vmatpush1.bf16.msra.mxu0 %v7820_v53  ;;  %5984 = vmatpush1.bf16.msra.mxu1 %v7823_v51 }
 0xcfa   :  { %5954 = vmatprep.subr.bf16.mxu0 %v7828_v45  ;;  %5986 = vmatprep.subr.bf16.mxu1 %v7830_v41 }
 0xcfd   :  { %5956 = vmatpush1.bf16.msra.mxu0 %v7832_v16  ;;  %5988 = vmatpush1.bf16.msra.mxu1 %v7835_v11 }
 0xcfe   :  { %5958 = vmatprep.subr.bf16.mxu0 %v7840_v2  ;;  %5990 = vmatprep.subr.bf16.mxu1 %v7842_v22 }
 0xd01   :  { %5960 = vmatpush1.bf16.msra.mxu0 %v7844_v12  ;;  %5992 = vmatpush1.bf16.msra.mxu1 %v7847_v62 }
 0xd02   :  { %5962 = vmatprep.subr.bf16.mxu0 %v7852_v50  ;;  %5994 = vmatprep.subr.bf16.mxu1 %v7854_v28 }
 0xd05   :  { %5964 = vmatpush1.bf16.msra.mxu0 %v7856_v46  ;;  %5996 = vmatpush1.bf16.msra.mxu1 %v7859_v8 }
 0xd06   :  { %5966 = vmatprep.subr.bf16.mxu0 %v7863_v30  ;;  %5998 = vmatprep.subr.bf16.mxu1 %v7865_v31 }
 0xd09   :  { %5968 = vmatpush1.bf16.msra.mxu0 %v7868_v29  ;;  %6000 = vmatpush1.bf16.msra.mxu1 %v7872_v10 }
 0xd0a   :  { %5970 = vmatprep.subr.bf16.mxu0 %v7874_v19  ;;  %6002 = vmatprep.subr.bf16.mxu1 %v7876_v24 }
 0xd0d   :  { %5972 = vmatpush1.bf16.msra.mxu0 %v7879_v1  ;;  %6004 = vmatpush1.bf16.msra.mxu1 %v7883_v7 }
 0xd0e   :  { %6006 = vmatprep.subr.bf16.mxu0 %v7792_v60  ;;  %6038 = vmatprep.subr.bf16.mxu1 %v7794_v42 }
 0xdc3   :  { %v3919_v6 = vpop.f32.mrb[24].mxu0  ;;  %v3990_v40 = vpop.f32.mrb[24].mxu1 }
 0xdc4   :  { %v6197_v13 = vadd.f32 %v3919_v6, %v7687_v26  ;;  %v3921_v49 = vpop.f32.mrb[25].mxu0  ;;  %v3992_v34 = vpop.f32.mrb[25].mxu1  ;;  %v6213_v4 = vadd.f32 %v3990_v40, %v7697_v5 }
 0xdc5   :  { %v6198_v15 = vadd.f32 %v3921_v49, %v7691_v44  ;;  %v6214_v9 = vadd.f32 %v3992_v34, %v7701_v33 }
 0xdc6   :  { %v4916_v55 = vmul.f32 -1.442695, %v6197_v13  ;;  %v4918_v37 = vmul.f32 -1.442695, %v6213_v4 }
 0xdc7   :  { %v4917_v32 = vmul.f32 -1.442695, %v6198_v15 }
 0xdc8   :  { %6493 = vpow2.f32 %v4916_v55 }
 0xdc9   :  { %6495 = vpow2.f32 %v4917_v32 }
 0xdca   :  { %6497 = vtanh.f32 %v6214_v9 }
 0xdcb   :  { %6499 = vpow2.f32 %v4918_v37 }
 0xdd2   :  { %v6494_v3 = vpop.eup %6493 }
 0xdd3   :  { %v4012_v38 = vadd.f32 1.0, %v6494_v3  ;;  %v6496_v39 = vpop.eup %6495 }
 0xdd4   :  { %v4013_v43 = vadd.f32 1.0, %v6496_v39  ;;  %v6498_v57 = vpop.eup %6497 }
 0xdd5   :  { %6501 = vrcp.f32 %v4012_v38  ;;  %v6500_v52 = vpop.eup %6499 }
 0xdd6   :  { %6503 = vrcp.f32 %v4013_v43  ;;  %v4014_v63 = vadd.f32 1.0, %v6500_v52 }
 0xdd8   :  { %6505 = vrcp.f32 %v4014_v63 }
 0xddf   :  { %v6502_v18 = vpop.eup %6501 }
 0xde0   :  { %v4024_v25 = vmul.f32 %v6502_v18, %v6498_v57  ;;  %v6504_v23 = vpop.eup %6503 }
 0xde1   :  { %v4023_v54 = vmul.f32 %v6504_v23, %v7895_v20 }
 0xde2   :  { %v6506_v58 = vpop.eup %6505 }
 0xde3   :  { %v7937_v36 = vadd.f32 %v4024_v25, %v4023_v54 }
 0xde5   :  { %6507 = vtanh.f32 %v7937_v36 }
 0xdef   :  { %v6508_v47 = vpop.eup %6507 }
 0xdf0   :  { %v4027_v59 = vmul.f32 %v6508_v47, %v6506_v58  ;;  %v4761_v47 = vld [vmem:[#allocation18 + $0x18] sm:$0xff] }
 0xdf2   :  { %4160 = vmatmul.mubr.f32.vlgmr.msra.gmra.mrb[26].mxu0 %v4027_v59  ;;  %4231 = vmatmul.mubr.f32.vlgmr.msra.gmra.mrb[26].mxu1 %v4027_v59 }
 0xdf3   :  { %6008 = vmatpush1.bf16.msra.mxu0 %v7796_v56  ;;  %6040 = vmatpush1.bf16.msra.mxu1 %v7799_v48 }
 0xdf4   :  { %6010 = vmatprep.subr.bf16.mxu0 %v7804_v35  ;;  %6042 = vmatprep.subr.bf16.mxu1 %v7806_v21 }
 0xdf5   :  { %4401 = vmatprep.mubr.f32.mxu0 %v6785_v0  ;;  %4472 = vmatprep.mubr.f32.mxu1 %v6785_v0 }
 0xdf7   :  { %6012 = vmatpush1.bf16.msra.mxu0 %v7808_v14  ;;  %6044 = vmatpush1.bf16.msra.mxu1 %v7811_v17 }
 0xdf8   :  { %6014 = vmatprep.subr.bf16.mxu0 %v7816_v27  ;;  %6046 = vmatprep.subr.bf16.mxu1 %v7818_v61 }
 0xdfb   :  { %6016 = vmatpush1.bf16.msra.mxu0 %v7820_v53  ;;  %6048 = vmatpush1.bf16.msra.mxu1 %v7823_v51 }
 0xdfc   :  { %6018 = vmatprep.subr.bf16.mxu0 %v7828_v45  ;;  %6050 = vmatprep.subr.bf16.mxu1 %v7830_v41 }
 0xdff   :  { %6020 = vmatpush1.bf16.msra.mxu0 %v7832_v16  ;;  %6052 = vmatpush1.bf16.msra.mxu1 %v7835_v11 }
 0xe00   :  { %6022 = vmatprep.subr.bf16.mxu0 %v7840_v2  ;;  %6054 = vmatprep.subr.bf16.mxu1 %v7842_v22 }
 0xe03   :  { %6024 = vmatpush1.bf16.msra.mxu0 %v7844_v12  ;;  %6056 = vmatpush1.bf16.msra.mxu1 %v7847_v62 }
 0xe04   :  { %6026 = vmatprep.subr.bf16.mxu0 %v7852_v50  ;;  %6058 = vmatprep.subr.bf16.mxu1 %v7854_v28 }
 0xe07   :  { %6028 = vmatpush1.bf16.msra.mxu0 %v7856_v46  ;;  %6060 = vmatpush1.bf16.msra.mxu1 %v7859_v8 }
 0xe08   :  { %6030 = vmatprep.subr.bf16.mxu0 %v7863_v30  ;;  %6062 = vmatprep.subr.bf16.mxu1 %v7865_v31 }
 0xe0b   :  { %6032 = vmatpush1.bf16.msra.mxu0 %v7868_v29  ;;  %6064 = vmatpush1.bf16.msra.mxu1 %v7872_v10 }
 0xe0c   :  { %6034 = vmatprep.subr.bf16.mxu0 %v7874_v19  ;;  %6066 = vmatprep.subr.bf16.mxu1 %v7876_v24 }
 0xe0f   :  { %6036 = vmatpush1.bf16.msra.mxu0 %v7879_v1  ;;  %6068 = vmatpush1.bf16.msra.mxu1 %v7883_v7 }
 0xe10   :  { %6070 = vmatprep.subr.bf16.mxu0 %v7792_v60  ;;  %6102 = vmatprep.subr.bf16.mxu1 %v7794_v42 }
 0xec5   :  { %v4161_v20 = vpop.f32.mrb[26].mxu0  ;;  %v4232_v6 = vpop.f32.mrb[26].mxu1 }
 0xec6   :  { %v6199_v40 = vadd.f32 %v4161_v20, %v7687_v26  ;;  %v4163_v13 = vpop.f32.mrb[27].mxu0  ;;  %v4234_v49 = vpop.f32.mrb[27].mxu1  ;;  %v6215_v32 = vadd.f32 %v4232_v6, %v7697_v5  ;;  %v4762_v20 = vld [vmem:[#allocation18 + $0x20] sm:$0xff]  ;;  %v4763_v6 = vld [vmem:[#allocation18 + $0x28] sm:$0xff] }
 0xec7   :  { %v6200_v34 = vadd.f32 %v4163_v13, %v7691_v44  ;;  %v6216_v4 = vadd.f32 %v4234_v49, %v7701_v33  ;;  %v4764_v13 = vld [vmem:[#allocation18 + $0x30] sm:$0xff]  ;;  %v4765_v49 = vld [vmem:[#allocation18 + $0x38] sm:$0xff] }
 0xec8   :  { %v4919_v15 = vmul.f32 -1.442695, %v6199_v40  ;;  %v4921_v9 = vmul.f32 -1.442695, %v6215_v32  ;;  %v6140_v40 = vpack.c.bf16 %v4763_v6, %v4762_v20 }
 0xec9   :  { %v4920_v55 = vmul.f32 -1.442695, %v6200_v34  ;;  %v6143_v34 = vpack.c.bf16 %v4765_v49, %v4764_v13 }
 0xeca   :  { %6509 = vpow2.f32 %v4919_v15  ;;  %v4766_v15 = vld [vmem:[#allocation18 + $0x40] sm:$0xff] }
 0xecb   :  { %6511 = vpow2.f32 %v4920_v55  ;;  %v4767_v55 = vld [vmem:[#allocation18 + $0x48] sm:$0xff] }
 0xecc   :  { %6513 = vtanh.f32 %v6216_v4  ;;  %v6146_v32 = vpack.c.bf16 %v4767_v55, %v4766_v15  ;;  %v4768_v4 = vld [vmem:[#allocation18 + $0x50] sm:$0xff] }
 0xecd   :  { %6515 = vpow2.f32 %v4921_v9  ;;  %v4769_v9 = vld [vmem:[#allocation18 + $0x58] sm:$0xff] }
 0xed4   :  { %v6510_v60 = vpop.eup %6509 }
 0xed5   :  { %v4254_v37 = vadd.f32 1.0, %v6510_v60  ;;  %v6512_v42 = vpop.eup %6511  ;;  %v6149_v60 = vpack.c.bf16 %v4769_v9, %v4768_v4 }
 0xed6   :  { %v4255_v3 = vadd.f32 1.0, %v6512_v42  ;;  %v6514_v38 = vpop.eup %6513  ;;  %v4771_v42 = vld [vmem:[#allocation18 + $0x68] sm:$0xff] }
 0xed7   :  { %6517 = vrcp.f32 %v4254_v37  ;;  %v6516_v39 = vpop.eup %6515  ;;  %v4770_v37 = vld [vmem:[#allocation18 + $0x60] sm:$0xff] }
 0xed8   :  { %6519 = vrcp.f32 %v4255_v3  ;;  %v4256_v18 = vadd.f32 1.0, %v6516_v39  ;;  %v6152_v3 = vpack.c.bf16 %v4771_v42, %v4770_v37  ;;  %v4773_v39 = vld [vmem:[#allocation18 + $0x78] sm:$0xff] }
 0xeda   :  { %6521 = vrcp.f32 %v4256_v18 }
 0xee1   :  { %v6518_v43 = vpop.eup %6517 }
 0xee2   :  { %v4266_v57 = vmul.f32 %v6518_v43, %v6514_v38  ;;  %v6520_v52 = vpop.eup %6519  ;;  %v4772_v38 = vld [vmem:[#allocation18 + $0x70] sm:$0xff] }
 0xee3   :  { %v4265_v25 = vmul.f32 %v6520_v52, %v7937_v36  ;;  %v4760_v36 = vld [vmem:[#allocation18 + $0x10] sm:$0xff]  ;;  %v6155_v43 = vpack.c.bf16 %v4773_v39, %v4772_v38 }
 0xee4   :  { %v6522_v63 = vpop.eup %6521  ;;  %v6137_v59 = vpack.c.bf16 %v4761_v47, %v4760_v36 }
 0xee5   :  { %v7979_v23 = vadd.f32 %v4266_v57, %v4265_v25 }
 0xee7   :  { %6523 = vtanh.f32 %v7979_v23 }
 0xef1   :  { %v6524_v54 = vpop.eup %6523 }
 0xef2   :  { %v4269_v58 = vmul.f32 %v6524_v54, %v6522_v63 }
 0xef4   :  { %4402 = vmatmul.mubr.f32.vlgmr.msra.gmra.mrb[28].mxu0 %v4269_v58  ;;  %4473 = vmatmul.mubr.f32.vlgmr.msra.gmra.mrb[28].mxu1 %v4269_v58 }
 0xef5   :  { %6072 = vmatpush1.bf16.msra.mxu0 %v7796_v56  ;;  %6104 = vmatpush1.bf16.msra.mxu1 %v7799_v48 }
 0xef6   :  { %6074 = vmatprep.subr.bf16.mxu0 %v7804_v35  ;;  %6106 = vmatprep.subr.bf16.mxu1 %v7806_v21 }
 0xef7   :  { %4643 = vmatprep.mubr.f32.mxu0 %v6785_v0  ;;  %4714 = vmatprep.mubr.f32.mxu1 %v6785_v0 }
 0xef9   :  { %6076 = vmatpush1.bf16.msra.mxu0 %v7808_v14  ;;  %6108 = vmatpush1.bf16.msra.mxu1 %v7811_v17 }
 0xefa   :  { %6078 = vmatprep.subr.bf16.mxu0 %v7816_v27  ;;  %6110 = vmatprep.subr.bf16.mxu1 %v7818_v61 }
 0xefd   :  { %6080 = vmatpush1.bf16.msra.mxu0 %v7820_v53  ;;  %6112 = vmatpush1.bf16.msra.mxu1 %v7823_v51 }
 0xefe   :  { %6082 = vmatprep.subr.bf16.mxu0 %v7828_v45  ;;  %6114 = vmatprep.subr.bf16.mxu1 %v7830_v41 }
 0xf01   :  { %6084 = vmatpush1.bf16.msra.mxu0 %v7832_v16  ;;  %6116 = vmatpush1.bf16.msra.mxu1 %v7835_v11 }
 0xf02   :  { %6086 = vmatprep.subr.bf16.mxu0 %v7840_v2  ;;  %6118 = vmatprep.subr.bf16.mxu1 %v7842_v22 }
 0xf05   :  { %6088 = vmatpush1.bf16.msra.mxu0 %v7844_v12  ;;  %6120 = vmatpush1.bf16.msra.mxu1 %v7847_v62 }
 0xf06   :  { %6090 = vmatprep.subr.bf16.mxu0 %v7852_v50  ;;  %6122 = vmatprep.subr.bf16.mxu1 %v7854_v28 }
 0xf09   :  { %6092 = vmatpush1.bf16.msra.mxu0 %v7856_v46  ;;  %6124 = vmatpush1.bf16.msra.mxu1 %v7859_v8 }
 0xf0a   :  { %6094 = vmatprep.subr.bf16.mxu0 %v7863_v30  ;;  %6126 = vmatprep.subr.bf16.mxu1 %v7865_v31 }
 0xf0d   :  { %6096 = vmatpush1.bf16.msra.mxu0 %v7868_v29  ;;  %6128 = vmatpush1.bf16.msra.mxu1 %v7872_v10 }
 0xf0e   :  { %6098 = vmatprep.subr.bf16.mxu0 %v7874_v19  ;;  %6130 = vmatprep.subr.bf16.mxu1 %v7876_v24  ;;  %v4758_v19 = vld [vmem:[#allocation18] sm:$0xff]  ;;  %v4759_v24 = vld [vmem:[#allocation18 + $0x8] sm:$0xff] }
 0xf11   :  { %6100 = vmatpush1.bf16.msra.mxu0 %v7879_v1  ;;  %6132 = vmatpush1.bf16.msra.mxu1 %v7883_v7  ;;  %v6134_v1 = vpack.c.bf16 %v4759_v24, %v4758_v19  ;;  %v6786_v7 = vmov 0.0|0.0  }
 0xf12   :  { %6133 = vmatprep.subr.bf16.mxu0 %v6786_v7 }
 0xfc7   :  { %v4403_v56 = vpop.f32.mrb[28].mxu0  ;;  %v4474_v48 = vpop.f32.mrb[28].mxu1 }
 0xfc8   :  { %v6201_v35 = vadd.f32 %v4403_v56, %v7687_v26  ;;  %v4405_v21 = vpop.f32.mrb[29].mxu0  ;;  %v4476_v14 = vpop.f32.mrb[29].mxu1  ;;  %v6217_v53 = vadd.f32 %v4474_v48, %v7697_v5 }
 0xfc9   :  { %v6202_v17 = vadd.f32 %v4405_v21, %v7691_v44  ;;  %v6218_v51 = vadd.f32 %v4476_v14, %v7701_v33 }
 0xfca   :  { %v4922_v27 = vmul.f32 -1.442695, %v6201_v35  ;;  %v4924_v45 = vmul.f32 -1.442695, %v6217_v53 }
 0xfcb   :  { %v4923_v61 = vmul.f32 -1.442695, %v6202_v17 }
 0xfcc   :  { %6525 = vpow2.f32 %v4922_v27 }
 0xfcd   :  { %6527 = vpow2.f32 %v4923_v61 }
 0xfce   :  { %6529 = vtanh.f32 %v6218_v51 }
 0xfcf   :  { %6531 = vpow2.f32 %v4924_v45 }
 0xfd6   :  { %v6526_v41 = vpop.eup %6525 }
 0xfd7   :  { %v4496_v16 = vadd.f32 1.0, %v6526_v41  ;;  %v6528_v11 = vpop.eup %6527 }
 0xfd8   :  { %v4497_v2 = vadd.f32 1.0, %v6528_v11  ;;  %v6530_v22 = vpop.eup %6529 }
 0xfd9   :  { %6533 = vrcp.f32 %v4496_v16  ;;  %v6532_v12 = vpop.eup %6531 }
 0xfda   :  { %6535 = vrcp.f32 %v4497_v2  ;;  %v4498_v46 = vadd.f32 1.0, %v6532_v12  ;;  %v4928_v2 = vld [vmem:[%s8053_s10] ss:$0 sm:$0xff] }
 0xfdc   :  { %6537 = vrcp.f32 %v4498_v46 }
 0xfe3   :  { %v6534_v62 = vpop.eup %6533 }
 0xfe4   :  { %v4508_v50 = vmul.f32 %v6534_v62, %v6530_v22  ;;  %v6536_v28 = vpop.eup %6535 }
 0xfe5   :  { %v4507_v8 = vmul.f32 %v6536_v28, %v7979_v23 }
 0xfe6   :  { %v6538_v31 = vpop.eup %6537 }
 0xfe7   :  { %v8019_v30 = vadd.f32 %v4508_v50, %v4507_v8 }
 0xfe9   :  { %6539 = vtanh.f32 %v8019_v30 }
 0xff3   :  { %v6540_v29 = vpop.eup %6539 }
 0xff4   :  { %v4511_v10 = vmul.f32 %v6540_v29, %v6538_v31 }
 0xff6   :  { %4644 = vmatmul.mubr.f32.vlgmr.msra.gmra.mrb[30].mxu0 %v4511_v10  ;;  %4715 = vmatmul.mubr.f32.vlgmr.msra.gmra.mrb[30].mxu1 %v4511_v10 }
 0xff7   :  { %6135 = vmatpush3.bf16.msra.mxu0 %v6134_v1  ;;  %4978 = vmatprep.mubr.msk.f32.mxu0 %vm6787_vm0, %v6785_v0 }
 0xff8   :  { %6136 = vmatprep.subr.bf16.mxu0 %v6786_v7 }
 0xffb   :  { %6138 = vmatpush3.bf16.msra.mxu0 %v6137_v59 }
 0xffc   :  { %6139 = vmatprep.subr.bf16.mxu0 %v6786_v7 }
 0xfff   :  { %6141 = vmatpush3.bf16.msra.mxu0 %v6140_v40 }
0x1000   :  { %6142 = vmatprep.subr.bf16.mxu0 %v6786_v7 }
0x1003   :  { %6144 = vmatpush3.bf16.msra.mxu0 %v6143_v34 }
0x1004   :  { %6145 = vmatprep.subr.bf16.mxu0 %v6786_v7 }
0x1007   :  { %6147 = vmatpush3.bf16.msra.mxu0 %v6146_v32 }
0x1008   :  { %6148 = vmatprep.subr.bf16.mxu0 %v6786_v7 }
0x100b   :  { %6150 = vmatpush3.bf16.msra.mxu0 %v6149_v60 }
0x100c   :  { %6151 = vmatprep.subr.bf16.mxu0 %v6786_v7 }
0x100f   :  { %6153 = vmatpush3.bf16.msra.mxu0 %v6152_v3 }
0x1010   :  { %6154 = vmatprep.subr.bf16.mxu0 %v6786_v7 }
0x1013   :  { %6156 = vmatpush3.bf16.msra.mxu0 %v6155_v43 }
0x10c9   :  { %v4645_v57 = vpop.f32.mrb[30].mxu0  ;;  %v4716_v52 = vpop.f32.mrb[30].mxu1 }
0x10ca   :  { %v6203_v18 = vadd.f32 %v4645_v57, %v7687_v26  ;;  %v4647_v25 = vpop.f32.mrb[31].mxu0  ;;  %v4718_v23 = vpop.f32.mrb[31].mxu1  ;;  %v6219_v56 = vadd.f32 %v4716_v52, %v7697_v5 }
0x10cb   :  { %v6204_v63 = vadd.f32 %v4647_v25, %v7691_v44  ;;  %v6220_v0 = vadd.f32 %v4718_v23, %v7701_v33 }
0x10cc   :  { %v4925_v54 = vmul.f32 -1.442695, %v6203_v18  ;;  %v4927_v48 = vmul.f32 -1.442695, %v6219_v56 }
0x10cd   :  { %v4926_v58 = vmul.f32 -1.442695, %v6204_v63 }
0x10ce   :  { %6541 = vpow2.f32 %v4925_v54 }
0x10cf   :  { %6543 = vpow2.f32 %v4926_v58 }
0x10d0   :  { %6545 = vtanh.f32 %v6220_v0 }
0x10d1   :  { %6547 = vpow2.f32 %v4927_v48 }
0x10d8   :  { %v6542_v35 = vpop.eup %6541 }
0x10d9   :  { %v4738_v21 = vadd.f32 1.0, %v6542_v35  ;;  %v6544_v14 = vpop.eup %6543 }
0x10da   :  { %v4739_v26 = vadd.f32 1.0, %v6544_v14  ;;  %v6546_v17 = vpop.eup %6545 }
0x10db   :  { %6549 = vrcp.f32 %v4738_v21  ;;  %v6548_v27 = vpop.eup %6547 }
0x10dc   :  { %6551 = vrcp.f32 %v4739_v26  ;;  %v4740_v51 = vadd.f32 1.0, %v6548_v27 }
0x10de   :  { %6553 = vrcp.f32 %v4740_v51 }
0x10e5   :  { %v6550_v44 = vpop.eup %6549 }
0x10e6   :  { %v4750_v61 = vmul.f32 %v6550_v44, %v6546_v17  ;;  %v6552_v53 = vpop.eup %6551 }
0x10e7   :  { %v4749_v45 = vmul.f32 %v6552_v53, %v8019_v30 }
0x10e8   :  { %v6554_v33 = vpop.eup %6553 }
0x10e9   :  { %v4751_v5 = vadd.f32 %v4750_v61, %v4749_v45 }
0x10eb   :  { %6555 = vtanh.f32 %v4751_v5 }
0x10f5   :  { %v6556_v41 = vpop.eup %6555 }
0x10f6   :  { %v4753_v16 = vmul.f32 %v6556_v41, %v6554_v33 }
0x10f8   :  { %6557 = vtanh.f32 %v4753_v16 }
0x1102   :  { %v6558_v11 = vpop.eup %6557 }
0x1103   :  { %4979 = vmatmul.mubr.f32.vlgmr.msra.gmra.mrb[32].mxu0 %v6558_v11 }
0x11d6   :  { %v4847_v22 = vpop.f32.mrb[32].mxu0 }
0x11d7   :  { %v4848_v12 = vadd.f32 %v4928_v2, %v4847_v22  ;;  %v4980_v62 = vpop.f32.mrb[33].mxu0 }
0x11d9   :  { %4851 = vmax.xlane.f32.xlu0 %v4848_v12 }
0x1266   :  { %v4852_v50 = vpop.xlane.xlu0 %4851 }
0x1267   :  { %v4853_v28 = vsub.f32 %v4848_v12, %v4852_v50 }
0x1269   :  { %v4854_v46 = vmul.f32 1.442695, %v4853_v28 }
0x126b   :  { %6559 = vpow2.f32 %v4854_v46 }
0x1275   :  { %v6560_v8 = vpop.eup %6559 }
0x1276   :  { %4856 = vadd.xlane.f32.xlu0 %v6560_v8 }
0x1303   :  { %v4857_v30 = vpop.xlane.xlu0 %4856 }
0x1304   :  { %6561 = vrcp.f32 %v4857_v30 }
0x130e   :  { %v6562_v31 = vpop.eup %6561 }
0x130f   :  { %v4859_v29 = vmul.f32 %v6562_v31, %v6560_v8 }
0x1311   :  { %4860 = vst [vmem:[#allocation20] sm:$0xff] %v4859_v29 }
0x1312   :  { %6750 = shalt.err (!%p6747_p12)
}
0x1313   :  { %s6751_s26 = scalar_lea.hbm %s8054_s11, 128 }
0x1314   :  { %p6752_p13 = scmp.ne.s32.totalorder %s8054_s11, %s6751_s26  ;;  %p6755_p0 = scmp.lt.u32.totalorder %s6751_s26, %s8054_s11 }
0x1316   :  { %p6757_p1 = pnand %p6755_p0, %p6752_p13 }
0x1318   :  { %6760 = shalt.err (!%p6757_p1)
}
0x1319   :  { %4870 = dma.vmem_to_hbm [thread:$0]  %s4868_s23, 128, %s8054_s11, [#allocation8]  }
0x131a   :  { %6771 = dma.done.wait [#allocation8], 128  }
0x131b   :  { %6772 = vsyncadd [#allocation8], 4294967168 }
0x131c   :  { %4874 = vsyncpa [#allocation7], 1 }
0x131d   :  { %4875 = vsyncpa [#allocation10], 1 }
0x131e   :  { %4876 = vsyncpa [#allocation13], 1 }
0x131f   :  { %4877 = vsyncpa [#allocation16], 1 }
0x1320   :  { %4878 = vsyncpa [#allocation19], 1 }
0x1321   :  { %4879 = vsyncpa [#allocation8], 1 }

</bundles_post_ra>
